<compile_context>
chip_gen: v7x
topology: tpu7x:2x2x1
jax: 0.10.0
libtpu: 0.0.40
codegen_flags: <defaults>
</compile_context>

<pallas_src>
import jax
import jax.numpy as jnp
from jax.experimental import pallas as pl
from jax.experimental.pallas import tpu as pltpu


def _round_up(x, m):
    return (x + m - 1) // m * m


def _pad_to(arr, shape):
    pads = [(0, s - d) for d, s in zip(arr.shape, shape)]
    return jnp.pad(arr, pads)


# ---------------------------------------------------------------------------
# Fused 4-layer MLP kernel: one row-tile of the batch per grid step.
# ---------------------------------------------------------------------------
def _fc_kernel(drug_ref, prot_ref,
               w1_ref, b1_ref,
               w2_ref, b2_ref,
               w3_ref, b3_ref,
               w4_ref, b4_ref,
               out_ref):
    # Layer 1: in-VMEM concat -> single K=2*D_pad dot (fills the 256-wide MXU
    # on v6e/v7x instead of two half-filled K=128 dots).
    x = jnp.concatenate([drug_ref[...], prot_ref[...]], axis=1)   # (TM, 2*D_pad) bf16
    h = jnp.dot(x, w1_ref[...], preferred_element_type=jnp.float32) + b1_ref[...]
    h = jnp.maximum(h, 0.0).astype(jnp.bfloat16)          # ReLU (+Dropout=identity)

    # Layer 2
    h = jnp.dot(h, w2_ref[...], preferred_element_type=jnp.float32) + b2_ref[...]
    h = jnp.maximum(h, 0.0).astype(jnp.bfloat16)

    # Layer 3
    h = jnp.dot(h, w3_ref[...], preferred_element_type=jnp.float32) + b3_ref[...]
    h = jnp.maximum(h, 0.0).astype(jnp.bfloat16)

    # Layer 4 (no activation)
    out = jnp.dot(h, w4_ref[...], preferred_element_type=jnp.float32) + b4_ref[...]
    out_ref[...] = out.astype(out_ref.dtype)


# ---------------------------------------------------------------------------
# One-time weight preparation (hoisted out of the per-call wrapper so repeated
# forward calls pay zero pad/cast HBM traffic).
# ---------------------------------------------------------------------------
def prepare_fc_params(params, feature_dim):
    """params: list of 4 (W [in,out], b [out]); feature_dim: per-modality D."""
    (w1, b1), (w2, b2), (w3, b3), (w4, b4) = params
    D = feature_dim
    assert w1.shape[0] == 2 * D
    H1, H2, H3 = w1.shape[1], w2.shape[1], w3.shape[1]
    n_output = w4.shape[1]
    D_pad = _round_up(D, 128)
    NOUT_pad = _round_up(n_output, 128)

    # Re-lay-out W1 rows to match the padded concatenated activation layout:
    # activation columns [0:D_pad] are (zero-padded) drug features,
    # [D_pad:2*D_pad] are protein features.
    w1d = _pad_to(w1[:D], (D_pad, H1))
    w1p = _pad_to(w1[D:], (D_pad, H1))
    w1c = jnp.concatenate([w1d, w1p], axis=0).astype(jnp.bfloat16)   # (2*D_pad, H1)

    return dict(
        D=D, D_pad=D_pad, H1=H1, H2=H2, H3=H3,
        n_output=n_output, NOUT_pad=NOUT_pad,
        w1=w1c,
        b1=b1.reshape(1, H1).astype(jnp.float32),
        w2=w2.astype(jnp.bfloat16),
        b2=b2.reshape(1, H2).astype(jnp.float32),
        w3=w3.astype(jnp.bfloat16),
        b3=b3.reshape(1, H3).astype(jnp.float32),
        w4=_pad_to(w4, (H3, NOUT_pad)).astype(jnp.bfloat16),
        b4=_pad_to(b4.reshape(1, n_output).astype(jnp.float32), (1, NOUT_pad)),
    )


def _choose_tm(batch):
    """Row tile: multiple of 16 (bf16 sublane packing).  For large batches use
    128-multiples up to 512 rows while keeping >= 2 grid steps so both v7x
    TensorCores get work on the 'parallel' grid axis."""
    if batch <= 128:
        return _round_up(batch, 16)
    n_blocks = _round_up(batch, 128) // 128
    return 128 * max(1, min(4, n_blocks // 2))


# ---------------------------------------------------------------------------
# Per-call wrapper: pads activations, builds BlockSpecs / grid, runs kernel.
# ---------------------------------------------------------------------------
def fc_forward(drug, prot, prep):
    """drug, prot: [B, D] float32.  prep: output of prepare_fc_params."""
    B, D = drug.shape
    assert D == prep["D"] and prot.shape == (B, D)
    D_pad, NOUT_pad = prep["D_pad"], prep["NOUT_pad"]
    H1, H2, H3 = prep["H1"], prep["H2"], prep["H3"]
    n_output = prep["n_output"]

    TM = _choose_tm(B)
    B_pad = _round_up(B, TM)

    drug_p = _pad_to(drug, (B_pad, D_pad)).astype(jnp.bfloat16)
    prot_p = _pad_to(prot, (B_pad, D_pad)).astype(jnp.bfloat16)

    args = (drug_p, prot_p,
            prep["w1"], prep["b1"], prep["w2"], prep["b2"],
            prep["w3"], prep["b3"], prep["w4"], prep["b4"])

    def make_call(single_buffer_weights):
        def row_spec(cols):                       # batch-tiled operand
            return pl.BlockSpec((TM, cols), lambda i: (i, 0))

        def resident_spec(rows, cols):            # weight/bias resident in VMEM
            if single_buffer_weights:
                # Constant index_map: one buffer suffices; default double
                # buffering would waste ~2x resident-weight VMEM.
                return pl.BlockSpec((rows, cols), lambda i: (0, 0),
                                    pipeline_mode=pl.Buffered(1))
            return pl.BlockSpec((rows, cols), lambda i: (0, 0))

        return pl.pallas_call(
            _fc_kernel,
            out_shape=jax.ShapeDtypeStruct((B_pad, NOUT_pad), jnp.float32),
            grid_spec=pl.GridSpec(
                grid=(B_pad // TM,),
                in_specs=[
                    row_spec(D_pad), row_spec(D_pad),
                    resident_spec(2 * D_pad, H1), resident_spec(1, H1),
                    resident_spec(H1, H2), resident_spec(1, H2),
                    resident_spec(H2, H3), resident_spec(1, H3),
                    resident_spec(H3, NOUT_pad), resident_spec(1, NOUT_pad),
                ],
                out_specs=pl.BlockSpec((TM, NOUT_pad), lambda i: (i, 0)),
            ),
            compiler_params=pltpu.CompilerParams(
                dimension_semantics=("parallel",),
                vmem_limit_bytes=32 * 1024 * 1024,
            ),
        )

    try:
        out = jax.block_until_ready(make_call(True)(*args))
    except Exception:
        # Compatibility fallback if this JAX build rejects Buffered(1) on a
        # top-level pallas_call BlockSpec; semantics are identical.
        out = jax.block_until_ready(make_call(False)(*args))

    return out[:B, :n_output]


# ---------------------------------------------------------------------------
# Plain-JAX reference (same bf16-input / f32-accumulate arithmetic).
# ---------------------------------------------------------------------------
def fc_reference(drug, prot, params):
    x = jnp.concatenate([drug, prot], axis=1).astype(jnp.bfloat16)
    n_layers = len(params)
    for li, (w, b) in enumerate(params):
        x = jnp.dot(x, w.astype(jnp.bfloat16),
                    preferred_element_type=jnp.float32) + b.astype(jnp.float32)
        if li < n_layers - 1:
            x = jnp.maximum(x, 0.0).astype(jnp.bfloat16)
    return x


if __name__ == "__main__":
    key = jax.random.PRNGKey(0)

    # Small shapes: batch=8, output_dim=32 (-> combined 64), n_output=2.
    B, output_dim, n_output = 8, 32, 2
    ks = jax.random.split(key, 10)

    drug = jax.random.normal(ks[0], (B, output_dim), dtype=jnp.float32)
    prot = jax.random.normal(ks[1], (B, output_dim), dtype=jnp.float32)

    layer_dims = [(2 * output_dim, 1024), (1024, 512), (512, 256), (256, n_output)]
    params = []
    for li, (fan_in, fan_out) in enumerate(layer_dims):
        w = jax.random.normal(ks[2 + 2 * li], (fan_in, fan_out),
                              dtype=jnp.float32) / jnp.sqrt(float(fan_in))
        b = 0.01 * jax.random.normal(ks[3 + 2 * li], (fan_out,), dtype=jnp.float32)
        params.append((w, b))

    # One-time weight prep (pad + bf16 cast), then the fused forward.
    prep = jax.tree_util.tree_map(jax.block_until_ready,
                                  prepare_fc_params(params, output_dim))
    pred = fc_forward(drug, prot, prep)
    pred = jax.block_until_ready(pred)

    ref = fc_reference(drug, prot, params)
    assert pred.shape == (B, n_output)
    assert jnp.allclose(pred, ref, atol=2e-2, rtol=2e-2), "mismatch vs reference"

    print("KERNEL_OK")
</pallas_src>

<mosaic_0001>
module attributes {stable_mosaic.version = 11 : i64} {
  func.func @_fc_kernel(%arg0: i32, %arg1: memref<16x128xbf16, #tpu.memory_space<vmem>>, %arg2: memref<16x128xbf16, #tpu.memory_space<vmem>>, %arg3: memref<256x1024xbf16, #tpu.memory_space<vmem>>, %arg4: memref<1x1024xf32, #tpu.memory_space<vmem>>, %arg5: memref<1024x512xbf16, #tpu.memory_space<vmem>>, %arg6: memref<1x512xf32, #tpu.memory_space<vmem>>, %arg7: memref<512x256xbf16, #tpu.memory_space<vmem>>, %arg8: memref<1x256xf32, #tpu.memory_space<vmem>>, %arg9: memref<256x128xbf16, #tpu.memory_space<vmem>>, %arg10: memref<1x128xf32, #tpu.memory_space<vmem>>, %arg11: memref<16x128xf32, #tpu.memory_space<vmem>>) attributes {dimension_semantics = [#tpu.dimension_semantics<parallel>], iteration_bounds = array<i64: 1>, scalar_prefetch = 0 : i64, scratch_operands = 0 : i64, tpu.core_type = #tpu.core_type<tc>, window_params = [{transform_indices = @transform_0, window_bounds = array<i64: 16, 128>}, {transform_indices = @transform_1, window_bounds = array<i64: 16, 128>}, {pipeline_mode = #tpu.pipeline_mode<synchronous>, transform_indices = @transform_2, window_bounds = array<i64: 256, 1024>}, {pipeline_mode = #tpu.pipeline_mode<synchronous>, transform_indices = @transform_3, window_bounds = array<i64: 1, 1024>}, {pipeline_mode = #tpu.pipeline_mode<synchronous>, transform_indices = @transform_4, window_bounds = array<i64: 1024, 512>}, {pipeline_mode = #tpu.pipeline_mode<synchronous>, transform_indices = @transform_5, window_bounds = array<i64: 1, 512>}, {pipeline_mode = #tpu.pipeline_mode<synchronous>, transform_indices = @transform_6, window_bounds = array<i64: 512, 256>}, {pipeline_mode = #tpu.pipeline_mode<synchronous>, transform_indices = @transform_7, window_bounds = array<i64: 1, 256>}, {pipeline_mode = #tpu.pipeline_mode<synchronous>, transform_indices = @transform_8, window_bounds = array<i64: 256, 128>}, {pipeline_mode = #tpu.pipeline_mode<synchronous>, transform_indices = @transform_9, window_bounds = array<i64: 1, 128>}, {transform_indices = @transform_10, window_bounds = array<i64: 16, 128>}]} {
    %c0 = arith.constant 0 : index
    %c0_0 = arith.constant 0 : index
    %0 = vector.load %arg1[%c0, %c0_0] : memref<16x128xbf16, #tpu.memory_space<vmem>>, vector<16x128xbf16>
    %c0_1 = arith.constant 0 : index
    %c0_2 = arith.constant 0 : index
    %1 = vector.load %arg2[%c0_1, %c0_2] : memref<16x128xbf16, #tpu.memory_space<vmem>>, vector<16x128xbf16>
    %2 = tpu.concatenate %0, %1 in 1 : vector<16x128xbf16>, vector<16x128xbf16> -> vector<16x256xbf16>
    %c0_3 = arith.constant 0 : index
    %c0_4 = arith.constant 0 : index
    %3 = vector.load %arg3[%c0_3, %c0_4] : memref<256x1024xbf16, #tpu.memory_space<vmem>>, vector<256x1024xbf16>
    %cst = arith.constant dense<0.000000e+00> : vector<16x1024xf32>
    %4 = tpu.matmul %2, %3, %cst {dimension_numbers = #tpu.dot_dimension_numbers<[1], [0], [0], [1], [0, 0, 1, 1], [], []>} : vector<16x256xbf16>, vector<256x1024xbf16>, vector<16x1024xf32> -> vector<16x1024xf32>
    %c0_5 = arith.constant 0 : index
    %c0_6 = arith.constant 0 : index
    %5 = vector.load %arg4[%c0_5, %c0_6] : memref<1x1024xf32, #tpu.memory_space<vmem>>, vector<1x1024xf32>
    %6 = vector.broadcast %5 : vector<1x1024xf32> to vector<16x1024xf32>
    %7 = arith.addf %4, %6 : vector<16x1024xf32>
    %cst_7 = arith.constant 0.000000e+00 : f32
    %8 = vector.broadcast %cst_7 : f32 to vector<16x1024xf32>
    %9 = arith.maximumf %7, %8 : vector<16x1024xf32>
    %10 = arith.truncf %9 : vector<16x1024xf32> to vector<16x1024xbf16>
    %c0_8 = arith.constant 0 : index
    %c0_9 = arith.constant 0 : index
    %11 = vector.load %arg5[%c0_8, %c0_9] : memref<1024x512xbf16, #tpu.memory_space<vmem>>, vector<1024x512xbf16>
    %cst_10 = arith.constant dense<0.000000e+00> : vector<16x512xf32>
    %12 = tpu.matmul %10, %11, %cst_10 {dimension_numbers = #tpu.dot_dimension_numbers<[1], [0], [0], [1], [0, 0, 1, 1], [], []>} : vector<16x1024xbf16>, vector<1024x512xbf16>, vector<16x512xf32> -> vector<16x512xf32>
    %c0_11 = arith.constant 0 : index
    %c0_12 = arith.constant 0 : index
    %13 = vector.load %arg6[%c0_11, %c0_12] : memref<1x512xf32, #tpu.memory_space<vmem>>, vector<1x512xf32>
    %14 = vector.broadcast %13 : vector<1x512xf32> to vector<16x512xf32>
    %15 = arith.addf %12, %14 : vector<16x512xf32>
    %cst_13 = arith.constant 0.000000e+00 : f32
    %16 = vector.broadcast %cst_13 : f32 to vector<16x512xf32>
    %17 = arith.maximumf %15, %16 : vector<16x512xf32>
    %18 = arith.truncf %17 : vector<16x512xf32> to vector<16x512xbf16>
    %c0_14 = arith.constant 0 : index
    %c0_15 = arith.constant 0 : index
    %19 = vector.load %arg7[%c0_14, %c0_15] : memref<512x256xbf16, #tpu.memory_space<vmem>>, vector<512x256xbf16>
    %cst_16 = arith.constant dense<0.000000e+00> : vector<16x256xf32>
    %20 = tpu.matmul %18, %19, %cst_16 {dimension_numbers = #tpu.dot_dimension_numbers<[1], [0], [0], [1], [0, 0, 1, 1], [], []>} : vector<16x512xbf16>, vector<512x256xbf16>, vector<16x256xf32> -> vector<16x256xf32>
    %c0_17 = arith.constant 0 : index
    %c0_18 = arith.constant 0 : index
    %21 = vector.load %arg8[%c0_17, %c0_18] : memref<1x256xf32, #tpu.memory_space<vmem>>, vector<1x256xf32>
    %22 = vector.broadcast %21 : vector<1x256xf32> to vector<16x256xf32>
    %23 = arith.addf %20, %22 : vector<16x256xf32>
    %cst_19 = arith.constant 0.000000e+00 : f32
    %24 = vector.broadcast %cst_19 : f32 to vector<16x256xf32>
    %25 = arith.maximumf %23, %24 : vector<16x256xf32>
    %26 = arith.truncf %25 : vector<16x256xf32> to vector<16x256xbf16>
    %c0_20 = arith.constant 0 : index
    %c0_21 = arith.constant 0 : index
    %27 = vector.load %arg9[%c0_20, %c0_21] : memref<256x128xbf16, #tpu.memory_space<vmem>>, vector<256x128xbf16>
    %cst_22 = arith.constant dense<0.000000e+00> : vector<16x128xf32>
    %28 = tpu.matmul %26, %27, %cst_22 {dimension_numbers = #tpu.dot_dimension_numbers<[1], [0], [0], [1], [0, 0, 1, 1], [], []>} : vector<16x256xbf16>, vector<256x128xbf16>, vector<16x128xf32> -> vector<16x128xf32>
    %c0_23 = arith.constant 0 : index
    %c0_24 = arith.constant 0 : index
    %29 = vector.load %arg10[%c0_23, %c0_24] : memref<1x128xf32, #tpu.memory_space<vmem>>, vector<1x128xf32>
    %30 = vector.broadcast %29 : vector<1x128xf32> to vector<16x128xf32>
    %31 = arith.addf %28, %30 : vector<16x128xf32>
    %c0_25 = arith.constant 0 : index
    %c0_26 = arith.constant 0 : index
    %32 = vector.load %arg11[%c0_25, %c0_26] : memref<16x128xf32, #tpu.memory_space<vmem>>, vector<16x128xf32>
    tpu.vector_store %arg11[%c0_25, %c0_26], %31 {strides = array<i32>} : memref<16x128xf32, #tpu.memory_space<vmem>>, vector<16x128xf32>,
    return
  }
  func.func @transform_0(%arg0: i32) -> (i32, i32) {
    %c0_i32 = arith.constant 0 : i32
    %c0_i32_0 = arith.constant 0 : i32
    return %arg0, %c0_i32 : i32, i32
  }
  func.func @transform_1(%arg0: i32) -> (i32, i32) {
    %c0_i32 = arith.constant 0 : i32
    %c0_i32_0 = arith.constant 0 : i32
    return %arg0, %c0_i32 : i32, i32
  }
  func.func @transform_2(%arg0: i32) -> (i32, i32) {
    %c0_i32 = arith.constant 0 : i32
    %c0_i32_0 = arith.constant 0 : i32
    %c0_i32_1 = arith.constant 0 : i32
    return %c0_i32, %c0_i32_0 : i32, i32
  }
  func.func @transform_3(%arg0: i32) -> (i32, i32) {
    %c0_i32 = arith.constant 0 : i32
    %c0_i32_0 = arith.constant 0 : i32
    %c0_i32_1 = arith.constant 0 : i32
    return %c0_i32, %c0_i32_0 : i32, i32
  }
  func.func @transform_4(%arg0: i32) -> (i32, i32) {
    %c0_i32 = arith.constant 0 : i32
    %c0_i32_0 = arith.constant 0 : i32
    %c0_i32_1 = arith.constant 0 : i32
    return %c0_i32, %c0_i32_0 : i32, i32
  }
  func.func @transform_5(%arg0: i32) -> (i32, i32) {
    %c0_i32 = arith.constant 0 : i32
    %c0_i32_0 = arith.constant 0 : i32
    %c0_i32_1 = arith.constant 0 : i32
    return %c0_i32, %c0_i32_0 : i32, i32
  }
  func.func @transform_6(%arg0: i32) -> (i32, i32) {
    %c0_i32 = arith.constant 0 : i32
    %c0_i32_0 = arith.constant 0 : i32
    %c0_i32_1 = arith.constant 0 : i32
    return %c0_i32, %c0_i32_0 : i32, i32
  }
  func.func @transform_7(%arg0: i32) -> (i32, i32) {
    %c0_i32 = arith.constant 0 : i32
    %c0_i32_0 = arith.constant 0 : i32
    %c0_i32_1 = arith.constant 0 : i32
    return %c0_i32, %c0_i32_0 : i32, i32
  }
  func.func @transform_8(%arg0: i32) -> (i32, i32) {
    %c0_i32 = arith.constant 0 : i32
    %c0_i32_0 = arith.constant 0 : i32
    %c0_i32_1 = arith.constant 0 : i32
    return %c0_i32, %c0_i32_0 : i32, i32
  }
  func.func @transform_9(%arg0: i32) -> (i32, i32) {
    %c0_i32 = arith.constant 0 : i32
    %c0_i32_0 = arith.constant 0 : i32
    %c0_i32_1 = arith.constant 0 : i32
    return %c0_i32, %c0_i32_0 : i32, i32
  }
  func.func @transform_10(%arg0: i32) -> (i32, i32) {
    %c0_i32 = arith.constant 0 : i32
    %c0_i32_0 = arith.constant 0 : i32
    return %arg0, %c0_i32 : i32, i32
  }
}

module attributes {stable_mosaic.version = 11 : i64} {
  func.func @_fc_kernel(%arg0: i32, %arg1: memref<16x128xbf16, #tpu.memory_space<vmem>>, %arg2: memref<16x128xbf16, #tpu.memory_space<vmem>>, %arg3: memref<256x1024xbf16, #tpu.memory_space<vmem>>, %arg4: memref<1x1024xf32, #tpu.memory_space<vmem>>, %arg5: memref<1024x512xbf16, #tpu.memory_space<vmem>>, %arg6: memref<1x512xf32, #tpu.memory_space<vmem>>, %arg7: memref<512x256xbf16, #tpu.memory_space<vmem>>, %arg8: memref<1x256xf32, #tpu.memory_space<vmem>>, %arg9: memref<256x128xbf16, #tpu.memory_space<vmem>>, %arg10: memref<1x128xf32, #tpu.memory_space<vmem>>, %arg11: memref<16x128xf32, #tpu.memory_space<vmem>>) attributes {dimension_semantics = [#tpu.dimension_semantics<parallel>], iteration_bounds = array<i64: 1>, scalar_prefetch = 0 : i64, scratch_operands = 0 : i64, tpu.core_type = #tpu.core_type<tc>, window_params = [{transform_indices = @transform_0, window_bounds = array<i64: 16, 128>}, {transform_indices = @transform_1, window_bounds = array<i64: 16, 128>}, {pipeline_mode = #tpu.pipeline_mode<synchronous>, transform_indices = @transform_2, window_bounds = array<i64: 256, 1024>}, {pipeline_mode = #tpu.pipeline_mode<synchronous>, transform_indices = @transform_3, window_bounds = array<i64: 1, 1024>}, {pipeline_mode = #tpu.pipeline_mode<synchronous>, transform_indices = @transform_4, window_bounds = array<i64: 1024, 512>}, {pipeline_mode = #tpu.pipeline_mode<synchronous>, transform_indices = @transform_5, window_bounds = array<i64: 1, 512>}, {pipeline_mode = #tpu.pipeline_mode<synchronous>, transform_indices = @transform_6, window_bounds = array<i64: 512, 256>}, {pipeline_mode = #tpu.pipeline_mode<synchronous>, transform_indices = @transform_7, window_bounds = array<i64: 1, 256>}, {pipeline_mode = #tpu.pipeline_mode<synchronous>, transform_indices = @transform_8, window_bounds = array<i64: 256, 128>}, {pipeline_mode = #tpu.pipeline_mode<synchronous>, transform_indices = @transform_9, window_bounds = array<i64: 1, 128>}, {transform_indices = @transform_10, window_bounds = array<i64: 16, 128>}]} {
    %c0 = arith.constant 0 : index
    %c0_0 = arith.constant 0 : index
    %0 = vector.load %arg1[%c0, %c0_0] : memref<16x128xbf16, #tpu.memory_space<vmem>>, vector<16x128xbf16>
    %c0_1 = arith.constant 0 : index
    %c0_2 = arith.constant 0 : index
    %1 = vector.load %arg2[%c0_1, %c0_2] : memref<16x128xbf16, #tpu.memory_space<vmem>>, vector<16x128xbf16>
    %2 = tpu.concatenate %0, %1 in 1 : vector<16x128xbf16>, vector<16x128xbf16> -> vector<16x256xbf16>
    %c0_3 = arith.constant 0 : index
    %c0_4 = arith.constant 0 : index
    %3 = vector.load %arg3[%c0_3, %c0_4] : memref<256x1024xbf16, #tpu.memory_space<vmem>>, vector<256x1024xbf16>
    %cst = arith.constant dense<0.000000e+00> : vector<16x1024xf32>
    %4 = tpu.matmul %2, %3, %cst {dimension_numbers = #tpu.dot_dimension_numbers<[1], [0], [0], [1], [0, 0, 1, 1], [], []>} : vector<16x256xbf16>, vector<256x1024xbf16>, vector<16x1024xf32> -> vector<16x1024xf32>
    %c0_5 = arith.constant 0 : index
    %c0_6 = arith.constant 0 : index
    %5 = vector.load %arg4[%c0_5, %c0_6] : memref<1x1024xf32, #tpu.memory_space<vmem>>, vector<1x1024xf32>
    %6 = vector.broadcast %5 : vector<1x1024xf32> to vector<16x1024xf32>
    %7 = arith.addf %4, %6 : vector<16x1024xf32>
    %cst_7 = arith.constant 0.000000e+00 : f32
    %8 = vector.broadcast %cst_7 : f32 to vector<16x1024xf32>
    %9 = arith.maximumf %7, %8 : vector<16x1024xf32>
    %10 = arith.truncf %9 : vector<16x1024xf32> to vector<16x1024xbf16>
    %c0_8 = arith.constant 0 : index
    %c0_9 = arith.constant 0 : index
    %11 = vector.load %arg5[%c0_8, %c0_9] : memref<1024x512xbf16, #tpu.memory_space<vmem>>, vector<1024x512xbf16>
    %cst_10 = arith.constant dense<0.000000e+00> : vector<16x512xf32>
    %12 = tpu.matmul %10, %11, %cst_10 {dimension_numbers = #tpu.dot_dimension_numbers<[1], [0], [0], [1], [0, 0, 1, 1], [], []>} : vector<16x1024xbf16>, vector<1024x512xbf16>, vector<16x512xf32> -> vector<16x512xf32>
    %c0_11 = arith.constant 0 : index
    %c0_12 = arith.constant 0 : index
    %13 = vector.load %arg6[%c0_11, %c0_12] : memref<1x512xf32, #tpu.memory_space<vmem>>, vector<1x512xf32>
    %14 = vector.broadcast %13 : vector<1x512xf32> to vector<16x512xf32>
    %15 = arith.addf %12, %14 : vector<16x512xf32>
    %cst_13 = arith.constant 0.000000e+00 : f32
    %16 = vector.broadcast %cst_13 : f32 to vector<16x512xf32>
    %17 = arith.maximumf %15, %16 : vector<16x512xf32>
    %18 = arith.truncf %17 : vector<16x512xf32> to vector<16x512xbf16>
    %c0_14 = arith.constant 0 : index
    %c0_15 = arith.constant 0 : index
    %19 = vector.load %arg7[%c0_14, %c0_15] : memref<512x256xbf16, #tpu.memory_space<vmem>>, vector<512x256xbf16>
    %cst_16 = arith.constant dense<0.000000e+00> : vector<16x256xf32>
    %20 = tpu.matmul %18, %19, %cst_16 {dimension_numbers = #tpu.dot_dimension_numbers<[1], [0], [0], [1], [0, 0, 1, 1], [], []>} : vector<16x512xbf16>, vector<512x256xbf16>, vector<16x256xf32> -> vector<16x256xf32>
    %c0_17 = arith.constant 0 : index
    %c0_18 = arith.constant 0 : index
    %21 = vector.load %arg8[%c0_17, %c0_18] : memref<1x256xf32, #tpu.memory_space<vmem>>, vector<1x256xf32>
    %22 = vector.broadcast %21 : vector<1x256xf32> to vector<16x256xf32>
    %23 = arith.addf %20, %22 : vector<16x256xf32>
    %cst_19 = arith.constant 0.000000e+00 : f32
    %24 = vector.broadcast %cst_19 : f32 to vector<16x256xf32>
    %25 = arith.maximumf %23, %24 : vector<16x256xf32>
    %26 = arith.truncf %25 : vector<16x256xf32> to vector<16x256xbf16>
    %c0_20 = arith.constant 0 : index
    %c0_21 = arith.constant 0 : index
    %27 = vector.load %arg9[%c0_20, %c0_21] : memref<256x128xbf16, #tpu.memory_space<vmem>>, vector<256x128xbf16>
    %cst_22 = arith.constant dense<0.000000e+00> : vector<16x128xf32>
    %28 = tpu.matmul %26, %27, %cst_22 {dimension_numbers = #tpu.dot_dimension_numbers<[1], [0], [0], [1], [0, 0, 1, 1], [], []>} : vector<16x256xbf16>, vector<256x128xbf16>, vector<16x128xf32> -> vector<16x128xf32>
    %c0_23 = arith.constant 0 : index
    %c0_24 = arith.constant 0 : index
    %29 = vector.load %arg10[%c0_23, %c0_24] : memref<1x128xf32, #tpu.memory_space<vmem>>, vector<1x128xf32>
    %30 = vector.broadcast %29 : vector<1x128xf32> to vector<16x128xf32>
    %31 = arith.addf %28, %30 : vector<16x128xf32>
    %c0_25 = arith.constant 0 : index
    %c0_26 = arith.constant 0 : index
    %32 = vector.load %arg11[%c0_25, %c0_26] : memref<16x128xf32, #tpu.memory_space<vmem>>, vector<16x128xf32>
    tpu.vector_store %arg11[%c0_25, %c0_26], %31 {strides = array<i32>} : memref<16x128xf32, #tpu.memory_space<vmem>>, vector<16x128xf32>,
    return
  }
  func.func @transform_0(%arg0: i32) -> (i32, i32) {
    %c0_i32 = arith.constant 0 : i32
    %c0_i32_0 = arith.constant 0 : i32
    return %arg0, %c0_i32 : i32, i32
  }
  func.func @transform_1(%arg0: i32) -> (i32, i32) {
    %c0_i32 = arith.constant 0 : i32
    %c0_i32_0 = arith.constant 0 : i32
    return %arg0, %c0_i32 : i32, i32
  }
  func.func @transform_2(%arg0: i32) -> (i32, i32) {
    %c0_i32 = arith.constant 0 : i32
    %c0_i32_0 = arith.constant 0 : i32
    %c0_i32_1 = arith.constant 0 : i32
    return %c0_i32, %c0_i32_0 : i32, i32
  }
  func.func @transform_3(%arg0: i32) -> (i32, i32) {
    %c0_i32 = arith.constant 0 : i32
    %c0_i32_0 = arith.constant 0 : i32
    %c0_i32_1 = arith.constant 0 : i32
    return %c0_i32, %c0_i32_0 : i32, i32
  }
  func.func @transform_4(%arg0: i32) -> (i32, i32) {
    %c0_i32 = arith.constant 0 : i32
    %c0_i32_0 = arith.constant 0 : i32
    %c0_i32_1 = arith.constant 0 : i32
    return %c0_i32, %c0_i32_0 : i32, i32
  }
  func.func @transform_5(%arg0: i32) -> (i32, i32) {
    %c0_i32 = arith.constant 0 : i32
    %c0_i32_0 = arith.constant 0 : i32
    %c0_i32_1 = arith.constant 0 : i32
    return %c0_i32, %c0_i32_0 : i32, i32
  }
  func.func @transform_6(%arg0: i32) -> (i32, i32) {
    %c0_i32 = arith.constant 0 : i32
    %c0_i32_0 = arith.constant 0 : i32
    %c0_i32_1 = arith.constant 0 : i32
    return %c0_i32, %c0_i32_0 : i32, i32
  }
  func.func @transform_7(%arg0: i32) -> (i32, i32) {
    %c0_i32 = arith.constant 0 : i32
    %c0_i32_0 = arith.constant 0 : i32
    %c0_i32_1 = arith.constant 0 : i32
    return %c0_i32, %c0_i32_0 : i32, i32
  }
  func.func @transform_8(%arg0: i32) -> (i32, i32) {
    %c0_i32 = arith.constant 0 : i32
    %c0_i32_0 = arith.constant 0 : i32
    %c0_i32_1 = arith.constant 0 : i32
    return %c0_i32, %c0_i32_0 : i32, i32
  }
  func.func @transform_9(%arg0: i32) -> (i32, i32) {
    %c0_i32 = arith.constant 0 : i32
    %c0_i32_0 = arith.constant 0 : i32
    %c0_i32_1 = arith.constant 0 : i32
    return %c0_i32, %c0_i32_0 : i32, i32
  }
  func.func @transform_10(%arg0: i32) -> (i32, i32) {
    %c0_i32 = arith.constant 0 : i32
    %c0_i32_0 = arith.constant 0 : i32
    return %arg0, %c0_i32 : i32, i32
  }
}

</mosaic_0001>

<bundles_post_ra>
// kernel: tpu_custom_call.1
= control target key start
LH: loop header
LB: loop body
LE: loop exit
PB: predicated region body
PF: predicated region fallthrough
CT: control target
= control target key end

     0   :  { %15 = vsyncpa [#allocation3], 0  ;;  %s5207_s0 = inlined_call_operand.hbm [shape: bf16[16,128], index: 0, kind: input, shape index: {}]   ;;  %s5208_s1 = inlined_call_operand.hbm [shape: bf16[16,128], index: 1, kind: input, shape index: {}]   ;;  %s5209_s2 = inlined_call_operand.hbm [shape: bf16[256,1024], index: 2, kind: input, shape index: {}]   ;;  %s5210_s3 = inlined_call_operand.vmem [shape: f32[1,1024], index: 3, kind: input, shape index: {}]   ;;  %s5211_s4 = inlined_call_operand.hbm [shape: bf16[1024,512], index: 4, kind: input, shape index: {}]   ;;  %s5212_s5 = inlined_call_operand.vmem [shape: f32[1,512], index: 5, kind: input, shape index: {}]   ;;  %s5213_s6 = inlined_call_operand.hbm [shape: bf16[512,256], index: 6, kind: input, shape index: {}]   ;;  %s5214_s7 = inlined_call_operand.vmem [shape: f32[1,256], index: 7, kind: input, shape index: {}]   ;;  %s5215_s8 = inlined_call_operand.hbm [shape: bf16[256,128], index: 8, kind: input, shape index: {}]   ;;  %s5216_s9 = inlined_call_operand.vmem [shape: f32[1,128], index: 9, kind: input, shape index: {}]   ;;  %s5217_s10 = inlined_call_operand.hbm [shape: f32[16,128], index: 10, kind: output, shape index: {}]  }
   0x1   :  { %16 = vsyncpa [#allocation6], 0 }
   0x2   :  { %17 = vsyncpa [#allocation9], 0 }
   0x3   :  { %18 = vsyncpa [#allocation12], 0 }
   0x4   :  { %19 = vsyncpa [#allocation4], 0  ;;  %s4949_s13 = smov [#allocation5]   ;;  %s4950_s15 = smov [#allocation8]  }
   0x5   :  { %s37_s14 = sshll.u32 %s4949_s13, 4  ;;  %s63_s16 = sshll.u32 %s4950_s15, 4  ;;  %s38_s14 = int_to_ptr.vmem [resolvable:$true] %s37_s14  ;;  %s5019_s16 = int_to_ptr.vmem [resolvable:$true] %s63_s16 }
   0x6   :  { %s4785_s19 = scalar_lea.hbm %s5208_s1, 128 }
   0x7   :  { %p4786_p0 = scmp.ne.s32.totalorder %s5208_s1, %s4785_s19  ;;  %p4789_p1 = scmp.lt.u32.totalorder %s4785_s19, %s5208_s1 }
   0x9   :  { %p4791_p2 = pnand %p4789_p1, %p4786_p0 }
   0xb   :  { %4794 = shalt.err (!%p4791_p2)
}
   0xc   :  { %s4795_s24 = scalar_lea.vmem %s38_s14, 128  ;;  %p4800_p4 = scmp.lt.s32.totalorder %s38_s14, %s38_s14 }
   0xd   :  { %p4796_p3 = scmp.ne.s32.totalorder %s38_s14, %s4795_s24  ;;  %p4801_p5 = scmp.lt.s32.totalorder %s4795_s24, %s4795_s24 }
   0xf   :  { %p4802_p6 = por %p4801_p5, %p4800_p4 }
  0x11   :  { %p4803_p7 = pnand %p4802_p6, %p4796_p3 }
  0x13   :  { %4806 = shalt.err (!%p4803_p7)
}
  0x14   :  { %s4951_s25 = smov 64   ;;  %s4952_s26 = smov 4  }
  0x15   :  { %43 = dma.hbm_to_vmem [thread:$0]  %s5208_s1, 128, %s38_s14, [#allocation6], %s4951_s25, %s4951_s25, %s4952_s26  }
  0x16   :  { %s4807_s11 = scalar_lea.hbm %s5211_s4, 32768 }
  0x17   :  { %p4808_p8 = scmp.ne.s32.totalorder %s5211_s4, %s4807_s11  ;;  %p4811_p9 = scmp.lt.u32.totalorder %s4807_s11, %s5211_s4 }
  0x19   :  { %p4813_p10 = pnand %p4811_p9, %p4808_p8 }
  0x1b   :  { %4816 = shalt.err (!%p4813_p10)
}
  0x1c   :  { %s4817_s18 = scalar_lea.vmem %s5019_s16, 32768  ;;  %p4822_p12 = scmp.lt.s32.totalorder %s5019_s16, %s5019_s16 }
  0x1d   :  { %p4818_p11 = scmp.ne.s32.totalorder %s5019_s16, %s4817_s18  ;;  %p4823_p13 = scmp.lt.s32.totalorder %s4817_s18, %s4817_s18 }
  0x1f   :  { %p4824_p0 = por %p4823_p13, %p4822_p12 }
  0x21   :  { %p4825_p1 = pnand %p4824_p0, %p4818_p11 }
  0x23   :  { %4828 = shalt.err (!%p4825_p1)
}
  0x24   :  { %s4953_s1 = smov 256   ;;  %s4954_s14 = smov 16  }
  0x25   :  { %69 = dma.hbm_to_vmem [thread:$0]  %s5211_s4, 32768, %s5019_s16, [#allocation9], %s4953_s1, %s4953_s1, %s4954_s14  }
  0x26   :  { %s4955_s21 = smov [#allocation2]   ;;  %s4956_s23 = smov [#allocation7]  }
  0x27   :  { %s25_s22 = sshll.u32 %s4955_s21, 4  ;;  %s49_s24 = sshll.u32 %s4956_s23, 4  ;;  %s26_s22 = int_to_ptr.vmem [resolvable:$true] %s25_s22  ;;  %s5053_s24 = int_to_ptr.vmem [resolvable:$true] %s49_s24 }
  0x28   :  { %s4829_s29 = scalar_lea.hbm %s5207_s0, 128 }
  0x29   :  { %p4830_p2 = scmp.ne.s32.totalorder %s5207_s0, %s4829_s29  ;;  %p4833_p3 = scmp.lt.u32.totalorder %s4829_s29, %s5207_s0 }
  0x2b   :  { %p4835_p4 = pnand %p4833_p3, %p4830_p2 }
  0x2d   :  { %4838 = shalt.err (!%p4835_p4)
}
  0x2e   :  { %s4839_s4 = scalar_lea.vmem %s26_s22, 128  ;;  %p4844_p6 = scmp.lt.s32.totalorder %s26_s22, %s26_s22 }
  0x2f   :  { %p4840_p5 = scmp.ne.s32.totalorder %s26_s22, %s4839_s4  ;;  %p4845_p7 = scmp.lt.s32.totalorder %s4839_s4, %s4839_s4 }
  0x31   :  { %p4846_p8 = por %p4845_p7, %p4844_p6 }
  0x33   :  { %p4847_p9 = pnand %p4846_p8, %p4840_p5 }
  0x35   :  { %4850 = shalt.err (!%p4847_p9)
}
  0x36   :  { %31 = dma.hbm_to_vmem [thread:$0]  %s5207_s0, 128, %s26_s22, [#allocation3], %s4951_s25, %s4951_s25, %s4952_s26  }
  0x37   :  { %s4851_s1 = scalar_lea.hbm %s5209_s2, 16384 }
  0x38   :  { %p4852_p10 = scmp.ne.s32.totalorder %s5209_s2, %s4851_s1  ;;  %p4855_p11 = scmp.lt.u32.totalorder %s4851_s1, %s5209_s2 }
  0x3a   :  { %p4857_p12 = pnand %p4855_p11, %p4852_p10 }
  0x3c   :  { %4860 = shalt.err (!%p4857_p12)
}
  0x3d   :  { %s4861_s23 = scalar_lea.vmem %s5053_s24, 16384  ;;  %p4866_p0 = scmp.lt.s32.totalorder %s5053_s24, %s5053_s24 }
  0x3e   :  { %p4862_p13 = scmp.ne.s32.totalorder %s5053_s24, %s4861_s23  ;;  %p4867_p1 = scmp.lt.s32.totalorder %s4861_s23, %s4861_s23 }
  0x40   :  { %p4868_p2 = por %p4867_p1, %p4866_p0 }
  0x42   :  { %p4869_p3 = pnand %p4868_p2, %p4862_p13 }
  0x44   :  { %4872 = shalt.err (!%p4869_p3)
}
  0x45   :  { %s4957_s0 = smov 512   ;;  %s4958_s22 = smov 32  }
  0x46   :  { %55 = dma.hbm_to_vmem [thread:$0]  %s5209_s2, 16384, %s5053_s24, [#allocation6], %s4957_s0, %s4957_s0, %s4958_s22  }
  0x47   :  { %s4959_s29 = smov [#allocation10]   ;;  %s4873_s13 = scalar_lea.hbm %s5213_s6, 8192 }
  0x48   :  { %s77_s30 = sshll.u32 %s4959_s29, 4  ;;  %p4874_p4 = scmp.ne.s32.totalorder %s5213_s6, %s4873_s13  ;;  %s78_s30 = int_to_ptr.vmem [resolvable:$true] %s77_s30 }
  0x49   :  { %p4877_p5 = scmp.lt.u32.totalorder %s4873_s13, %s5213_s6 }
  0x4b   :  { %p4879_p6 = pnand %p4877_p5, %p4874_p4 }
  0x4d   :  { %4882 = shalt.err (!%p4879_p6)
}
  0x4e   :  { %s4883_s18 = scalar_lea.vmem %s78_s30, 8192  ;;  %p4888_p8 = scmp.lt.s32.totalorder %s78_s30, %s78_s30 }
  0x4f   :  { %p4884_p7 = scmp.ne.s32.totalorder %s78_s30, %s4883_s18  ;;  %p4889_p9 = scmp.lt.s32.totalorder %s4883_s18, %s4883_s18 }
  0x51   :  { %p4890_p10 = por %p4889_p9, %p4888_p8 }
  0x53   :  { %p4891_p11 = pnand %p4890_p10, %p4884_p7 }
  0x55   :  { %4894 = shalt.err (!%p4891_p11)
}
  0x56   :  { %s4960_s2 = smov 128   ;;  %s4961_s24 = smov 8  }
  0x57   :  { %83 = dma.hbm_to_vmem [thread:$0]  %s5213_s6, 8192, %s78_s30, [#allocation9], %s4960_s2, %s4960_s2, %s4961_s24  }
  0x58   :  { %s4962_s19 = smov [#allocation11]   ;;  %s4895_s0 = scalar_lea.hbm %s5215_s8, 2048 }
  0x59   :  { %s91_s20 = sshll.u32 %s4962_s19, 4  ;;  %p4896_p12 = scmp.ne.s32.totalorder %s5215_s8, %s4895_s0  ;;  %s92_s20 = int_to_ptr.vmem [resolvable:$true] %s91_s20 }
  0x5a   :  { %p4899_p13 = scmp.lt.u32.totalorder %s4895_s0, %s5215_s8 }
  0x5c   :  { %p4901_p0 = pnand %p4899_p13, %p4896_p12 }
  0x5e   :  { %4904 = shalt.err (!%p4901_p0)
}
  0x5f   :  { %s4905_s11 = scalar_lea.vmem %s92_s20, 2048  ;;  %p4910_p2 = scmp.lt.s32.totalorder %s92_s20, %s92_s20 }
  0x60   :  { %p4906_p1 = scmp.ne.s32.totalorder %s92_s20, %s4905_s11  ;;  %p4911_p3 = scmp.lt.s32.totalorder %s4905_s11, %s4905_s11 }
  0x62   :  { %p4912_p4 = por %p4911_p3, %p4910_p2 }
  0x64   :  { %p4913_p5 = pnand %p4912_p4, %p4906_p1 }
  0x66   :  { %4916 = shalt.err (!%p4913_p5)
}
  0x67   :  { %97 = dma.hbm_to_vmem [thread:$0]  %s5215_s8, 2048, %s92_s20, [#allocation12], %s4951_s25, %s4951_s25, %s4952_s26  }
  0x68   :  { %4939 = dma.done.wait [#allocation3], 128  }
  0x69   :  { %4940 = vsyncadd [#allocation3], 4294967168 }
  0x6a   :  { %4941 = dma.done.wait [#allocation6], 16512  }
  0x6b   :  { %4942 = vsyncadd [#allocation6], 4294950784 }
  0x6c   :  { %4943 = dma.done.wait [#allocation9], 40960  }
  0x6d   :  { %4944 = vsyncadd [#allocation9], 4294926336 }
  0x6e   :  { %4945 = dma.done.wait [#allocation12], 2048  }
  0x6f   :  { %4946 = vsyncadd [#allocation12], 4294965248  ;;  %v135_v0 = vld [vmem:[#allocation7] sm:$0xff]  ;;  %v5117_v17 = vld [vmem:[#allocation5] sm:$0xff]   ;;  %s4963_s4 = smov [#allocation13]  }
  0x70   :  { %v139_v1 = vld [vmem:[#allocation7 + $0x20] sm:$0xff]  ;;  %977 = vmatprep.mubr.bf16.mxu1 %v5117_v17  ;;  %1063 = vmatprep.mubr.bf16.mxu0 %v5117_v17  ;;  %v137_v30 = vld [vmem:[#allocation7 + $0x10] sm:$0xff]  ;;  %s3726_s16 = sshll.u32 %s4963_s4, 4  ;;  %s3727_s16 = int_to_ptr.vmem [resolvable:$true] %s3726_s16 }
  0x71   :  { %v143_v2 = vld [vmem:[#allocation7 + $0x40] sm:$0xff]  ;;  %v3744_v3 = vcombine.high %v135_v0, %v139_v1  ;;  %v3743_v4 = vcombine.low %v135_v0, %v139_v1  ;;  %v141_v31 = vld [vmem:[#allocation7 + $0x30] sm:$0xff]  ;;  %s4917_s15 = scalar_lea.vmem %s3727_s16, 256  ;;  %p4922_p7 = scmp.lt.s32.totalorder %s3727_s16, %s3727_s16 }
  0x72   :  { %v147_v5 = vld [vmem:[#allocation7 + $0x60] sm:$0xff]  ;;  %v3748_v33 = vcombine.high %v137_v30, %v141_v31  ;;  %v3747_v34 = vcombine.low %v137_v30, %v141_v31  ;;  %v145_v35 = vld [vmem:[#allocation7 + $0x50] sm:$0xff]  ;;  %p4918_p6 = scmp.ne.s32.totalorder %s3727_s16, %s4917_s15  ;;  %p4923_p8 = scmp.lt.s32.totalorder %s4917_s15, %s4917_s15 }
  0x73   :  { %v3752_v6 = vcombine.high %v143_v2, %v147_v5  ;;  %v151_v7 = vld [vmem:[#allocation7 + $0x80] sm:$0xff]  ;;  %945 = vmatprep.subr.bf16.mxu1 %v3744_v3  ;;  %v3751_v9 = vcombine.low %v143_v2, %v147_v5  ;;  %v149_v36 = vld [vmem:[#allocation7 + $0x70] sm:$0xff] }
  0x74   :  { %v155_v8 = vld [vmem:[#allocation7 + $0xa0] sm:$0xff]  ;;  %946 = vmatpush1.bf16.msra.mxu1 %v3743_v4  ;;  %v3756_v38 = vcombine.high %v145_v35, %v149_v36  ;;  %v153_v39 = vld [vmem:[#allocation7 + $0x90] sm:$0xff]  ;;  %1031 = vmatprep.subr.bf16.mxu0 %v3748_v33  ;;  %v3755_v43 = vcombine.low %v145_v35, %v149_v36  ;;  %p4924_p9 = por %p4923_p8, %p4922_p7 }
  0x75   :  { %947 = vmatprep.subr.bf16.mxu1 %v3752_v6  ;;  %v3760_v10 = vcombine.high %v151_v7, %v155_v8  ;;  %v159_v11 = vld [vmem:[#allocation7 + $0xc0] sm:$0xff]  ;;  %v3759_v13 = vcombine.low %v151_v7, %v155_v8  ;;  %v157_v40 = vld [vmem:[#allocation7 + $0xb0] sm:$0xff]  ;;  %1032 = vmatpush1.bf16.msra.mxu0 %v3747_v34 }
  0x76   :  { %v163_v12 = vld [vmem:[#allocation7 + $0xe0] sm:$0xff]  ;;  %1033 = vmatprep.subr.bf16.mxu0 %v3756_v38  ;;  %v3764_v45 = vcombine.high %v153_v39, %v157_v40  ;;  %v161_v47 = vld [vmem:[#allocation7 + $0xd0] sm:$0xff]  ;;  %v3763_v51 = vcombine.low %v153_v39, %v157_v40  ;;  %v136_v38 = vld [vmem:[#allocation7 + $0x8] sm:$0xff]  ;;  %p4925_p10 = pnand %p4924_p9, %p4918_p6 }
  0x77   :  { %v3768_v14 = vcombine.high %v159_v11, %v163_v12  ;;  %v167_v15 = vld [vmem:[#allocation7 + $0x100] sm:$0xff]  ;;  %v3767_v18 = vcombine.low %v159_v11, %v163_v12  ;;  %v165_v48 = vld [vmem:[#allocation7 + $0xf0] sm:$0xff]  ;;  %v140_v39 = vld [vmem:[#allocation7 + $0x28] sm:$0xff] }
  0x78   :  { %948 = vmatpush1.bf16.msra.mxu1 %v3751_v9  ;;  %v171_v16 = vld [vmem:[#allocation7 + $0x120] sm:$0xff]  ;;  %v3772_v53 = vcombine.high %v161_v47, %v165_v48  ;;  %v169_v55 = vld [vmem:[#allocation7 + $0x110] sm:$0xff]  ;;  %v3771_v59 = vcombine.low %v161_v47, %v165_v48  ;;  %v148_v47 = vld [vmem:[#allocation7 + $0x68] sm:$0xff] }
  0x79   :  { %949 = vmatprep.subr.bf16.mxu1 %v3760_v10  ;;  %v3776_v19 = vcombine.high %v167_v15, %v171_v16  ;;  %v175_v20 = vld [vmem:[#allocation7 + $0x140] sm:$0xff]  ;;  %v3775_v22 = vcombine.low %v167_v15, %v171_v16  ;;  %1034 = vmatpush1.bf16.msra.mxu0 %v3755_v43  ;;  %v173_v56 = vld [vmem:[#allocation7 + $0x130] sm:$0xff] }
  0x7a   :  { %v179_v21 = vld [vmem:[#allocation7 + $0x160] sm:$0xff]  ;;  %1035 = vmatprep.subr.bf16.mxu0 %v3764_v45  ;;  %v3780_v61 = vcombine.high %v169_v55, %v173_v56  ;;  %v177_v63 = vld [vmem:[#allocation7 + $0x150] sm:$0xff]  ;;  %v3779_v3 = vcombine.low %v169_v55, %v173_v56  ;;  %v152_v55 = vld [vmem:[#allocation7 + $0x88] sm:$0xff] }
  0x7b   :  { %v3784_v23 = vcombine.high %v175_v20, %v179_v21  ;;  %v183_v24 = vld [vmem:[#allocation7 + $0x180] sm:$0xff]  ;;  %v3783_v26 = vcombine.low %v175_v20, %v179_v21  ;;  %v181_v0 = vld [vmem:[#allocation7 + $0x170] sm:$0xff]  ;;  %v156_v56 = vld [vmem:[#allocation7 + $0xa8] sm:$0xff] }
  0x7c   :  { %950 = vmatpush1.bf16.msra.mxu1 %v3759_v13  ;;  %v187_v25 = vld [vmem:[#allocation7 + $0x1a0] sm:$0xff]  ;;  %v3788_v7 = vcombine.high %v177_v63, %v181_v0  ;;  %v185_v8 = vld [vmem:[#allocation7 + $0x190] sm:$0xff]  ;;  %v3787_v11 = vcombine.low %v177_v63, %v181_v0  ;;  %v160_v63 = vld [vmem:[#allocation7 + $0xc8] sm:$0xff] }
  0x7d   :  { %951 = vmatprep.subr.bf16.mxu1 %v3768_v14  ;;  %v3792_v27 = vcombine.high %v183_v24, %v187_v25  ;;  %v191_v28 = vld [vmem:[#allocation7 + $0x1c0] sm:$0xff]  ;;  %v3791_v32 = vcombine.low %v183_v24, %v187_v25  ;;  %1036 = vmatpush1.bf16.msra.mxu0 %v3763_v51  ;;  %v189_v10 = vld [vmem:[#allocation7 + $0x1b0] sm:$0xff]  ;;  %v164_v0 = vld [vmem:[#allocation7 + $0xe8] sm:$0xff] }
  0x7e   :  { %v195_v29 = vld [vmem:[#allocation7 + $0x1e0] sm:$0xff]  ;;  %1037 = vmatprep.subr.bf16.mxu0 %v3772_v53  ;;  %v3796_v15 = vcombine.high %v185_v8, %v189_v10  ;;  %v193_v16 = vld [vmem:[#allocation7 + $0x1d0] sm:$0xff]  ;;  %v3795_v20 = vcombine.low %v185_v8, %v189_v10  ;;  %v172_v8 = vld [vmem:[#allocation7 + $0x128] sm:$0xff] }
  0x7f   :  { %v3800_v37 = vcombine.high %v191_v28, %v195_v29  ;;  %v199_v41 = vld [vmem:[#allocation7 + $0x200] sm:$0xff]  ;;  %v3799_v44 = vcombine.low %v191_v28, %v195_v29  ;;  %v201_v25 = vld [vmem:[#allocation7 + $0x210] sm:$0xff] }
  0x80   :  { %952 = vmatpush1.bf16.msra.mxu1 %v3767_v18  ;;  %v203_v42 = vld [vmem:[#allocation7 + $0x220] sm:$0xff]  ;;  %v197_v18 = vld [vmem:[#allocation7 + $0x1f0] sm:$0xff] }
  0x81   :  { %953 = vmatprep.subr.bf16.mxu1 %v3776_v19  ;;  %v3808_v46 = vcombine.high %v199_v41, %v203_v42  ;;  %v207_v49 = vld [vmem:[#allocation7 + $0x240] sm:$0xff]  ;;  %v3807_v52 = vcombine.low %v199_v41, %v203_v42  ;;  %1038 = vmatpush1.bf16.msra.mxu0 %v3771_v59  ;;  %v3804_v24 = vcombine.high %v193_v16, %v197_v18  ;;  %v209_v33 = vld [vmem:[#allocation7 + $0x250] sm:$0xff] }
  0x82   :  { %v211_v50 = vld [vmem:[#allocation7 + $0x260] sm:$0xff]  ;;  %1039 = vmatprep.subr.bf16.mxu0 %v3780_v61  ;;  %v3803_v28 = vcombine.low %v193_v16, %v197_v18  ;;  %v213_v34 = vld [vmem:[#allocation7 + $0x270] sm:$0xff] }
  0x83   :  { %v3816_v54 = vcombine.high %v207_v49, %v211_v50  ;;  %v215_v57 = vld [vmem:[#allocation7 + $0x280] sm:$0xff]  ;;  %v3815_v60 = vcombine.low %v207_v49, %v211_v50  ;;  %v3820_v40 = vcombine.high %v209_v33, %v213_v34  ;;  %v217_v41 = vld [vmem:[#allocation7 + $0x290] sm:$0xff] }
  0x84   :  { %954 = vmatpush1.bf16.msra.mxu1 %v3775_v22  ;;  %v219_v58 = vld [vmem:[#allocation7 + $0x2a0] sm:$0xff]  ;;  %v221_v42 = vld [vmem:[#allocation7 + $0x2b0] sm:$0xff] }
  0x85   :  { %955 = vmatprep.subr.bf16.mxu1 %v3784_v23  ;;  %v3824_v62 = vcombine.high %v215_v57, %v219_v58  ;;  %v223_v1 = vld [vmem:[#allocation7 + $0x2c0] sm:$0xff]  ;;  %v3823_v4 = vcombine.low %v215_v57, %v219_v58  ;;  %1040 = vmatpush1.bf16.msra.mxu0 %v3779_v3  ;;  %v3828_v48 = vcombine.high %v217_v41, %v221_v42  ;;  %v225_v49 = vld [vmem:[#allocation7 + $0x2d0] sm:$0xff] }
  0x86   :  { %v227_v2 = vld [vmem:[#allocation7 + $0x2e0] sm:$0xff]  ;;  %1041 = vmatprep.subr.bf16.mxu0 %v3788_v7  ;;  %v229_v50 = vld [vmem:[#allocation7 + $0x2f0] sm:$0xff]  ;;  %v3827_v53 = vcombine.low %v217_v41, %v221_v42  ;;  %v3762_v3 = vcombine.high %v152_v55, %v156_v56  ;;  %v168_v7 = vld [vmem:[#allocation7 + $0x108] sm:$0xff] }
  0x87   :  { %v231_v5 = vld [vmem:[#allocation7 + $0x300] sm:$0xff]  ;;  %v3832_v9 = vcombine.high %v223_v1, %v227_v2  ;;  %v3831_v12 = vcombine.low %v223_v1, %v227_v2  ;;  %v5121_v51 = vld [vmem:[#allocation2] sm:$0xff]   ;;  %v3836_v59 = vcombine.high %v225_v49, %v229_v50  ;;  %v3835_v61 = vcombine.low %v225_v49, %v229_v50  ;;  %v208_v41 = vld [vmem:[#allocation7 + $0x248] sm:$0xff] }
  0x88   :  { %956 = vmatpush1.bf16.msra.mxu1 %v3783_v26  ;;  %v235_v6 = vld [vmem:[#allocation7 + $0x320] sm:$0xff]  ;;  %v205_v26 = vld [vmem:[#allocation7 + $0x230] sm:$0xff]  ;;  %v212_v42 = vld [vmem:[#allocation7 + $0x268] sm:$0xff] }
  0x89   :  { %957 = vmatprep.subr.bf16.mxu1 %v3792_v27  ;;  %v239_v13 = vld [vmem:[#allocation7 + $0x340] sm:$0xff]  ;;  %v3840_v19 = vcombine.high %v231_v5, %v235_v6  ;;  %1042 = vmatpush1.bf16.msra.mxu0 %v3787_v11  ;;  %v3839_v21 = vcombine.low %v231_v5, %v235_v6  ;;  %v3811_v36 = vcombine.low %v201_v25, %v205_v26  ;;  %v233_v57 = vld [vmem:[#allocation7 + $0x310] sm:$0xff] }
  0x8a   :  { %v243_v14 = vld [vmem:[#allocation7 + $0x360] sm:$0xff]  ;;  %1043 = vmatprep.subr.bf16.mxu0 %v3796_v15  ;;  %v241_v2 = vld [vmem:[#allocation7 + $0x350] sm:$0xff]  ;;  %v3761_v6 = vcombine.low %v152_v55, %v156_v56  ;;  %v3770_v11 = vcombine.high %v160_v63, %v164_v0  ;;  %v180_v15 = vld [vmem:[#allocation7 + $0x168] sm:$0xff]  ;;  %v3818_v50 = vcombine.high %v208_v41, %v212_v42 }
  0x8b   :  { %v247_v22 = vld [vmem:[#allocation7 + $0x380] sm:$0xff]  ;;  %v3848_v27 = vcombine.high %v239_v13, %v243_v14  ;;  %v3847_v29 = vcombine.low %v239_v13, %v243_v14  ;;  %v249_v10 = vld [vmem:[#allocation7 + $0x390] sm:$0xff]  ;;  %v3769_v13 = vcombine.low %v160_v63, %v164_v0  ;;  %v176_v14 = vld [vmem:[#allocation7 + $0x148] sm:$0xff] }
  0x8c   :  { %958 = vmatpush1.bf16.msra.mxu1 %v3791_v32  ;;  %v251_v23 = vld [vmem:[#allocation7 + $0x3a0] sm:$0xff]  ;;  %v3812_v32 = vcombine.high %v201_v25, %v205_v26  ;;  %v257_v18 = vld [vmem:[#allocation7 + $0x3d0] sm:$0xff]  ;;  %v3786_v25 = vcombine.high %v176_v14, %v180_v15  ;;  %v188_v26 = vld [vmem:[#allocation7 + $0x1a8] sm:$0xff] }
  0x8d   :  { %959 = vmatprep.subr.bf16.mxu1 %v3800_v37  ;;  %1044 = vmatpush1.bf16.msra.mxu0 %v3795_v20  ;;  %v255_v30 = vld [vmem:[#allocation7 + $0x3c0] sm:$0xff]  ;;  %v3856_v35 = vcombine.high %v247_v22, %v251_v23  ;;  %v3855_v37 = vcombine.low %v247_v22, %v251_v23  ;;  %v261_v20 = vld [vmem:[#allocation7 + $0x3f0] sm:$0xff]  ;;  %v3777_v22 = vcombine.low %v168_v7, %v172_v8  ;;  %v184_v23 = vld [vmem:[#allocation7 + $0x188] sm:$0xff] }
  0x8e   :  { %v259_v31 = vld [vmem:[#allocation7 + $0x3e0] sm:$0xff]  ;;  %1045 = vmatprep.subr.bf16.mxu0 %v3804_v24  ;;  %v3868_v24 = vcombine.high %v257_v18, %v261_v20  ;;  %v228_v55 = vld [vmem:[#allocation7 + $0x2e8] sm:$0xff] }
  0x8f   :  { %v3864_v43 = vcombine.high %v255_v30, %v259_v31  ;;  %v3863_v45 = vcombine.low %v255_v30, %v259_v31  ;;  %v196_v30 = vld [vmem:[#allocation7 + $0x1e8] sm:$0xff]  ;;  %v4289_v31 = vld [vmem:[#allocation8 + $0x4] ss:$16 sps:$4 sm:$0xff]   ;;  %v4317_v0 = vld [vmem:[#allocation8 + $0xa0] ss:$16 sps:$4 sm:$0xff]  }
  0x90   :  { %960 = vmatpush1.bf16.msra.mxu1 %v3799_v44  ;;  %v3819_v44 = vcombine.low %v209_v33, %v213_v34  ;;  %v4287_v33 = vld [vmem:[#allocation8] ss:$16 sps:$4 sm:$0xff]   ;;  %v3793_v34 = vcombine.low %v184_v23, %v188_v26  ;;  %v4307_v49 = vld [vmem:[#allocation8 + $0x64] ss:$16 sps:$4 sm:$0xff]  }
  0x91   :  { %961 = vmatprep.subr.bf16.mxu1 %v3808_v46  ;;  %1046 = vmatpush1.bf16.msra.mxu0 %v3803_v28  ;;  %v144_v46 = vld [vmem:[#allocation7 + $0x48] sm:$0xff]  ;;  %v3785_v28 = vcombine.low %v176_v14, %v180_v15  ;;  %v4313_v56 = vld [vmem:[#allocation8 + $0x84] ss:$16 sps:$4 sm:$0xff]  }
  0x92   :  { %1047 = vmatprep.subr.bf16.mxu0 %v3812_v32  ;;  %v3754_v58 = vcombine.high %v144_v46, %v148_v47  ;;  %v3794_v32 = vcombine.high %v184_v23, %v188_v26  ;;  %v260_v14 = vld [vmem:[#allocation7 + $0x3e8] sm:$0xff]  ;;  %v4337_v15 = vld [vmem:[#allocation8 + $0x104] ss:$16 sps:$4 sm:$0xff]  }
  0x94   :  { %962 = vmatpush1.bf16.msra.mxu1 %v3807_v52  ;;  %v3746_v52 = vcombine.high %v136_v38, %v140_v39 }
  0x95   :  { %963 = vmatprep.subr.bf16.mxu1 %v3816_v54  ;;  %1048 = vmatpush1.bf16.msra.mxu0 %v3811_v36  ;;  %v3745_v54 = vcombine.low %v136_v38, %v140_v39  ;;  %v204_v36 = vld [vmem:[#allocation7 + $0x228] sm:$0xff]  ;;  %v4293_v39 = vld [vmem:[#allocation8 + $0x20] ss:$16 sps:$4 sm:$0xff]  }
  0x96   :  { %1049 = vmatprep.subr.bf16.mxu0 %v3820_v40 }
  0x98   :  { %964 = vmatpush1.bf16.msra.mxu1 %v3815_v60  ;;  %v237_v60 = vld [vmem:[#allocation7 + $0x330] sm:$0xff] }
  0x99   :  { %965 = vmatprep.subr.bf16.mxu1 %v3824_v62  ;;  %1050 = vmatpush1.bf16.msra.mxu0 %v3819_v44  ;;  %v3753_v62 = vcombine.low %v144_v46, %v148_v47  ;;  %v3844_v1 = vcombine.high %v233_v57, %v237_v60  ;;  %v3843_v5 = vcombine.low %v233_v57, %v237_v60  ;;  %v216_v47 = vld [vmem:[#allocation7 + $0x288] sm:$0xff] }
  0x9a   :  { %1051 = vmatprep.subr.bf16.mxu0 %v3828_v48  ;;  %v220_v48 = vld [vmem:[#allocation7 + $0x2a8] sm:$0xff] }
  0x9b   :  { %v3826_v57 = vcombine.high %v216_v47, %v220_v48  ;;  %v232_v60 = vld [vmem:[#allocation7 + $0x308] sm:$0xff] }
  0x9c   :  { %966 = vmatpush1.bf16.msra.mxu1 %v3823_v4  ;;  %v245_v4 = vld [vmem:[#allocation7 + $0x370] sm:$0xff] }
  0x9d   :  { %967 = vmatprep.subr.bf16.mxu1 %v3832_v9  ;;  %1052 = vmatpush1.bf16.msra.mxu0 %v3827_v53  ;;  %v3852_v9 = vcombine.high %v241_v2, %v245_v4  ;;  %v3817_v53 = vcombine.low %v208_v41, %v212_v42  ;;  %v4783_v41 = vld [vmem:[#allocation5] sm:$0xff]  }
  0x9e   :  { %1053 = vmatprep.subr.bf16.mxu0 %v3836_v59  ;;  %v3825_v59 = vcombine.low %v216_v47, %v220_v48  ;;  %v174_v47 = vld [vmem:[#allocation7 + $0x138] sm:$0xff]  ;;  %v4365_v48 = vld [vmem:[#allocation8 + $0x1a0] ss:$16 sps:$4 sm:$0xff]  }
  0xa0   :  { %968 = vmatpush1.bf16.msra.mxu1 %v3831_v12  ;;  %v253_v12 = vld [vmem:[#allocation7 + $0x3b0] sm:$0xff] }
  0xa1   :  { %969 = vmatprep.subr.bf16.mxu1 %v3840_v19  ;;  %1054 = vmatpush1.bf16.msra.mxu0 %v3835_v61  ;;  %v3860_v16 = vcombine.high %v249_v10, %v253_v12  ;;  %v3778_v19 = vcombine.high %v168_v7, %v172_v8  ;;  %v236_v61 = vld [vmem:[#allocation7 + $0x328] sm:$0xff] }
  0xa2   :  { %1055 = vmatprep.subr.bf16.mxu0 %v3844_v1  ;;  %v3841_v7 = vcombine.low %v232_v60, %v236_v61  ;;  %v248_v8 = vld [vmem:[#allocation7 + $0x388] sm:$0xff] }
  0xa4   :  { %970 = vmatpush1.bf16.msra.mxu1 %v3839_v21  ;;  %v3859_v21 = vcombine.low %v249_v10, %v253_v12  ;;  %v4331_v10 = vld [vmem:[#allocation8 + $0xe4] ss:$16 sps:$4 sm:$0xff]   ;;  %v4329_v12 = vld [vmem:[#allocation8 + $0xe0] ss:$16 sps:$4 sm:$0xff]  }
  0xa5   :  { %971 = vmatprep.subr.bf16.mxu1 %v3848_v27  ;;  %1056 = vmatpush1.bf16.msra.mxu0 %v3843_v5  ;;  %v3867_v27 = vcombine.low %v257_v18, %v261_v20  ;;  %v3842_v5 = vcombine.high %v232_v60, %v236_v61  ;;  %v4335_v18 = vld [vmem:[#allocation8 + $0x100] ss:$16 sps:$4 sm:$0xff]   ;;  %v138_v20 = vld [vmem:[#allocation7 + $0x18] sm:$0xff] }
  0xa6   :  { %1057 = vmatprep.subr.bf16.mxu0 %v3852_v9  ;;  %v252_v9 = vld [vmem:[#allocation7 + $0x3a8] sm:$0xff]  ;;  %v198_v61 = vld [vmem:[#allocation7 + $0x1f8] sm:$0xff] }
  0xa8   :  { %972 = vmatpush1.bf16.msra.mxu1 %v3847_v29  ;;  %v192_v29 = vld [vmem:[#allocation7 + $0x1c8] sm:$0xff] }
  0xa9   :  { %973 = vmatprep.subr.bf16.mxu1 %v3856_v35  ;;  %v200_v35 = vld [vmem:[#allocation7 + $0x208] sm:$0xff]  ;;  %v3802_v38 = vcombine.high %v192_v29, %v196_v30  ;;  %v3801_v40 = vcombine.low %v192_v29, %v196_v30  ;;  %v4347_v30 = vld [vmem:[#allocation8 + $0x140] ss:$16 sps:$4 sm:$0xff]  }
  0xaa   :  { %v3810_v44 = vcombine.high %v200_v35, %v204_v36  ;;  %v3809_v46 = vcombine.low %v200_v35, %v204_v36  ;;  %v4353_v36 = vld [vmem:[#allocation8 + $0x160] ss:$16 sps:$4 sm:$0xff]  }
  0xac   :  { %974 = vmatpush1.bf16.msra.mxu1 %v3855_v37  ;;  %v4295_v37 = vld [vmem:[#allocation8 + $0x24] ss:$16 sps:$4 sm:$0xff]  }
  0xad   :  { %975 = vmatprep.subr.bf16.mxu1 %v3864_v43  ;;  %v4301_v43 = vld [vmem:[#allocation8 + $0x44] ss:$16 sps:$4 sm:$0xff]  }
  0xb0   :  { %976 = vmatpush1.bf16.msra.mxu1 %v3863_v45  ;;  %v4299_v45 = vld [vmem:[#allocation8 + $0x40] ss:$16 sps:$4 sm:$0xff]  }
  0xb1   :  { %988 = vmatprep.subr.bf16.mxu1 %v3746_v52  ;;  %v4305_v52 = vld [vmem:[#allocation8 + $0x60] ss:$16 sps:$4 sm:$0xff]  }
  0xb3   :  { %978 = vmatmul.mubr.bf16.vlgmr.msra.gmra.mrb[0].mxu1 %v5121_v51 }
  0xb4   :  { %989 = vmatpush1.bf16.msra.mxu1 %v3745_v54  ;;  %1020 = vmatprep.mubr.bf16.mxu1 %v5117_v17  ;;  %v3851_v17 = vcombine.low %v241_v2, %v245_v4  ;;  %v224_v54 = vld [vmem:[#allocation7 + $0x2c8] sm:$0xff]  ;;  %v4325_v4 = vld [vmem:[#allocation8 + $0xc4] ss:$16 sps:$4 sm:$0xff]  }
  0xb5   :  { %990 = vmatprep.subr.bf16.mxu1 %v3754_v58  ;;  %v4311_v58 = vld [vmem:[#allocation8 + $0x80] ss:$16 sps:$4 sm:$0xff]   ;;  %v3834_v63 = vcombine.high %v224_v54, %v228_v55  ;;  %v3833_v1 = vcombine.low %v224_v54, %v228_v55  ;;  %v240_v2 = vld [vmem:[#allocation7 + $0x348] sm:$0xff]  ;;  %v186_v55 = vld [vmem:[#allocation7 + $0x198] sm:$0xff] }
  0xb6   :  { %1058 = vmatpush1.bf16.msra.mxu0 %v3851_v17 }
  0xb7   :  { %1059 = vmatprep.subr.bf16.mxu0 %v3860_v16  ;;  %v3858_v16 = vcombine.high %v248_v8, %v252_v9 }
  0xb8   :  { %991 = vmatpush1.bf16.msra.mxu1 %v3753_v62  ;;  %v4319_v62 = vld [vmem:[#allocation8 + $0xa4] ss:$16 sps:$4 sm:$0xff]  }
  0xb9   :  { %992 = vmatprep.subr.bf16.mxu1 %v3762_v3  ;;  %v244_v3 = vld [vmem:[#allocation7 + $0x368] sm:$0xff] }
  0xba   :  { %1060 = vmatpush1.bf16.msra.mxu0 %v3859_v21  ;;  %v3849_v17 = vcombine.low %v240_v2, %v244_v3  ;;  %v142_v21 = vld [vmem:[#allocation7 + $0x38] sm:$0xff] }
  0xbb   :  { %1061 = vmatprep.subr.bf16.mxu0 %v3868_v24  ;;  %v4341_v24 = vld [vmem:[#allocation8 + $0x120] ss:$16 sps:$4 sm:$0xff]   ;;  %v3750_v29 = vcombine.high %v138_v20, %v142_v21 }
  0xbc   :  { %993 = vmatpush1.bf16.msra.mxu1 %v3761_v6  ;;  %v4323_v6 = vld [vmem:[#allocation8 + $0xc0] ss:$16 sps:$4 sm:$0xff]  }
  0xbd   :  { %994 = vmatprep.subr.bf16.mxu1 %v3770_v11  ;;  %v3850_v11 = vcombine.high %v240_v2, %v244_v3  ;;  %v206_v3 = vld [vmem:[#allocation7 + $0x238] sm:$0xff] }
  0xbe   :  { %1062 = vmatpush1.bf16.msra.mxu0 %v3867_v27  ;;  %v146_v27 = vld [vmem:[#allocation7 + $0x58] sm:$0xff] }
  0xbf   :  { %2699 = vmatprep.subr.bf16.mxu0 %v4289_v31  ;;  %v4355_v31 = vld [vmem:[#allocation8 + $0x164] ss:$16 sps:$4 sm:$0xff]  }
  0xc0   :  { %995 = vmatpush1.bf16.msra.mxu1 %v3769_v13  ;;  %v256_v13 = vld [vmem:[#allocation7 + $0x3c8] sm:$0xff] }
  0xc1   :  { %996 = vmatprep.subr.bf16.mxu1 %v3778_v19  ;;  %1064 = vmatmul.mubr.bf16.vlgmr.msra.gmra.mrb[0].mxu0 %v5121_v51  ;;  %v3857_v19 = vcombine.low %v248_v8, %v252_v9  ;;  %v3866_v23 = vcombine.high %v256_v13, %v260_v14  ;;  %v3865_v26 = vcombine.low %v256_v13, %v260_v14  ;;  %v214_v9 = vld [vmem:[#allocation7 + $0x278] sm:$0xff] }
  0xc2   :  { %2700 = vmatpush1.bf16.msra.mxu0 %v4287_v33  ;;  %v154_v33 = vld [vmem:[#allocation7 + $0x98] sm:$0xff] }
  0xc3   :  { %2701 = vmatprep.subr.bf16.mxu0 %v4295_v37  ;;  %v4361_v37 = vld [vmem:[#allocation8 + $0x184] ss:$16 sps:$4 sm:$0xff]   ;;  %v222_v13 = vld [vmem:[#allocation7 + $0x2b8] sm:$0xff] }
  0xc4   :  { %997 = vmatpush1.bf16.msra.mxu1 %v3777_v22  ;;  %v4343_v22 = vld [vmem:[#allocation8 + $0x124] ss:$16 sps:$4 sm:$0xff]  }
  0xc5   :  { %998 = vmatprep.subr.bf16.mxu1 %v3786_v25  ;;  %v4349_v25 = vld [vmem:[#allocation8 + $0x144] ss:$16 sps:$4 sm:$0xff]  }
  0xc6   :  { %2702 = vmatpush1.bf16.msra.mxu0 %v4293_v39  ;;  %v162_v39 = vld [vmem:[#allocation7 + $0xd8] sm:$0xff] }
  0xc7   :  { %2703 = vmatprep.subr.bf16.mxu0 %v4301_v43  ;;  %v4359_v43 = vld [vmem:[#allocation8 + $0x180] ss:$16 sps:$4 sm:$0xff]  }
  0xc8   :  { %999 = vmatpush1.bf16.msra.mxu1 %v3785_v28  ;;  %v150_v28 = vld [vmem:[#allocation7 + $0x78] sm:$0xff] }
  0xc9   :  { %1000 = vmatprep.subr.bf16.mxu1 %v3794_v32  ;;  %v3749_v32 = vcombine.low %v138_v20, %v142_v21  ;;  %v3758_v35 = vcombine.high %v146_v27, %v150_v28  ;;  %v234_v21 = vld [vmem:[#allocation7 + $0x318] sm:$0xff] }
  0xca   :  { %2704 = vmatpush1.bf16.msra.mxu0 %v4299_v45 }
  0xcb   :  { %2705 = vmatprep.subr.bf16.mxu0 %v4307_v49 }
  0xcc   :  { %1001 = vmatpush1.bf16.msra.mxu1 %v3793_v34  ;;  %v158_v34 = vld [vmem:[#allocation7 + $0xb8] sm:$0xff] }
  0xcd   :  { %1002 = vmatprep.subr.bf16.mxu1 %v3802_v38  ;;  %v3757_v38 = vcombine.low %v146_v27, %v150_v28  ;;  %v3766_v42 = vcombine.high %v154_v33, %v158_v34  ;;  %v3765_v45 = vcombine.low %v154_v33, %v158_v34  ;;  %v258_v33 = vld [vmem:[#allocation7 + $0x3d8] sm:$0xff] }
  0xce   :  { %2706 = vmatpush1.bf16.msra.mxu0 %v4305_v52  ;;  %v182_v52 = vld [vmem:[#allocation7 + $0x178] sm:$0xff] }
  0xcf   :  { %2707 = vmatprep.subr.bf16.mxu0 %v4313_v56  ;;  %v190_v56 = vld [vmem:[#allocation7 + $0x1b8] sm:$0xff] }
  0xd0   :  { %1003 = vmatpush1.bf16.msra.mxu1 %v3801_v40  ;;  %v166_v40 = vld [vmem:[#allocation7 + $0xf8] sm:$0xff]  ;;  %v3798_v60 = vcombine.high %v186_v55, %v190_v56 }
  0xd1   :  { %1004 = vmatprep.subr.bf16.mxu1 %v3810_v44  ;;  %v4367_v44 = vld [vmem:[#allocation8 + $0x1a4] ss:$16 sps:$4 sm:$0xff]   ;;  %v3773_v49 = vcombine.low %v162_v39, %v166_v40  ;;  %v262_v34 = vld [vmem:[#allocation7 + $0x3f8] sm:$0xff] }
  0xd2   :  { %2708 = vmatpush1.bf16.msra.mxu0 %v4311_v58 }
  0xd3   :  { %2709 = vmatprep.subr.bf16.mxu0 %v4319_v62  ;;  %v4373_v62 = vld [vmem:[#allocation8 + $0x1c4] ss:$16 sps:$4 sm:$0xff]  }
  0xd4   :  { %1005 = vmatpush1.bf16.msra.mxu1 %v3809_v46  ;;  %v170_v46 = vld [vmem:[#allocation7 + $0x118] sm:$0xff] }
  0xd5   :  { %1006 = vmatprep.subr.bf16.mxu1 %v3818_v50  ;;  %v178_v50 = vld [vmem:[#allocation7 + $0x158] sm:$0xff]  ;;  %v3781_v54 = vcombine.low %v170_v46, %v174_v47 }
  0xd6   :  { %2710 = vmatpush1.bf16.msra.mxu0 %v4317_v0  ;;  %v3789_v58 = vcombine.low %v178_v50, %v182_v52  ;;  %v3797_v0 = vcombine.low %v186_v55, %v190_v56  ;;  %v4340_v55 = vld [vmem:[#allocation8 + $0x10c] ss:$16 sps:$4 sm:$0xff]   ;;  %v4338_v56 = vld [vmem:[#allocation8 + $0x108] ss:$16 sps:$4 sm:$0xff]  }
  0xd7   :  { %2711 = vmatprep.subr.bf16.mxu0 %v4325_v4  ;;  %v4379_v4 = vld [vmem:[#allocation8 + $0x1e4] ss:$16 sps:$4 sm:$0xff]  }
  0xd8   :  { %1007 = vmatpush1.bf16.msra.mxu1 %v3817_v53  ;;  %v3782_v53 = vcombine.high %v170_v46, %v174_v47  ;;  %v4308_v46 = vld [vmem:[#allocation8 + $0x68] ss:$16 sps:$4 sm:$0xff]   ;;  %v4316_v47 = vld [vmem:[#allocation8 + $0x8c] ss:$16 sps:$4 sm:$0xff]  }
  0xd9   :  { %1008 = vmatprep.subr.bf16.mxu1 %v3826_v57  ;;  %v3790_v57 = vcombine.high %v178_v50, %v182_v52  ;;  %v4328_v50 = vld [vmem:[#allocation8 + $0xcc] ss:$16 sps:$4 sm:$0xff]   ;;  %v4326_v52 = vld [vmem:[#allocation8 + $0xc8] ss:$16 sps:$4 sm:$0xff]  }
  0xda   :  { %2712 = vmatpush1.bf16.msra.mxu0 %v4323_v6 }
  0xdb   :  { %2713 = vmatprep.subr.bf16.mxu0 %v4331_v10  ;;  %v4385_v10 = vld [vmem:[#allocation8 + $0x204] ss:$16 sps:$4 sm:$0xff]  }
  0xdc   :  { %1009 = vmatpush1.bf16.msra.mxu1 %v3825_v59  ;;  %v194_v59 = vld [vmem:[#allocation7 + $0x1d8] sm:$0xff] }
  0xdd   :  { %1010 = vmatprep.subr.bf16.mxu1 %v3834_v63  ;;  %v4371_v63 = vld [vmem:[#allocation8 + $0x1c0] ss:$16 sps:$4 sm:$0xff]   ;;  %v3806_v2 = vcombine.high %v194_v59, %v198_v61  ;;  %v3805_v6 = vcombine.low %v194_v59, %v198_v61  ;;  %v4352_v59 = vld [vmem:[#allocation8 + $0x14c] ss:$16 sps:$4 sm:$0xff]  }
  0xde   :  { %2714 = vmatpush1.bf16.msra.mxu0 %v4329_v12  ;;  %v4358_v61 = vld [vmem:[#allocation8 + $0x16c] ss:$16 sps:$4 sm:$0xff]  }
  0xdf   :  { %2715 = vmatprep.subr.bf16.mxu0 %v4337_v15 }
  0xe0   :  { %1011 = vmatpush1.bf16.msra.mxu1 %v3833_v1  ;;  %v202_v1 = vld [vmem:[#allocation7 + $0x218] sm:$0xff] }
  0xe1   :  { %1012 = vmatprep.subr.bf16.mxu1 %v3842_v5  ;;  %v4377_v5 = vld [vmem:[#allocation8 + $0x1e0] ss:$16 sps:$4 sm:$0xff]   ;;  %v3814_v8 = vcombine.high %v202_v1, %v206_v3 }
  0xe2   :  { %2716 = vmatpush1.bf16.msra.mxu0 %v4335_v18  ;;  %v230_v18 = vld [vmem:[#allocation7 + $0x2f8] sm:$0xff] }
  0xe3   :  { %2717 = vmatprep.subr.bf16.mxu0 %v4343_v22  ;;  %v238_v22 = vld [vmem:[#allocation7 + $0x338] sm:$0xff] }
  0xe4   :  { %1013 = vmatpush1.bf16.msra.mxu1 %v3841_v7  ;;  %v210_v7 = vld [vmem:[#allocation7 + $0x258] sm:$0xff]  ;;  %v3845_v27 = vcombine.low %v234_v21, %v238_v22 }
  0xe5   :  { %1014 = vmatprep.subr.bf16.mxu1 %v3850_v11  ;;  %v3813_v11 = vcombine.low %v202_v1, %v206_v3  ;;  %v3822_v12 = vcombine.high %v210_v7, %v214_v9  ;;  %v3821_v14 = vcombine.low %v210_v7, %v214_v9  ;;  %v4370_v1 = vld [vmem:[#allocation8 + $0x1ac] ss:$16 sps:$4 sm:$0xff]  }
  0xe6   :  { %2718 = vmatpush1.bf16.msra.mxu0 %v4341_v24  ;;  %v3846_v24 = vcombine.high %v234_v21, %v238_v22  ;;  %v4376_v3 = vld [vmem:[#allocation8 + $0x1cc] ss:$16 sps:$4 sm:$0xff]  }
  0xe7   :  { %2719 = vmatprep.subr.bf16.mxu0 %v4349_v25  ;;  %v242_v25 = vld [vmem:[#allocation7 + $0x358] sm:$0xff] }
  0xe8   :  { %1015 = vmatpush1.bf16.msra.mxu1 %v3849_v17  ;;  %v218_v17 = vld [vmem:[#allocation7 + $0x298] sm:$0xff] }
  0xe9   :  { %1016 = vmatprep.subr.bf16.mxu1 %v3858_v16  ;;  %v3830_v15 = vcombine.high %v218_v17, %v222_v13  ;;  %v226_v16 = vld [vmem:[#allocation7 + $0x2d8] sm:$0xff] }
  0xea   :  { %2720 = vmatpush1.bf16.msra.mxu0 %v4347_v30  ;;  %v3838_v20 = vcombine.high %v226_v16, %v230_v18  ;;  %v254_v30 = vld [vmem:[#allocation7 + $0x3b8] sm:$0xff] }
  0xeb   :  { %2721 = vmatprep.subr.bf16.mxu0 %v4355_v31  ;;  %v4388_v7 = vld [vmem:[#allocation8 + $0x20c] ss:$16 sps:$4 sm:$0xff]  }
  0xec   :  { %1017 = vmatpush1.bf16.msra.mxu1 %v3857_v19  ;;  %v3829_v19 = vcombine.low %v218_v17, %v222_v13 }
  0xed   :  { %1018 = vmatprep.subr.bf16.mxu1 %v3866_v23  ;;  %v3837_v23 = vcombine.low %v226_v16, %v230_v18 }
  0xee   :  { %2722 = vmatpush1.bf16.msra.mxu0 %v4353_v36  ;;  %v3870_v36 = vcombine.high %v258_v33, %v262_v34 }
  0xef   :  { %2723 = vmatprep.subr.bf16.mxu0 %v4361_v37  ;;  %v4292_v37 = vld [vmem:[#allocation8 + $0xc] ss:$16 sps:$4 sm:$0xff]  }
  0xf0   :  { %1019 = vmatpush1.bf16.msra.mxu1 %v3865_v26  ;;  %v246_v26 = vld [vmem:[#allocation7 + $0x378] sm:$0xff] }
  0xf1   :  { %1074 = vmatprep.subr.bf16.mxu1 %v3750_v29  ;;  %v3854_v28 = vcombine.high %v242_v25, %v246_v26  ;;  %v250_v29 = vld [vmem:[#allocation7 + $0x398] sm:$0xff]  ;;  %v3853_v31 = vcombine.low %v242_v25, %v246_v26 }
  0xf2   :  { %2724 = vmatpush1.bf16.msra.mxu0 %v4359_v43  ;;  %v4304_v43 = vld [vmem:[#allocation8 + $0x4c] ss:$16 sps:$4 sm:$0xff]  }
  0xf3   :  { %1021 = vmatmul.mubr.bf16.vlgmr.msra.gmra.mrb[4].mxu1 %v5121_v51  ;;  %v3774_v51 = vcombine.high %v162_v39, %v166_v40  ;;  %2725 = vmatprep.subr.bf16.mxu0 %v4367_v44  ;;  %v4290_v39 = vld [vmem:[#allocation8 + $0x8] ss:$16 sps:$4 sm:$0xff]   ;;  %v4298_v40 = vld [vmem:[#allocation8 + $0x2c] ss:$16 sps:$4 sm:$0xff]  }
  0xf4   :  { %1075 = vmatpush1.bf16.msra.mxu1 %v3749_v32  ;;  %1106 = vmatprep.mubr.bf16.mxu1 %v4783_v41  ;;  %v3862_v32 = vcombine.high %v250_v29, %v254_v30  ;;  %v4784_v41 = vld [vmem:[#allocation2] sm:$0xff]   ;;  %v4302_v44 = vld [vmem:[#allocation8 + $0x48] ss:$16 sps:$4 sm:$0xff]  }
  0xf5   :  { %1076 = vmatprep.subr.bf16.mxu1 %v3758_v35  ;;  %v3861_v35 = vcombine.low %v250_v29, %v254_v30  ;;  %v4383_v29 = vld [vmem:[#allocation8 + $0x200] ss:$16 sps:$4 sm:$0xff]   ;;  %v4386_v30 = vld [vmem:[#allocation8 + $0x208] ss:$16 sps:$4 sm:$0xff]  }
  0xf6   :  { %2726 = vmatpush1.bf16.msra.mxu0 %v4365_v48  ;;  %v4322_v48 = vld [vmem:[#allocation8 + $0xac] ss:$16 sps:$4 sm:$0xff]  }
  0xf7   :  { %2727 = vmatprep.subr.bf16.mxu0 %v4373_v62  ;;  %v4356_v62 = vld [vmem:[#allocation8 + $0x168] ss:$16 sps:$4 sm:$0xff]  }
  0xf8   :  { %1077 = vmatpush1.bf16.msra.mxu1 %v3757_v38  ;;  %v3869_v38 = vcombine.low %v258_v33, %v262_v34  ;;  %v4389_v33 = vld [vmem:[#allocation8 + $0x220] ss:$16 sps:$4 sm:$0xff]   ;;  %v4392_v34 = vld [vmem:[#allocation8 + $0x228] ss:$16 sps:$4 sm:$0xff]  }
  0xf9   :  { %1078 = vmatprep.subr.bf16.mxu1 %v3766_v42  ;;  %v4296_v42 = vld [vmem:[#allocation8 + $0x28] ss:$16 sps:$4 sm:$0xff]  }
  0xfa   :  { %2728 = vmatpush1.bf16.msra.mxu0 %v4371_v63  ;;  %v4364_v63 = vld [vmem:[#allocation8 + $0x18c] ss:$16 sps:$4 sm:$0xff]  }
  0xfb   :  { %2729 = vmatprep.subr.bf16.mxu0 %v4379_v4  ;;  %v4374_v4 = vld [vmem:[#allocation8 + $0x1c8] ss:$16 sps:$4 sm:$0xff]  }
  0xfc   :  { %1079 = vmatpush1.bf16.msra.mxu1 %v3765_v45  ;;  %v4310_v45 = vld [vmem:[#allocation8 + $0x6c] ss:$16 sps:$4 sm:$0xff]  }
  0xfd   :  { %1080 = vmatprep.subr.bf16.mxu1 %v3774_v51  ;;  %v4314_v51 = vld [vmem:[#allocation8 + $0x88] ss:$16 sps:$4 sm:$0xff]  }
  0xfe   :  { %2730 = vmatpush1.bf16.msra.mxu0 %v4377_v5  ;;  %v4382_v5 = vld [vmem:[#allocation8 + $0x1ec] ss:$16 sps:$4 sm:$0xff]  }
  0xff   :  { %2742 = vmatprep.subr.bf16.mxu0 %v4385_v10 }
 0x100   :  { %1081 = vmatpush1.bf16.msra.mxu1 %v3773_v49  ;;  %v4320_v49 = vld [vmem:[#allocation8 + $0xa8] ss:$16 sps:$4 sm:$0xff]  }
 0x101   :  { %1082 = vmatprep.subr.bf16.mxu1 %v3782_v53  ;;  %v4334_v53 = vld [vmem:[#allocation8 + $0xec] ss:$16 sps:$4 sm:$0xff]  }
 0x104   :  { %1083 = vmatpush1.bf16.msra.mxu1 %v3781_v54  ;;  %v4332_v54 = vld [vmem:[#allocation8 + $0xe8] ss:$16 sps:$4 sm:$0xff]  }
 0x105   :  { %1084 = vmatprep.subr.bf16.mxu1 %v3790_v57  ;;  %v4346_v57 = vld [vmem:[#allocation8 + $0x12c] ss:$16 sps:$4 sm:$0xff]  }
 0x108   :  { %1085 = vmatpush1.bf16.msra.mxu1 %v3789_v58  ;;  %v4344_v58 = vld [vmem:[#allocation8 + $0x128] ss:$16 sps:$4 sm:$0xff]  }
 0x109   :  { %1086 = vmatprep.subr.bf16.mxu1 %v3798_v60  ;;  %v4350_v60 = vld [vmem:[#allocation8 + $0x148] ss:$16 sps:$4 sm:$0xff]  }
 0x10c   :  { %1087 = vmatpush1.bf16.msra.mxu1 %v3797_v0  ;;  %v4362_v0 = vld [vmem:[#allocation8 + $0x188] ss:$16 sps:$4 sm:$0xff]  }
 0x10d   :  { %1088 = vmatprep.subr.bf16.mxu1 %v3806_v2  ;;  %v4368_v2 = vld [vmem:[#allocation8 + $0x1a8] ss:$16 sps:$4 sm:$0xff]  }
 0x110   :  { %1089 = vmatpush1.bf16.msra.mxu1 %v3805_v6  ;;  %v4380_v6 = vld [vmem:[#allocation8 + $0x1e8] ss:$16 sps:$4 sm:$0xff]  }
 0x111   :  { %1090 = vmatprep.subr.bf16.mxu1 %v3814_v8  ;;  %v265_v8 = vlaneseq }
 0x113   :  { %v5127_v9 = vshrl.u32 %v265_v8, 7  ;;  %v4422_v8 = vld [vmem:[#allocation8 + $0x2c8] ss:$16 sps:$4 sm:$0xff]  }
 0x114   :  { %1091 = vmatpush1.bf16.msra.mxu1 %v3813_v11  ;;  %v5135_v11 = vld [vmem:[%s5210_s3] sm:$0xff] }
 0x115   :  { %1092 = vmatprep.subr.bf16.mxu1 %v3822_v12  ;;  %v5130_v10 = vsub.s32 0, %v5127_v9  ;;  %v5138_v12 = vsub.s32 1, %v5127_v9 }
 0x117   :  { %v268_v17 = vrot.slane %v5135_v11, %v5130_v10  ;;  %v272_v13 = vrot.slane %v5135_v11, %v5138_v12 }
 0x118   :  { %1093 = vmatpush1.bf16.msra.mxu1 %v3821_v14 }
 0x119   :  { %1094 = vmatprep.subr.bf16.mxu1 %v3830_v15 }
 0x11c   :  { %1095 = vmatpush1.bf16.msra.mxu1 %v3829_v19 }
 0x11d   :  { %1096 = vmatprep.subr.bf16.mxu1 %v3838_v20 }
 0x120   :  { %1097 = vmatpush1.bf16.msra.mxu1 %v3837_v23 }
 0x121   :  { %1098 = vmatprep.subr.bf16.mxu1 %v3846_v24 }
 0x124   :  { %1099 = vmatpush1.bf16.msra.mxu1 %v3845_v27 }
 0x125   :  { %1100 = vmatprep.subr.bf16.mxu1 %v3854_v28 }
 0x128   :  { %1101 = vmatpush1.bf16.msra.mxu1 %v3853_v31  ;;  %v4391_v31 = vld [vmem:[#allocation8 + $0x224] ss:$16 sps:$4 sm:$0xff]  }
 0x129   :  { %1102 = vmatprep.subr.bf16.mxu1 %v3862_v32  ;;  %v4394_v32 = vld [vmem:[#allocation8 + $0x22c] ss:$16 sps:$4 sm:$0xff]  }
 0x12c   :  { %1103 = vmatpush1.bf16.msra.mxu1 %v3861_v35  ;;  %v4397_v35 = vld [vmem:[#allocation8 + $0x244] ss:$16 sps:$4 sm:$0xff]  }
 0x12d   :  { %1104 = vmatprep.subr.bf16.mxu1 %v3870_v36  ;;  %v4400_v36 = vld [vmem:[#allocation8 + $0x24c] ss:$16 sps:$4 sm:$0xff]  }
 0x130   :  { %1105 = vmatpush1.bf16.msra.mxu1 %v3869_v38  ;;  %v4398_v38 = vld [vmem:[#allocation8 + $0x248] ss:$16 sps:$4 sm:$0xff]  }
 0x131   :  { %2871 = vmatprep.subr.bf16.mxu1 %v4292_v37  ;;  %v4395_v37 = vld [vmem:[#allocation8 + $0x240] ss:$16 sps:$4 sm:$0xff]  }
 0x133   :  { %1107 = vmatmul.mubr.bf16.vlgmr.msra.gmra.mrb[8].mxu1 %v4784_v41  ;;  %v4406_v41 = vld [vmem:[#allocation8 + $0x26c] ss:$16 sps:$4 sm:$0xff]  }
 0x134   :  { %2872 = vmatpush1.bf16.msra.mxu1 %v4290_v39  ;;  %v283_v39 = vsub.s32 4, %v5127_v9 }
 0x135   :  { %2873 = vmatprep.subr.bf16.mxu1 %v4298_v40  ;;  %v4403_v40 = vld [vmem:[#allocation8 + $0x264] ss:$16 sps:$4 sm:$0xff]  }
 0x138   :  { %2874 = vmatpush1.bf16.msra.mxu1 %v4296_v42  ;;  %v287_v42 = vsub.s32 5, %v5127_v9 }
 0x139   :  { %2875 = vmatprep.subr.bf16.mxu1 %v4304_v43  ;;  %v4401_v43 = vld [vmem:[#allocation8 + $0x260] ss:$16 sps:$4 sm:$0xff]  }
 0x13c   :  { %2876 = vmatpush1.bf16.msra.mxu1 %v4302_v44  ;;  %v4404_v44 = vld [vmem:[#allocation8 + $0x268] ss:$16 sps:$4 sm:$0xff]  }
 0x13d   :  { %2877 = vmatprep.subr.bf16.mxu1 %v4310_v45  ;;  %v284_v45 = vrot.slane %v5135_v11, %v283_v39  ;;  %v275_v39 = vsub.s32 2, %v5127_v9 }
 0x140   :  { %2878 = vmatpush1.bf16.msra.mxu1 %v4308_v46  ;;  %v4409_v46 = vld [vmem:[#allocation8 + $0x284] ss:$16 sps:$4 sm:$0xff]  }
 0x141   :  { %2879 = vmatprep.subr.bf16.mxu1 %v4316_v47  ;;  %v4412_v47 = vld [vmem:[#allocation8 + $0x28c] ss:$16 sps:$4 sm:$0xff]  }
 0x144   :  { %2880 = vmatpush1.bf16.msra.mxu1 %v4314_v51  ;;  %v288_v51 = vrot.slane %v5135_v11, %v287_v42  ;;  %v4464_v42 = vld [vmem:[#allocation8 + $0x3a8] ss:$16 sps:$4 sm:$0xff]  }
 0x145   :  { %2881 = vmatprep.subr.bf16.mxu1 %v4322_v48 }
 0x148   :  { %2882 = vmatpush1.bf16.msra.mxu1 %v4320_v49  ;;  %v4407_v49 = vld [vmem:[#allocation8 + $0x280] ss:$16 sps:$4 sm:$0xff]  }
 0x149   :  { %2883 = vmatprep.subr.bf16.mxu1 %v4328_v50  ;;  %v4410_v50 = vld [vmem:[#allocation8 + $0x288] ss:$16 sps:$4 sm:$0xff]  }
 0x14c   :  { %2884 = vmatpush1.bf16.msra.mxu1 %v4326_v52 }
 0x14d   :  { %2885 = vmatprep.subr.bf16.mxu1 %v4334_v53 }
 0x150   :  { %2886 = vmatpush1.bf16.msra.mxu1 %v4332_v54  ;;  %v4415_v54 = vld [vmem:[#allocation8 + $0x2a4] ss:$16 sps:$4 sm:$0xff]  }
 0x151   :  { %2887 = vmatprep.subr.bf16.mxu1 %v4340_v55  ;;  %v4418_v55 = vld [vmem:[#allocation8 + $0x2ac] ss:$16 sps:$4 sm:$0xff]  }
 0x154   :  { %2888 = vmatpush1.bf16.msra.mxu1 %v4338_v56 }
 0x155   :  { %2889 = vmatprep.subr.bf16.mxu1 %v4346_v57 }
 0x158   :  { %2890 = vmatpush1.bf16.msra.mxu1 %v4344_v58 }
 0x159   :  { %2891 = vmatprep.subr.bf16.mxu1 %v4352_v59 }
 0x15c   :  { %2892 = vmatpush1.bf16.msra.mxu1 %v4350_v60 }
 0x15d   :  { %2893 = vmatprep.subr.bf16.mxu1 %v4358_v61 }
 0x160   :  { %2894 = vmatpush1.bf16.msra.mxu1 %v4356_v62 }
 0x161   :  { %2895 = vmatprep.subr.bf16.mxu1 %v4364_v63  ;;  %v4413_v63 = vld [vmem:[#allocation8 + $0x2a0] ss:$16 sps:$4 sm:$0xff]  }
 0x164   :  { %2896 = vmatpush1.bf16.msra.mxu1 %v4362_v0  ;;  %v4416_v0 = vld [vmem:[#allocation8 + $0x2a8] ss:$16 sps:$4 sm:$0xff]  }
 0x165   :  { %2897 = vmatprep.subr.bf16.mxu1 %v4370_v1 }
 0x168   :  { %2898 = vmatpush1.bf16.msra.mxu1 %v4368_v2  ;;  %v4421_v2 = vld [vmem:[#allocation8 + $0x2c4] ss:$16 sps:$4 sm:$0xff]  }
 0x169   :  { %2899 = vmatprep.subr.bf16.mxu1 %v4376_v3  ;;  %v4424_v3 = vld [vmem:[#allocation8 + $0x2cc] ss:$16 sps:$4 sm:$0xff]  }
 0x16c   :  { %2900 = vmatpush1.bf16.msra.mxu1 %v4374_v4 }
 0x16d   :  { %2901 = vmatprep.subr.bf16.mxu1 %v4382_v5 }
 0x170   :  { %2902 = vmatpush1.bf16.msra.mxu1 %v4380_v6 }
 0x171   :  { %2914 = vmatprep.subr.bf16.mxu1 %v4388_v7  ;;  %v4419_v7 = vld [vmem:[#allocation8 + $0x2c0] ss:$16 sps:$4 sm:$0xff]  }
 0x186   :  { %v979_v14 = vpop.f32.mrb[0].mxu1 }
 0x187   :  { %v980_v15 = vadd.f32 %v979_v14, %v268_v17  ;;  %v981_v16 = vpop.f32.mrb[1].mxu1  ;;  %v4425_v14 = vld [vmem:[#allocation8 + $0x2e0] ss:$16 sps:$4 sm:$0xff]  }
 0x188   :  { %v982_v18 = vadd.f32 %v981_v16, %v272_v13  ;;  %v983_v19 = vpop.f32.mrb[2].mxu1  ;;  %v4433_v16 = vld [vmem:[#allocation8 + $0x304] ss:$16 sps:$4 sm:$0xff]  }
 0x189   :  { %v984_v20 = vadd.f32 %v983_v19, %v268_v17  ;;  %v985_v21 = vpop.f32.mrb[3].mxu1  ;;  %v1117_v23 = vmax.f32 %v980_v15, 0.0  ;;  %v4427_v17 = vld [vmem:[#allocation8 + $0x2e4] ss:$16 sps:$4 sm:$0xff]   ;;  %v4428_v15 = vld [vmem:[#allocation8 + $0x2e8] ss:$16 sps:$4 sm:$0xff]  }
 0x18a   :  { %v986_v22 = vadd.f32 %v985_v21, %v272_v13  ;;  %v1118_v25 = vmax.f32 %v982_v18, 0.0  ;;  %v4430_v13 = vld [vmem:[#allocation8 + $0x2ec] ss:$16 sps:$4 sm:$0xff]   ;;  %v4431_v19 = vld [vmem:[#allocation8 + $0x300] ss:$16 sps:$4 sm:$0xff]  }
 0x18b   :  { %v1125_v24 = vmax.f32 %v984_v20, 0.0  ;;  %v4436_v18 = vld [vmem:[#allocation8 + $0x30c] ss:$16 sps:$4 sm:$0xff]   ;;  %v4434_v20 = vld [vmem:[#allocation8 + $0x308] ss:$16 sps:$4 sm:$0xff]  }
 0x18c   :  { %v1126_v26 = vmax.f32 %v986_v22, 0.0  ;;  %v4439_v21 = vld [vmem:[#allocation8 + $0x324] ss:$16 sps:$4 sm:$0xff]   ;;  %v4442_v22 = vld [vmem:[#allocation8 + $0x32c] ss:$16 sps:$4 sm:$0xff]  }
 0x18d   :  { %v1133_v27 = vpack.c.bf16 %v1125_v24, %v1117_v23  ;;  %v4437_v23 = vld [vmem:[#allocation8 + $0x320] ss:$16 sps:$4 sm:$0xff]   ;;  %v4440_v24 = vld [vmem:[#allocation8 + $0x328] ss:$16 sps:$4 sm:$0xff]  }
 0x18e   :  { %v1134_v28 = vpack.c.bf16 %v1126_v26, %v1118_v25  ;;  %v4445_v25 = vld [vmem:[#allocation8 + $0x344] ss:$16 sps:$4 sm:$0xff]   ;;  %v4448_v26 = vld [vmem:[#allocation8 + $0x34c] ss:$16 sps:$4 sm:$0xff]  }
 0x190   :  { %2731 = vmatprep.mubr.bf16.mxu0 %v1134_v28  ;;  %2903 = vmatprep.mubr.bf16.mxu1 %v1134_v28  ;;  %v4446_v28 = vld [vmem:[#allocation8 + $0x348] ss:$16 sps:$4 sm:$0xff]  }
 0x191   :  { %2732 = vmatmul.mubr.bf16.vlgmr.msra.gmra.mrb[4].mxu0 %v1133_v27  ;;  %2904 = vmatmul.mubr.bf16.vlgmr.msra.gmra.mrb[12].mxu1 %v1133_v27  ;;  %v4443_v27 = vld [vmem:[#allocation8 + $0x340] ss:$16 sps:$4 sm:$0xff]  }
 0x192   :  { %2743 = vmatpush1.bf16.msra.mxu0 %v4383_v29  ;;  %2915 = vmatpush1.bf16.msra.mxu1 %v4386_v30  ;;  %v4451_v29 = vld [vmem:[#allocation8 + $0x364] ss:$16 sps:$4 sm:$0xff]   ;;  %v4454_v30 = vld [vmem:[#allocation8 + $0x36c] ss:$16 sps:$4 sm:$0xff]  }
 0x193   :  { %2744 = vmatprep.subr.bf16.mxu0 %v4391_v31  ;;  %2916 = vmatprep.subr.bf16.mxu1 %v4394_v32  ;;  %v4449_v31 = vld [vmem:[#allocation8 + $0x360] ss:$16 sps:$4 sm:$0xff]   ;;  %v4452_v32 = vld [vmem:[#allocation8 + $0x368] ss:$16 sps:$4 sm:$0xff]  }
 0x194   :  { %v1065_v48 = vpop.f32.mrb[0].mxu0 }
 0x195   :  { %v1066_v52 = vadd.f32 %v1065_v48, %v284_v45  ;;  %v1067_v53 = vpop.f32.mrb[1].mxu0  ;;  %v4470_v48 = vld [vmem:[#allocation8 + $0x3c8] ss:$16 sps:$4 sm:$0xff]  }
 0x196   :  { %2745 = vmatpush1.bf16.msra.mxu0 %v4389_v33  ;;  %2917 = vmatpush1.bf16.msra.mxu1 %v4392_v34  ;;  %v1068_v56 = vadd.f32 %v1067_v53, %v288_v51  ;;  %v1069_v57 = vpop.f32.mrb[2].mxu0  ;;  %v4457_v33 = vld [vmem:[#allocation8 + $0x384] ss:$16 sps:$4 sm:$0xff]   ;;  %v4460_v34 = vld [vmem:[#allocation8 + $0x38c] ss:$16 sps:$4 sm:$0xff]  }
 0x197   :  { %2746 = vmatprep.subr.bf16.mxu0 %v4397_v35  ;;  %2918 = vmatprep.subr.bf16.mxu1 %v4400_v36  ;;  %v1121_v58 = vmax.f32 %v1066_v52, 0.0  ;;  %v1070_v59 = vadd.f32 %v1069_v57, %v284_v45  ;;  %v1071_v60 = vpop.f32.mrb[3].mxu0  ;;  %v4455_v35 = vld [vmem:[#allocation8 + $0x380] ss:$16 sps:$4 sm:$0xff]   ;;  %v4458_v36 = vld [vmem:[#allocation8 + $0x388] ss:$16 sps:$4 sm:$0xff]  }
 0x198   :  { %v1122_v61 = vmax.f32 %v1068_v56, 0.0  ;;  %v1072_v62 = vadd.f32 %v1071_v60, %v288_v51  ;;  %v4472_v45 = vld [vmem:[#allocation8 + $0x3cc] ss:$16 sps:$4 sm:$0xff]   ;;  %v4467_v51 = vld [vmem:[#allocation8 + $0x3c0] ss:$16 sps:$4 sm:$0xff]  }
 0x199   :  { %v1129_v1 = vmax.f32 %v1070_v59, 0.0  ;;  %v4475_v52 = vld [vmem:[#allocation8 + $0x3e4] ss:$16 sps:$4 sm:$0xff]   ;;  %v4478_v53 = vld [vmem:[#allocation8 + $0x3ec] ss:$16 sps:$4 sm:$0xff]  }
 0x19a   :  { %2747 = vmatpush1.bf16.msra.mxu0 %v4395_v37  ;;  %2919 = vmatpush1.bf16.msra.mxu1 %v4398_v38  ;;  %v1130_v4 = vmax.f32 %v1072_v62, 0.0  ;;  %v4463_v37 = vld [vmem:[#allocation8 + $0x3a4] ss:$16 sps:$4 sm:$0xff]   ;;  %v4466_v38 = vld [vmem:[#allocation8 + $0x3ac] ss:$16 sps:$4 sm:$0xff]  }
 0x19b   :  { %2748 = vmatprep.subr.bf16.mxu0 %v4403_v40  ;;  %2920 = vmatprep.subr.bf16.mxu1 %v4406_v41  ;;  %v5148_v5 = vpack.c.bf16 %v1129_v1, %v1121_v58  ;;  %v279_v40 = vsub.s32 3, %v5127_v9  ;;  %v4461_v41 = vld [vmem:[#allocation8 + $0x3a0] ss:$16 sps:$4 sm:$0xff]   ;;  %v4476_v60 = vld [vmem:[#allocation8 + $0x3e8] ss:$16 sps:$4 sm:$0xff]  }
 0x19c   :  { %v5150_v6 = vpack.c.bf16 %v1130_v4, %v1122_v61  ;;  %v4473_v59 = vld [vmem:[#allocation8 + $0x3e0] ss:$16 sps:$4 sm:$0xff]  }
 0x19e   :  { %2749 = vmatpush1.bf16.msra.mxu0 %v4401_v43  ;;  %2921 = vmatpush1.bf16.msra.mxu1 %v4404_v44  ;;  %v276_v43 = vrot.slane %v5135_v11, %v275_v39  ;;  %v4469_v44 = vld [vmem:[#allocation8 + $0x3c4] ss:$16 sps:$4 sm:$0xff]  }
 0x19f   :  { %2750 = vmatprep.subr.bf16.mxu0 %v4409_v46  ;;  %2922 = vmatprep.subr.bf16.mxu1 %v4412_v47  ;;  %v280_v46 = vrot.slane %v5135_v11, %v279_v40 }
 0x1a2   :  { %2751 = vmatpush1.bf16.msra.mxu0 %v4407_v49  ;;  %2923 = vmatpush1.bf16.msra.mxu1 %v4410_v50 }
 0x1a3   :  { %2752 = vmatprep.subr.bf16.mxu0 %v4415_v54  ;;  %2924 = vmatprep.subr.bf16.mxu1 %v4418_v55 }
 0x1a6   :  { %2753 = vmatpush1.bf16.msra.mxu0 %v4413_v63  ;;  %2925 = vmatpush1.bf16.msra.mxu1 %v4416_v0  ;;  %v4481_v63 = vld [vmem:[#allocation8 + $0x404] ss:$16 sps:$4 sm:$0xff]   ;;  %v4484_v0 = vld [vmem:[#allocation8 + $0x40c] ss:$16 sps:$4 sm:$0xff]  }
 0x1a7   :  { %2754 = vmatprep.subr.bf16.mxu0 %v4421_v2  ;;  %2926 = vmatprep.subr.bf16.mxu1 %v4424_v3 }
 0x1aa   :  { %2755 = vmatpush1.bf16.msra.mxu0 %v4419_v7  ;;  %2927 = vmatpush1.bf16.msra.mxu1 %v4422_v8  ;;  %v4479_v7 = vld [vmem:[#allocation8 + $0x400] ss:$16 sps:$4 sm:$0xff]   ;;  %v4482_v8 = vld [vmem:[#allocation8 + $0x408] ss:$16 sps:$4 sm:$0xff]  }
 0x1ab   :  { %2756 = vmatprep.subr.bf16.mxu0 %v4427_v17  ;;  %2928 = vmatprep.subr.bf16.mxu1 %v4430_v13  ;;  %v4487_v17 = vld [vmem:[#allocation8 + $0x424] ss:$16 sps:$4 sm:$0xff]   ;;  %v4490_v13 = vld [vmem:[#allocation8 + $0x42c] ss:$16 sps:$4 sm:$0xff]  }
 0x1ae   :  { %2757 = vmatpush1.bf16.msra.mxu0 %v4425_v14  ;;  %2929 = vmatpush1.bf16.msra.mxu1 %v4428_v15  ;;  %v4485_v14 = vld [vmem:[#allocation8 + $0x420] ss:$16 sps:$4 sm:$0xff]   ;;  %v4488_v15 = vld [vmem:[#allocation8 + $0x428] ss:$16 sps:$4 sm:$0xff]  }
 0x1af   :  { %2758 = vmatprep.subr.bf16.mxu0 %v4433_v16  ;;  %2930 = vmatprep.subr.bf16.mxu1 %v4436_v18  ;;  %v4493_v16 = vld [vmem:[#allocation8 + $0x444] ss:$16 sps:$4 sm:$0xff]   ;;  %v4496_v18 = vld [vmem:[#allocation8 + $0x44c] ss:$16 sps:$4 sm:$0xff]  }
 0x1b2   :  { %2759 = vmatpush1.bf16.msra.mxu0 %v4431_v19  ;;  %2931 = vmatpush1.bf16.msra.mxu1 %v4434_v20  ;;  %v4491_v19 = vld [vmem:[#allocation8 + $0x440] ss:$16 sps:$4 sm:$0xff]   ;;  %v4494_v20 = vld [vmem:[#allocation8 + $0x448] ss:$16 sps:$4 sm:$0xff]  }
 0x1b3   :  { %2760 = vmatprep.subr.bf16.mxu0 %v4439_v21  ;;  %2932 = vmatprep.subr.bf16.mxu1 %v4442_v22  ;;  %v4499_v21 = vld [vmem:[#allocation8 + $0x464] ss:$16 sps:$4 sm:$0xff]   ;;  %v4502_v22 = vld [vmem:[#allocation8 + $0x46c] ss:$16 sps:$4 sm:$0xff]  }
 0x1b6   :  { %2761 = vmatpush1.bf16.msra.mxu0 %v4437_v23  ;;  %2933 = vmatpush1.bf16.msra.mxu1 %v4440_v24  ;;  %v4497_v23 = vld [vmem:[#allocation8 + $0x460] ss:$16 sps:$4 sm:$0xff]   ;;  %v4500_v24 = vld [vmem:[#allocation8 + $0x468] ss:$16 sps:$4 sm:$0xff]  }
 0x1b7   :  { %2762 = vmatprep.subr.bf16.mxu0 %v4445_v25  ;;  %2934 = vmatprep.subr.bf16.mxu1 %v4448_v26  ;;  %v4505_v25 = vld [vmem:[#allocation8 + $0x484] ss:$16 sps:$4 sm:$0xff]   ;;  %v4508_v26 = vld [vmem:[#allocation8 + $0x48c] ss:$16 sps:$4 sm:$0xff]  }
 0x1ba   :  { %2763 = vmatpush1.bf16.msra.mxu0 %v4443_v27  ;;  %2935 = vmatpush1.bf16.msra.mxu1 %v4446_v28  ;;  %v4503_v27 = vld [vmem:[#allocation8 + $0x480] ss:$16 sps:$4 sm:$0xff]   ;;  %v4511_v28 = vld [vmem:[#allocation8 + $0x4a4] ss:$16 sps:$4 sm:$0xff]  }
 0x1bb   :  { %2764 = vmatprep.subr.bf16.mxu0 %v4451_v29  ;;  %2936 = vmatprep.subr.bf16.mxu1 %v4454_v30  ;;  %v4514_v29 = vld [vmem:[#allocation8 + $0x4ac] ss:$16 sps:$4 sm:$0xff]   ;;  %v4509_v30 = vld [vmem:[#allocation8 + $0x4a0] ss:$16 sps:$4 sm:$0xff]  }
 0x1be   :  { %2765 = vmatpush1.bf16.msra.mxu0 %v4449_v31  ;;  %2937 = vmatpush1.bf16.msra.mxu1 %v4452_v32  ;;  %v4512_v31 = vld [vmem:[#allocation8 + $0x4a8] ss:$16 sps:$4 sm:$0xff]   ;;  %v4517_v32 = vld [vmem:[#allocation8 + $0x4c4] ss:$16 sps:$4 sm:$0xff]  }
 0x1bf   :  { %2766 = vmatprep.subr.bf16.mxu0 %v4457_v33  ;;  %2938 = vmatprep.subr.bf16.mxu1 %v4460_v34  ;;  %v4520_v33 = vld [vmem:[#allocation8 + $0x4cc] ss:$16 sps:$4 sm:$0xff]   ;;  %v4515_v34 = vld [vmem:[#allocation8 + $0x4c0] ss:$16 sps:$4 sm:$0xff]  }
 0x1c2   :  { %2767 = vmatpush1.bf16.msra.mxu0 %v4455_v35  ;;  %2939 = vmatpush1.bf16.msra.mxu1 %v4458_v36  ;;  %v4518_v35 = vld [vmem:[#allocation8 + $0x4c8] ss:$16 sps:$4 sm:$0xff]   ;;  %v4523_v36 = vld [vmem:[#allocation8 + $0x4e4] ss:$16 sps:$4 sm:$0xff]  }
 0x1c3   :  { %2768 = vmatprep.subr.bf16.mxu0 %v4463_v37  ;;  %2940 = vmatprep.subr.bf16.mxu1 %v4466_v38  ;;  %v4526_v37 = vld [vmem:[#allocation8 + $0x4ec] ss:$16 sps:$4 sm:$0xff]   ;;  %v4521_v38 = vld [vmem:[#allocation8 + $0x4e0] ss:$16 sps:$4 sm:$0xff]  }
 0x1c6   :  { %2769 = vmatpush1.bf16.msra.mxu0 %v4461_v41  ;;  %2941 = vmatpush1.bf16.msra.mxu1 %v4464_v42  ;;  %v1022_v47 = vpop.f32.mrb[4].mxu1  ;;  %v4524_v41 = vld [vmem:[#allocation8 + $0x4e8] ss:$16 sps:$4 sm:$0xff]   ;;  %v4529_v42 = vld [vmem:[#allocation8 + $0x504] ss:$16 sps:$4 sm:$0xff]  }
 0x1c7   :  { %v1023_v49 = vadd.f32 %v1022_v47, %v276_v43  ;;  %v1024_v50 = vpop.f32.mrb[5].mxu1  ;;  %2770 = vmatprep.subr.bf16.mxu0 %v4469_v44  ;;  %2942 = vmatprep.subr.bf16.mxu1 %v4472_v45  ;;  %v4527_v44 = vld [vmem:[#allocation8 + $0x500] ss:$16 sps:$4 sm:$0xff]   ;;  %v4530_v45 = vld [vmem:[#allocation8 + $0x508] ss:$16 sps:$4 sm:$0xff]  }
 0x1c8   :  { %v1025_v54 = vadd.f32 %v1024_v50, %v280_v46  ;;  %v1026_v55 = vpop.f32.mrb[6].mxu1  ;;  %v4538_v47 = vld [vmem:[#allocation8 + $0x52c] ss:$16 sps:$4 sm:$0xff]  }
 0x1c9   :  { %v1027_v56 = vadd.f32 %v1026_v55, %v276_v43  ;;  %v1028_v57 = vpop.f32.mrb[7].mxu1  ;;  %v1119_v61 = vmax.f32 %v1023_v49, 0.0  ;;  %v4532_v43 = vld [vmem:[#allocation8 + $0x50c] ss:$16 sps:$4 sm:$0xff]   ;;  %v4541_v49 = vld [vmem:[#allocation8 + $0x544] ss:$16 sps:$4 sm:$0xff]  }
 0x1ca   :  { %v1029_v58 = vadd.f32 %v1028_v57, %v280_v46  ;;  %2771 = vmatpush1.bf16.msra.mxu0 %v4467_v51  ;;  %2943 = vmatpush1.bf16.msra.mxu1 %v4470_v48  ;;  %v1120_v1 = vmax.f32 %v1025_v54, 0.0  ;;  %v4535_v46 = vld [vmem:[#allocation8 + $0x524] ss:$16 sps:$4 sm:$0xff]   ;;  %v4533_v51 = vld [vmem:[#allocation8 + $0x520] ss:$16 sps:$4 sm:$0xff]  }
 0x1cb   :  { %v1127_v62 = vmax.f32 %v1027_v56, 0.0  ;;  %2772 = vmatprep.subr.bf16.mxu0 %v4475_v52  ;;  %2944 = vmatprep.subr.bf16.mxu1 %v4478_v53  ;;  %v4536_v48 = vld [vmem:[#allocation8 + $0x528] ss:$16 sps:$4 sm:$0xff]   ;;  %v4544_v50 = vld [vmem:[#allocation8 + $0x54c] ss:$16 sps:$4 sm:$0xff]  }
 0x1cc   :  { %v1128_v2 = vmax.f32 %v1029_v58, 0.0  ;;  %v4539_v52 = vld [vmem:[#allocation8 + $0x540] ss:$16 sps:$4 sm:$0xff]   ;;  %v4542_v53 = vld [vmem:[#allocation8 + $0x548] ss:$16 sps:$4 sm:$0xff]  }
 0x1cd   :  { %v1135_v3 = vpack.c.bf16 %v1127_v62, %v1119_v61  ;;  %v4547_v54 = vld [vmem:[#allocation8 + $0x564] ss:$16 sps:$4 sm:$0xff]   ;;  %v4550_v55 = vld [vmem:[#allocation8 + $0x56c] ss:$16 sps:$4 sm:$0xff]   ;;  %v4545_v56 = vld [vmem:[#allocation8 + $0x560] ss:$16 sps:$4 sm:$0xff]  }
 0x1ce   :  { %v1136_v4 = vpack.c.bf16 %v1128_v2, %v1120_v1  ;;  %2773 = vmatpush1.bf16.msra.mxu0 %v4473_v59  ;;  %2945 = vmatpush1.bf16.msra.mxu1 %v4476_v60  ;;  %v4548_v57 = vld [vmem:[#allocation8 + $0x568] ss:$16 sps:$4 sm:$0xff]   ;;  %v4553_v58 = vld [vmem:[#allocation8 + $0x584] ss:$16 sps:$4 sm:$0xff]   ;;  %v4556_v59 = vld [vmem:[#allocation8 + $0x58c] ss:$16 sps:$4 sm:$0xff]  }
 0x1cf   :  { %2785 = vmatprep.subr.bf16.mxu0 %v4481_v63  ;;  %2957 = vmatprep.subr.bf16.mxu1 %v4484_v0  ;;  %v4551_v60 = vld [vmem:[#allocation8 + $0x580] ss:$16 sps:$4 sm:$0xff]   ;;  %v4554_v61 = vld [vmem:[#allocation8 + $0x588] ss:$16 sps:$4 sm:$0xff]   ;;  %v4559_v62 = vld [vmem:[#allocation8 + $0x5a4] ss:$16 sps:$4 sm:$0xff]  }
 0x1d0   :  { %2774 = vmatprep.mubr.bf16.mxu0 %v1136_v4  ;;  %2946 = vmatprep.mubr.bf16.mxu1 %v1136_v4  ;;  %v4562_v63 = vld [vmem:[#allocation8 + $0x5ac] ss:$16 sps:$4 sm:$0xff]   ;;  %v291_v0 = vsub.s32 6, %v5127_v9  ;;  %v295_v1 = vsub.s32 7, %v5127_v9  ;;  %v4557_v2 = vld [vmem:[#allocation8 + $0x5a0] ss:$16 sps:$4 sm:$0xff]  }
 0x1d1   :  { %2775 = vmatmul.mubr.bf16.vlgmr.msra.gmra.mrb[4].mxu0 %v1135_v3  ;;  %2947 = vmatmul.mubr.bf16.vlgmr.msra.gmra.mrb[12].mxu1 %v1135_v3  ;;  %v4560_v3 = vld [vmem:[#allocation8 + $0x5a8] ss:$16 sps:$4 sm:$0xff]   ;;  %v4565_v4 = vld [vmem:[#allocation8 + $0x5c4] ss:$16 sps:$4 sm:$0xff]  }
 0x1d2   :  { %2786 = vmatpush1.bf16.msra.mxu0 %v4479_v7  ;;  %2958 = vmatpush1.bf16.msra.mxu1 %v4482_v8  ;;  %v4568_v7 = vld [vmem:[#allocation8 + $0x5cc] ss:$16 sps:$4 sm:$0xff]   ;;  %v292_v8 = vrot.slane %v5135_v11, %v291_v0  ;;  %v4620_v0 = vld [vmem:[#allocation8 + $0x6e8] ss:$16 sps:$4 sm:$0xff]  }
 0x1d3   :  { %2787 = vmatprep.subr.bf16.mxu0 %v4487_v17  ;;  %2959 = vmatprep.subr.bf16.mxu1 %v4490_v13  ;;  %v296_v17 = vrot.slane %v5135_v11, %v295_v1  ;;  %v4563_v13 = vld [vmem:[#allocation8 + $0x5c0] ss:$16 sps:$4 sm:$0xff]   ;;  %v4572_v11 = vld [vmem:[#allocation8 + $0x5e8] ss:$16 sps:$4 sm:$0xff]   ;;  %v4625_v1 = vld [vmem:[#allocation8 + $0x704] ss:$16 sps:$4 sm:$0xff]  }
 0x1d4   :  { %2817 = vmatprep.mubr.bf16.mxu0 %v5150_v6  ;;  %2989 = vmatprep.mubr.bf16.mxu1 %v5150_v6  ;;  %v4506_v6 = vld [vmem:[#allocation8 + $0x488] ss:$16 sps:$4 sm:$0xff]  }
 0x1d6   :  { %2788 = vmatpush1.bf16.msra.mxu0 %v4485_v14  ;;  %2960 = vmatpush1.bf16.msra.mxu1 %v4488_v15  ;;  %v4566_v14 = vld [vmem:[#allocation8 + $0x5c8] ss:$16 sps:$4 sm:$0xff]  }
 0x1d7   :  { %2789 = vmatprep.subr.bf16.mxu0 %v4493_v16  ;;  %2961 = vmatprep.subr.bf16.mxu1 %v4496_v18  ;;  %v4571_v16 = vld [vmem:[#allocation8 + $0x5e4] ss:$16 sps:$4 sm:$0xff]   ;;  %v4574_v18 = vld [vmem:[#allocation8 + $0x5ec] ss:$16 sps:$4 sm:$0xff]  }
 0x1da   :  { %2790 = vmatpush1.bf16.msra.mxu0 %v4491_v19  ;;  %2962 = vmatpush1.bf16.msra.mxu1 %v4494_v20 }
 0x1db   :  { %2791 = vmatprep.subr.bf16.mxu0 %v4499_v21  ;;  %2963 = vmatprep.subr.bf16.mxu1 %v4502_v22 }
 0x1de   :  { %2792 = vmatpush1.bf16.msra.mxu0 %v4497_v23  ;;  %2964 = vmatpush1.bf16.msra.mxu1 %v4500_v24 }
 0x1df   :  { %2793 = vmatprep.subr.bf16.mxu0 %v4505_v25  ;;  %2965 = vmatprep.subr.bf16.mxu1 %v4508_v26  ;;  %v4569_v26 = vld [vmem:[#allocation8 + $0x5e0] ss:$16 sps:$4 sm:$0xff]  }
 0x1e2   :  { %2794 = vmatpush1.bf16.msra.mxu0 %v4503_v27  ;;  %2966 = vmatpush1.bf16.msra.mxu1 %v4506_v6 }
 0x1e3   :  { %2795 = vmatprep.subr.bf16.mxu0 %v4511_v28  ;;  %2967 = vmatprep.subr.bf16.mxu1 %v4514_v29  ;;  %v4577_v28 = vld [vmem:[#allocation8 + $0x604] ss:$16 sps:$4 sm:$0xff]   ;;  %v4580_v29 = vld [vmem:[#allocation8 + $0x60c] ss:$16 sps:$4 sm:$0xff]  }
 0x1e6   :  { %2796 = vmatpush1.bf16.msra.mxu0 %v4509_v30  ;;  %2968 = vmatpush1.bf16.msra.mxu1 %v4512_v31 }
 0x1e7   :  { %2797 = vmatprep.subr.bf16.mxu0 %v4517_v32  ;;  %2969 = vmatprep.subr.bf16.mxu1 %v4520_v33  ;;  %v4575_v33 = vld [vmem:[#allocation8 + $0x600] ss:$16 sps:$4 sm:$0xff]  }
 0x1ea   :  { %2798 = vmatpush1.bf16.msra.mxu0 %v4515_v34  ;;  %2970 = vmatpush1.bf16.msra.mxu1 %v4518_v35  ;;  %v4578_v34 = vld [vmem:[#allocation8 + $0x608] ss:$16 sps:$4 sm:$0xff]  }
 0x1eb   :  { %2799 = vmatprep.subr.bf16.mxu0 %v4523_v36  ;;  %2971 = vmatprep.subr.bf16.mxu1 %v4526_v37  ;;  %v4583_v36 = vld [vmem:[#allocation8 + $0x624] ss:$16 sps:$4 sm:$0xff]   ;;  %v4586_v37 = vld [vmem:[#allocation8 + $0x62c] ss:$16 sps:$4 sm:$0xff]  }
 0x1ee   :  { %2800 = vmatpush1.bf16.msra.mxu0 %v4521_v38  ;;  %2972 = vmatpush1.bf16.msra.mxu1 %v4524_v41  ;;  %v4581_v38 = vld [vmem:[#allocation8 + $0x620] ss:$16 sps:$4 sm:$0xff]   ;;  %v4584_v41 = vld [vmem:[#allocation8 + $0x628] ss:$16 sps:$4 sm:$0xff]  }
 0x1ef   :  { %2801 = vmatprep.subr.bf16.mxu0 %v4529_v42  ;;  %2973 = vmatprep.subr.bf16.mxu1 %v4532_v43  ;;  %v4589_v42 = vld [vmem:[#allocation8 + $0x644] ss:$16 sps:$4 sm:$0xff]   ;;  %v4592_v43 = vld [vmem:[#allocation8 + $0x64c] ss:$16 sps:$4 sm:$0xff]  }
 0x1f2   :  { %2802 = vmatpush1.bf16.msra.mxu0 %v4527_v44  ;;  %2974 = vmatpush1.bf16.msra.mxu1 %v4530_v45  ;;  %v4587_v44 = vld [vmem:[#allocation8 + $0x640] ss:$16 sps:$4 sm:$0xff]   ;;  %v4590_v45 = vld [vmem:[#allocation8 + $0x648] ss:$16 sps:$4 sm:$0xff]  }
 0x1f3   :  { %2803 = vmatprep.subr.bf16.mxu0 %v4535_v46  ;;  %2975 = vmatprep.subr.bf16.mxu1 %v4538_v47  ;;  %v4595_v46 = vld [vmem:[#allocation8 + $0x664] ss:$16 sps:$4 sm:$0xff]   ;;  %v4598_v47 = vld [vmem:[#allocation8 + $0x66c] ss:$16 sps:$4 sm:$0xff]  }
 0x1f6   :  { %2804 = vmatpush1.bf16.msra.mxu0 %v4533_v51  ;;  %2976 = vmatpush1.bf16.msra.mxu1 %v4536_v48  ;;  %v4596_v51 = vld [vmem:[#allocation8 + $0x668] ss:$16 sps:$4 sm:$0xff]   ;;  %v4601_v48 = vld [vmem:[#allocation8 + $0x684] ss:$16 sps:$4 sm:$0xff]  }
 0x1f7   :  { %2805 = vmatprep.subr.bf16.mxu0 %v4541_v49  ;;  %2977 = vmatprep.subr.bf16.mxu1 %v4544_v50  ;;  %v4604_v49 = vld [vmem:[#allocation8 + $0x68c] ss:$16 sps:$4 sm:$0xff]   ;;  %v4599_v50 = vld [vmem:[#allocation8 + $0x680] ss:$16 sps:$4 sm:$0xff]  }
 0x1fa   :  { %2806 = vmatpush1.bf16.msra.mxu0 %v4539_v52  ;;  %2978 = vmatpush1.bf16.msra.mxu1 %v4542_v53  ;;  %v4602_v52 = vld [vmem:[#allocation8 + $0x688] ss:$16 sps:$4 sm:$0xff]   ;;  %v4607_v53 = vld [vmem:[#allocation8 + $0x6a4] ss:$16 sps:$4 sm:$0xff]  }
 0x1fb   :  { %2807 = vmatprep.subr.bf16.mxu0 %v4547_v54  ;;  %2979 = vmatprep.subr.bf16.mxu1 %v4550_v55  ;;  %v4610_v54 = vld [vmem:[#allocation8 + $0x6ac] ss:$16 sps:$4 sm:$0xff]   ;;  %v4605_v55 = vld [vmem:[#allocation8 + $0x6a0] ss:$16 sps:$4 sm:$0xff]  }
 0x1fe   :  { %2808 = vmatpush1.bf16.msra.mxu0 %v4545_v56  ;;  %2980 = vmatpush1.bf16.msra.mxu1 %v4548_v57  ;;  %v4608_v56 = vld [vmem:[#allocation8 + $0x6a8] ss:$16 sps:$4 sm:$0xff]   ;;  %v4613_v57 = vld [vmem:[#allocation8 + $0x6c4] ss:$16 sps:$4 sm:$0xff]  }
 0x1ff   :  { %2809 = vmatprep.subr.bf16.mxu0 %v4553_v58  ;;  %2981 = vmatprep.subr.bf16.mxu1 %v4556_v59  ;;  %v4616_v58 = vld [vmem:[#allocation8 + $0x6cc] ss:$16 sps:$4 sm:$0xff]   ;;  %v4611_v59 = vld [vmem:[#allocation8 + $0x6c0] ss:$16 sps:$4 sm:$0xff]  }
 0x202   :  { %2810 = vmatpush1.bf16.msra.mxu0 %v4551_v60  ;;  %2982 = vmatpush1.bf16.msra.mxu1 %v4554_v61  ;;  %v4614_v60 = vld [vmem:[#allocation8 + $0x6c8] ss:$16 sps:$4 sm:$0xff]   ;;  %v4619_v61 = vld [vmem:[#allocation8 + $0x6e4] ss:$16 sps:$4 sm:$0xff]  }
 0x203   :  { %2811 = vmatprep.subr.bf16.mxu0 %v4559_v62  ;;  %2983 = vmatprep.subr.bf16.mxu1 %v4562_v63  ;;  %v4622_v62 = vld [vmem:[#allocation8 + $0x6ec] ss:$16 sps:$4 sm:$0xff]   ;;  %v4617_v63 = vld [vmem:[#allocation8 + $0x6e0] ss:$16 sps:$4 sm:$0xff]  }
 0x206   :  { %2812 = vmatpush1.bf16.msra.mxu0 %v4557_v2  ;;  %2984 = vmatpush1.bf16.msra.mxu1 %v4560_v3  ;;  %v1108_v15 = vpop.f32.mrb[8].mxu1  ;;  %v4628_v2 = vld [vmem:[#allocation8 + $0x70c] ss:$16 sps:$4 sm:$0xff]   ;;  %v4623_v3 = vld [vmem:[#allocation8 + $0x700] ss:$16 sps:$4 sm:$0xff]  }
 0x207   :  { %2813 = vmatprep.subr.bf16.mxu0 %v4565_v4  ;;  %2985 = vmatprep.subr.bf16.mxu1 %v4568_v7  ;;  %v1109_v19 = vadd.f32 %v1108_v15, %v292_v8  ;;  %v1110_v20 = vpop.f32.mrb[9].mxu1  ;;  %v4626_v4 = vld [vmem:[#allocation8 + $0x708] ss:$16 sps:$4 sm:$0xff]   ;;  %v4631_v7 = vld [vmem:[#allocation8 + $0x724] ss:$16 sps:$4 sm:$0xff]  }
 0x208   :  { %v1111_v21 = vadd.f32 %v1110_v20, %v296_v17  ;;  %v1112_v22 = vpop.f32.mrb[10].mxu1  ;;  %v4640_v15 = vld [vmem:[#allocation8 + $0x74c] ss:$16 sps:$4 sm:$0xff]  }
 0x209   :  { %v1123_v23 = vmax.f32 %v1109_v19, 0.0  ;;  %v1113_v24 = vadd.f32 %v1112_v22, %v292_v8  ;;  %v1114_v25 = vpop.f32.mrb[11].mxu1  ;;  %v4634_v8 = vld [vmem:[#allocation8 + $0x72c] ss:$16 sps:$4 sm:$0xff]   ;;  %v4643_v19 = vld [vmem:[#allocation8 + $0x764] ss:$16 sps:$4 sm:$0xff]  }
 0x20a   :  { %2814 = vmatpush1.bf16.msra.mxu0 %v4563_v13  ;;  %2986 = vmatpush1.bf16.msra.mxu1 %v4566_v14  ;;  %v1124_v27 = vmax.f32 %v1111_v21, 0.0  ;;  %v1115_v6 = vadd.f32 %v1114_v25, %v296_v17  ;;  %v4629_v17 = vld [vmem:[#allocation8 + $0x720] ss:$16 sps:$4 sm:$0xff]   ;;  %v4632_v13 = vld [vmem:[#allocation8 + $0x728] ss:$16 sps:$4 sm:$0xff]  }
 0x20b   :  { %2815 = vmatprep.subr.bf16.mxu0 %v4571_v16  ;;  %2987 = vmatprep.subr.bf16.mxu1 %v4574_v18  ;;  %v1131_v30 = vmax.f32 %v1113_v24, 0.0  ;;  %v4637_v14 = vld [vmem:[#allocation8 + $0x744] ss:$16 sps:$4 sm:$0xff]   ;;  %v4635_v16 = vld [vmem:[#allocation8 + $0x740] ss:$16 sps:$4 sm:$0xff]  }
 0x20c   :  { %v1132_v31 = vmax.f32 %v1115_v6, 0.0  ;;  %v4638_v18 = vld [vmem:[#allocation8 + $0x748] ss:$16 sps:$4 sm:$0xff]   ;;  %v4646_v20 = vld [vmem:[#allocation8 + $0x76c] ss:$16 sps:$4 sm:$0xff]  }
 0x20d   :  { %v5166_v32 = vpack.c.bf16 %v1131_v30, %v1123_v23  ;;  %v4641_v21 = vld [vmem:[#allocation8 + $0x760] ss:$16 sps:$4 sm:$0xff]   ;;  %v4644_v22 = vld [vmem:[#allocation8 + $0x768] ss:$16 sps:$4 sm:$0xff]   ;;  %v4649_v23 = vld [vmem:[#allocation8 + $0x784] ss:$16 sps:$4 sm:$0xff]  }
 0x20e   :  { %2816 = vmatpush1.bf16.msra.mxu0 %v4569_v26  ;;  %2988 = vmatpush1.bf16.msra.mxu1 %v4572_v11  ;;  %v1140_v35 = vpack.c.bf16 %v1132_v31, %v1124_v27  ;;  %v4652_v24 = vld [vmem:[#allocation8 + $0x78c] ss:$16 sps:$4 sm:$0xff]   ;;  %v4647_v25 = vld [vmem:[#allocation8 + $0x780] ss:$16 sps:$4 sm:$0xff]   ;;  %v4650_v26 = vld [vmem:[#allocation8 + $0x788] ss:$16 sps:$4 sm:$0xff]  }
 0x20f   :  { %2828 = vmatprep.subr.bf16.mxu0 %v4577_v28  ;;  %3000 = vmatprep.subr.bf16.mxu1 %v4580_v29  ;;  %v4655_v11 = vld [vmem:[#allocation8 + $0x7a4] ss:$16 sps:$4 sm:$0xff]   ;;  %v4658_v27 = vld [vmem:[#allocation8 + $0x7ac] ss:$16 sps:$4 sm:$0xff]   ;;  %v4653_v6 = vld [vmem:[#allocation8 + $0x7a0] ss:$16 sps:$4 sm:$0xff]  }
 0x210   :  { %v4656_v28 = vld [vmem:[#allocation8 + $0x7a8] ss:$16 sps:$4 sm:$0xff]   ;;  %v4661_v29 = vld [vmem:[#allocation8 + $0x7c4] ss:$16 sps:$4 sm:$0xff]   ;;  %v4664_v30 = vld [vmem:[#allocation8 + $0x7cc] ss:$16 sps:$4 sm:$0xff]  }
 0x211   :  { %2818 = vmatmul.mubr.bf16.vlgmr.msra.gmra.mrb[4].mxu0 %v5148_v5  ;;  %2990 = vmatmul.mubr.bf16.vlgmr.msra.gmra.mrb[12].mxu1 %v5148_v5  ;;  %v4593_v5 = vld [vmem:[#allocation8 + $0x660] ss:$16 sps:$4 sm:$0xff]  }
 0x212   :  { %2829 = vmatpush1.bf16.msra.mxu0 %v4575_v33  ;;  %3001 = vmatpush1.bf16.msra.mxu1 %v4578_v34  ;;  %v4659_v31 = vld [vmem:[#allocation8 + $0x7c0] ss:$16 sps:$4 sm:$0xff]   ;;  %v4662_v33 = vld [vmem:[#allocation8 + $0x7c8] ss:$16 sps:$4 sm:$0xff]   ;;  %v4667_v34 = vld [vmem:[#allocation8 + $0x7e4] ss:$16 sps:$4 sm:$0xff]  }
 0x213   :  { %2830 = vmatprep.subr.bf16.mxu0 %v4583_v36  ;;  %3002 = vmatprep.subr.bf16.mxu1 %v4586_v37  ;;  %v4665_v36 = vld [vmem:[#allocation8 + $0x7e0] ss:$16 sps:$4 sm:$0xff]   ;;  %v4668_v37 = vld [vmem:[#allocation8 + $0x7e8] ss:$16 sps:$4 sm:$0xff]  }
 0x214   :  { %2860 = vmatprep.mubr.bf16.mxu0 %v1140_v35  ;;  %3032 = vmatprep.mubr.bf16.mxu1 %v1140_v35  ;;  %v4670_v35 = vld [vmem:[#allocation8 + $0x7ec] ss:$16 sps:$4 sm:$0xff]  }
 0x216   :  { %2831 = vmatpush1.bf16.msra.mxu0 %v4581_v38  ;;  %3003 = vmatpush1.bf16.msra.mxu1 %v4584_v41  ;;  %v4673_v38 = vld [vmem:[#allocation10 + $0x4] ss:$8 sps:$4 sm:$0xff]   ;;  %v4671_v41 = vld [vmem:[#allocation10] ss:$8 sps:$4 sm:$0xff]  }
 0x217   :  { %2832 = vmatprep.subr.bf16.mxu0 %v4589_v42  ;;  %3004 = vmatprep.subr.bf16.mxu1 %v4592_v43  ;;  %v4676_v42 = vld [vmem:[#allocation10 + $0x14] ss:$8 sps:$4 sm:$0xff]   ;;  %v4674_v43 = vld [vmem:[#allocation10 + $0x10] ss:$8 sps:$4 sm:$0xff]  }
 0x21a   :  { %2833 = vmatpush1.bf16.msra.mxu0 %v4587_v44  ;;  %3005 = vmatpush1.bf16.msra.mxu1 %v4590_v45  ;;  %v4679_v44 = vld [vmem:[#allocation10 + $0x24] ss:$8 sps:$4 sm:$0xff]   ;;  %v4677_v45 = vld [vmem:[#allocation10 + $0x20] ss:$8 sps:$4 sm:$0xff]  }
 0x21b   :  { %2834 = vmatprep.subr.bf16.mxu0 %v4595_v46  ;;  %3006 = vmatprep.subr.bf16.mxu1 %v4598_v47  ;;  %v4682_v46 = vld [vmem:[#allocation10 + $0x34] ss:$8 sps:$4 sm:$0xff]   ;;  %v4680_v47 = vld [vmem:[#allocation10 + $0x30] ss:$8 sps:$4 sm:$0xff]  }
 0x21e   :  { %2835 = vmatpush1.bf16.msra.mxu0 %v4593_v5  ;;  %3007 = vmatpush1.bf16.msra.mxu1 %v4596_v51  ;;  %v4685_v5 = vld [vmem:[#allocation10 + $0x44] ss:$8 sps:$4 sm:$0xff]   ;;  %v4683_v51 = vld [vmem:[#allocation10 + $0x40] ss:$8 sps:$4 sm:$0xff]  }
 0x21f   :  { %2836 = vmatprep.subr.bf16.mxu0 %v4601_v48  ;;  %3008 = vmatprep.subr.bf16.mxu1 %v4604_v49  ;;  %v4688_v48 = vld [vmem:[#allocation10 + $0x54] ss:$8 sps:$4 sm:$0xff]   ;;  %v4686_v49 = vld [vmem:[#allocation10 + $0x50] ss:$8 sps:$4 sm:$0xff]  }
 0x222   :  { %2837 = vmatpush1.bf16.msra.mxu0 %v4599_v50  ;;  %3009 = vmatpush1.bf16.msra.mxu1 %v4602_v52  ;;  %v4689_v50 = vld [vmem:[#allocation10 + $0x60] ss:$8 sps:$4 sm:$0xff]   ;;  %v4694_v52 = vld [vmem:[#allocation10 + $0x74] ss:$8 sps:$4 sm:$0xff]  }
 0x223   :  { %2838 = vmatprep.subr.bf16.mxu0 %v4607_v53  ;;  %3010 = vmatprep.subr.bf16.mxu1 %v4610_v54  ;;  %v4692_v53 = vld [vmem:[#allocation10 + $0x70] ss:$8 sps:$4 sm:$0xff]   ;;  %v4697_v54 = vld [vmem:[#allocation10 + $0x84] ss:$8 sps:$4 sm:$0xff]  }
 0x226   :  { %2839 = vmatpush1.bf16.msra.mxu0 %v4605_v55  ;;  %3011 = vmatpush1.bf16.msra.mxu1 %v4608_v56  ;;  %v4695_v55 = vld [vmem:[#allocation10 + $0x80] ss:$8 sps:$4 sm:$0xff]   ;;  %v4700_v56 = vld [vmem:[#allocation10 + $0x94] ss:$8 sps:$4 sm:$0xff]  }
 0x227   :  { %2840 = vmatprep.subr.bf16.mxu0 %v4613_v57  ;;  %3012 = vmatprep.subr.bf16.mxu1 %v4616_v58  ;;  %v4698_v57 = vld [vmem:[#allocation10 + $0x90] ss:$8 sps:$4 sm:$0xff]   ;;  %v4703_v58 = vld [vmem:[#allocation10 + $0xa4] ss:$8 sps:$4 sm:$0xff]  }
 0x22a   :  { %2841 = vmatpush1.bf16.msra.mxu0 %v4611_v59  ;;  %3013 = vmatpush1.bf16.msra.mxu1 %v4614_v60  ;;  %v4701_v59 = vld [vmem:[#allocation10 + $0xa0] ss:$8 sps:$4 sm:$0xff]   ;;  %v4706_v60 = vld [vmem:[#allocation10 + $0xb4] ss:$8 sps:$4 sm:$0xff]  }
 0x22b   :  { %2842 = vmatprep.subr.bf16.mxu0 %v4619_v61  ;;  %3014 = vmatprep.subr.bf16.mxu1 %v4622_v62  ;;  %v4704_v61 = vld [vmem:[#allocation10 + $0xb0] ss:$8 sps:$4 sm:$0xff]   ;;  %v4709_v62 = vld [vmem:[#allocation10 + $0xc4] ss:$8 sps:$4 sm:$0xff]  }
 0x22e   :  { %2843 = vmatpush1.bf16.msra.mxu0 %v4617_v63  ;;  %3015 = vmatpush1.bf16.msra.mxu1 %v4620_v0  ;;  %v4707_v63 = vld [vmem:[#allocation10 + $0xc0] ss:$8 sps:$4 sm:$0xff]   ;;  %v4712_v0 = vld [vmem:[#allocation10 + $0xd4] ss:$8 sps:$4 sm:$0xff]  }
 0x22f   :  { %2844 = vmatprep.subr.bf16.mxu0 %v4625_v1  ;;  %3016 = vmatprep.subr.bf16.mxu1 %v4628_v2  ;;  %v4710_v1 = vld [vmem:[#allocation10 + $0xd0] ss:$8 sps:$4 sm:$0xff]   ;;  %v4715_v2 = vld [vmem:[#allocation10 + $0xe4] ss:$8 sps:$4 sm:$0xff]  }
 0x232   :  { %2845 = vmatpush1.bf16.msra.mxu0 %v4623_v3  ;;  %3017 = vmatpush1.bf16.msra.mxu1 %v4626_v4  ;;  %v4713_v3 = vld [vmem:[#allocation10 + $0xe0] ss:$8 sps:$4 sm:$0xff]   ;;  %v4718_v4 = vld [vmem:[#allocation10 + $0xf4] ss:$8 sps:$4 sm:$0xff]  }
 0x233   :  { %2846 = vmatprep.subr.bf16.mxu0 %v4631_v7  ;;  %3018 = vmatprep.subr.bf16.mxu1 %v4634_v8  ;;  %v4716_v7 = vld [vmem:[#allocation10 + $0xf0] ss:$8 sps:$4 sm:$0xff]   ;;  %v4721_v8 = vld [vmem:[#allocation10 + $0x104] ss:$8 sps:$4 sm:$0xff]  }
 0x236   :  { %2847 = vmatpush1.bf16.msra.mxu0 %v4629_v17  ;;  %3019 = vmatpush1.bf16.msra.mxu1 %v4632_v13  ;;  %v4767_v17 = vld [vmem:[#allocation11 + $0x40] sm:$0xff]  }
 0x237   :  { %2848 = vmatprep.subr.bf16.mxu0 %v4637_v14  ;;  %3020 = vmatprep.subr.bf16.mxu1 %v4640_v15  ;;  %v4768_v13 = vld [vmem:[#allocation11] sm:$0xff]   ;;  %v4769_v14 = vld [vmem:[#allocation11 + $0x48] sm:$0xff]  }
 0x238   :  { %v4770_v15 = vld [vmem:[#allocation11 + $0x8] sm:$0xff]  }
 0x23a   :  { %2849 = vmatpush1.bf16.msra.mxu0 %v4635_v16  ;;  %3021 = vmatpush1.bf16.msra.mxu1 %v4638_v18  ;;  %v4771_v16 = vld [vmem:[#allocation11 + $0x50] sm:$0xff]  }
 0x23b   :  { %2850 = vmatprep.subr.bf16.mxu0 %v4643_v19  ;;  %3022 = vmatprep.subr.bf16.mxu1 %v4646_v20  ;;  %v4772_v18 = vld [vmem:[#allocation11 + $0x10] sm:$0xff]   ;;  %v4773_v19 = vld [vmem:[#allocation11 + $0x58] sm:$0xff]  }
 0x23c   :  { %v4774_v20 = vld [vmem:[#allocation11 + $0x18] sm:$0xff]  }
 0x23e   :  { %2851 = vmatpush1.bf16.msra.mxu0 %v4641_v21  ;;  %3023 = vmatpush1.bf16.msra.mxu1 %v4644_v22  ;;  %v4775_v21 = vld [vmem:[#allocation11 + $0x60] sm:$0xff]  }
 0x23f   :  { %2852 = vmatprep.subr.bf16.mxu0 %v4649_v23  ;;  %3024 = vmatprep.subr.bf16.mxu1 %v4652_v24  ;;  %v4776_v22 = vld [vmem:[#allocation11 + $0x20] sm:$0xff]   ;;  %v4777_v23 = vld [vmem:[#allocation11 + $0x68] sm:$0xff]   ;;  %v1397_v24 = vld [vmem:[%s5212_s5] sm:$0xf] }
 0x242   :  { %2853 = vmatpush1.bf16.msra.mxu0 %v4647_v25  ;;  %3025 = vmatpush1.bf16.msra.mxu1 %v4650_v26  ;;  %v1402_v25 = vrot.slane %v1397_v24, %v5130_v10  ;;  %v1410_v26 = vrot.slane %v1397_v24, %v275_v39 }
 0x243   :  { %2854 = vmatprep.subr.bf16.mxu0 %v4655_v11  ;;  %3026 = vmatprep.subr.bf16.mxu1 %v4658_v27  ;;  %v1406_v11 = vrot.slane %v1397_v24, %v5138_v12  ;;  %v1414_v27 = vrot.slane %v1397_v24, %v279_v40  ;;  %v4766_v24 = vld [vmem:[#allocation10 + $0x1f4] ss:$8 sps:$4 sm:$0xff]  }
 0x246   :  { %2855 = vmatpush1.bf16.msra.mxu0 %v4653_v6  ;;  %3027 = vmatpush1.bf16.msra.mxu1 %v4656_v28 }
 0x247   :  { %2856 = vmatprep.subr.bf16.mxu0 %v4661_v29  ;;  %3028 = vmatprep.subr.bf16.mxu1 %v4664_v30 }
 0x24a   :  { %2857 = vmatpush1.bf16.msra.mxu0 %v4659_v31  ;;  %3029 = vmatpush1.bf16.msra.mxu1 %v4662_v33 }
 0x24b   :  { %2858 = vmatprep.subr.bf16.mxu0 %v4667_v34  ;;  %3030 = vmatprep.subr.bf16.mxu1 %v4670_v35 }
 0x24e   :  { %2859 = vmatpush1.bf16.msra.mxu0 %v4665_v36  ;;  %3031 = vmatpush1.bf16.msra.mxu1 %v4668_v37 }
 0x24f   :  { %3451 = vmatprep.subr.bf16.mxu0 %v4673_v38  ;;  %4208 = vmatprep.subr.bf16.mxu1 %v4767_v17  ;;  %v4746_v17 = vld [vmem:[#allocation10 + $0x190] ss:$8 sps:$4 sm:$0xff]  }
 0x251   :  { %2861 = vmatmul.mubr.bf16.vlgmr.msra.gmra.mrb[4].mxu0 %v5166_v32  ;;  %3033 = vmatmul.mubr.bf16.vlgmr.msra.gmra.mrb[12].mxu1 %v5166_v32  ;;  %v4691_v32 = vld [vmem:[#allocation10 + $0x64] ss:$8 sps:$4 sm:$0xff]  }
 0x252   :  { %3452 = vmatpush1.bf16.msra.mxu0 %v4671_v41  ;;  %4209 = vmatpush3.bf16.msra.mxu1 %v4768_v13  ;;  %v4751_v13 = vld [vmem:[#allocation10 + $0x1a4] ss:$8 sps:$4 sm:$0xff]  }
 0x253   :  { %3453 = vmatprep.subr.bf16.mxu0 %v4676_v42  ;;  %4210 = vmatprep.subr.bf16.mxu1 %v4769_v14  ;;  %v4749_v14 = vld [vmem:[#allocation10 + $0x1a0] ss:$8 sps:$4 sm:$0xff]  }
 0x256   :  { %3454 = vmatpush1.bf16.msra.mxu0 %v4674_v43  ;;  %4211 = vmatpush3.bf16.msra.mxu1 %v4770_v15  ;;  %v4754_v15 = vld [vmem:[#allocation10 + $0x1b4] ss:$8 sps:$4 sm:$0xff]  }
 0x257   :  { %3455 = vmatprep.subr.bf16.mxu0 %v4679_v44  ;;  %4212 = vmatprep.subr.bf16.mxu1 %v4771_v16  ;;  %v4752_v16 = vld [vmem:[#allocation10 + $0x1b0] ss:$8 sps:$4 sm:$0xff]  }
 0x25a   :  { %3456 = vmatpush1.bf16.msra.mxu0 %v4677_v45  ;;  %4213 = vmatpush3.bf16.msra.mxu1 %v4772_v18  ;;  %v4757_v18 = vld [vmem:[#allocation10 + $0x1c4] ss:$8 sps:$4 sm:$0xff]  }
 0x25b   :  { %3457 = vmatprep.subr.bf16.mxu0 %v4682_v46  ;;  %4214 = vmatprep.subr.bf16.mxu1 %v4773_v19  ;;  %v4755_v19 = vld [vmem:[#allocation10 + $0x1c0] ss:$8 sps:$4 sm:$0xff]  }
 0x25e   :  { %3458 = vmatpush1.bf16.msra.mxu0 %v4680_v47  ;;  %4215 = vmatpush3.bf16.msra.mxu1 %v4774_v20  ;;  %v4760_v20 = vld [vmem:[#allocation10 + $0x1d4] ss:$8 sps:$4 sm:$0xff]  }
 0x25f   :  { %3459 = vmatprep.subr.bf16.mxu0 %v4685_v5  ;;  %4216 = vmatprep.subr.bf16.mxu1 %v4775_v21  ;;  %v4758_v21 = vld [vmem:[#allocation10 + $0x1d0] ss:$8 sps:$4 sm:$0xff]  }
 0x262   :  { %3460 = vmatpush1.bf16.msra.mxu0 %v4683_v51  ;;  %4217 = vmatpush3.bf16.msra.mxu1 %v4776_v22  ;;  %v4763_v22 = vld [vmem:[#allocation10 + $0x1e4] ss:$8 sps:$4 sm:$0xff]  }
 0x263   :  { %3461 = vmatprep.subr.bf16.mxu0 %v4688_v48  ;;  %4218 = vmatprep.subr.bf16.mxu1 %v4777_v23  ;;  %v4761_v23 = vld [vmem:[#allocation10 + $0x1e0] ss:$8 sps:$4 sm:$0xff]  }
 0x266   :  { %3462 = vmatpush1.bf16.msra.mxu0 %v4686_v49 }
 0x267   :  { %3463 = vmatprep.subr.bf16.mxu0 %v4691_v32 }
 0x26a   :  { %3464 = vmatpush1.bf16.msra.mxu0 %v4689_v50 }
 0x26b   :  { %3465 = vmatprep.subr.bf16.mxu0 %v4694_v52 }
 0x26e   :  { %3466 = vmatpush1.bf16.msra.mxu0 %v4692_v53  ;;  %v4719_v53 = vld [vmem:[#allocation10 + $0x100] ss:$8 sps:$4 sm:$0xff]  }
 0x26f   :  { %3467 = vmatprep.subr.bf16.mxu0 %v4697_v54  ;;  %v4724_v54 = vld [vmem:[#allocation10 + $0x114] ss:$8 sps:$4 sm:$0xff]  }
 0x272   :  { %3468 = vmatpush1.bf16.msra.mxu0 %v4695_v55  ;;  %v4722_v55 = vld [vmem:[#allocation10 + $0x110] ss:$8 sps:$4 sm:$0xff]  }
 0x273   :  { %3469 = vmatprep.subr.bf16.mxu0 %v4700_v56  ;;  %v4727_v56 = vld [vmem:[#allocation10 + $0x124] ss:$8 sps:$4 sm:$0xff]  }
 0x276   :  { %3470 = vmatpush1.bf16.msra.mxu0 %v4698_v57  ;;  %v4725_v57 = vld [vmem:[#allocation10 + $0x120] ss:$8 sps:$4 sm:$0xff]  }
 0x277   :  { %3471 = vmatprep.subr.bf16.mxu0 %v4703_v58  ;;  %v4730_v58 = vld [vmem:[#allocation10 + $0x134] ss:$8 sps:$4 sm:$0xff]  }
 0x27a   :  { %3472 = vmatpush1.bf16.msra.mxu0 %v4701_v59  ;;  %v4728_v59 = vld [vmem:[#allocation10 + $0x130] ss:$8 sps:$4 sm:$0xff]  }
 0x27b   :  { %3473 = vmatprep.subr.bf16.mxu0 %v4706_v60  ;;  %v4733_v60 = vld [vmem:[#allocation10 + $0x144] ss:$8 sps:$4 sm:$0xff]  }
 0x27e   :  { %3474 = vmatpush1.bf16.msra.mxu0 %v4704_v61  ;;  %v4731_v61 = vld [vmem:[#allocation10 + $0x140] ss:$8 sps:$4 sm:$0xff]  }
 0x27f   :  { %3475 = vmatprep.subr.bf16.mxu0 %v4709_v62  ;;  %v4736_v62 = vld [vmem:[#allocation10 + $0x154] ss:$8 sps:$4 sm:$0xff]  }
 0x282   :  { %3476 = vmatpush1.bf16.msra.mxu0 %v4707_v63  ;;  %v4734_v63 = vld [vmem:[#allocation10 + $0x150] ss:$8 sps:$4 sm:$0xff]  }
 0x283   :  { %3477 = vmatprep.subr.bf16.mxu0 %v4712_v0  ;;  %v4739_v0 = vld [vmem:[#allocation10 + $0x164] ss:$8 sps:$4 sm:$0xff]  }
 0x286   :  { %3478 = vmatpush1.bf16.msra.mxu0 %v4710_v1  ;;  %v4737_v1 = vld [vmem:[#allocation10 + $0x160] ss:$8 sps:$4 sm:$0xff]  }
 0x287   :  { %3479 = vmatprep.subr.bf16.mxu0 %v4715_v2  ;;  %v4742_v2 = vld [vmem:[#allocation10 + $0x174] ss:$8 sps:$4 sm:$0xff]  }
 0x28a   :  { %3480 = vmatpush1.bf16.msra.mxu0 %v4713_v3  ;;  %v4740_v3 = vld [vmem:[#allocation10 + $0x170] ss:$8 sps:$4 sm:$0xff]  }
 0x28b   :  { %3481 = vmatprep.subr.bf16.mxu0 %v4718_v4  ;;  %v4745_v4 = vld [vmem:[#allocation10 + $0x184] ss:$8 sps:$4 sm:$0xff]  }
 0x28e   :  { %3482 = vmatpush1.bf16.msra.mxu0 %v4716_v7  ;;  %v4743_v7 = vld [vmem:[#allocation10 + $0x180] ss:$8 sps:$4 sm:$0xff]  }
 0x28f   :  { %3494 = vmatprep.subr.bf16.mxu0 %v4721_v8  ;;  %v4748_v8 = vld [vmem:[#allocation10 + $0x194] ss:$8 sps:$4 sm:$0xff]  }
 0x324   :  { %v2862_v6 = vpop.f32.mrb[4].mxu0  ;;  %v3034_v28 = vpop.f32.mrb[12].mxu1 }
 0x325   :  { %v4230_v29 = vadd.f32 %v2862_v6, %v1402_v25  ;;  %v4234_v30 = vadd.f32 %v3034_v28, %v1410_v26  ;;  %v2864_v31 = vpop.f32.mrb[5].mxu0  ;;  %v3036_v33 = vpop.f32.mrb[13].mxu1  ;;  %v4781_v6 = vld [vmem:[#allocation11 + $0x78] sm:$0xff]  }
 0x326   :  { %v4231_v34 = vadd.f32 %v2864_v31, %v1406_v11  ;;  %v4235_v35 = vadd.f32 %v3036_v33, %v1414_v27  ;;  %v2866_v36 = vpop.f32.mrb[6].mxu0  ;;  %v3038_v37 = vpop.f32.mrb[14].mxu1  ;;  %v4782_v28 = vld [vmem:[#allocation11 + $0x38] sm:$0xff]  }
 0x327   :  { %v4232_v38 = vadd.f32 %v2866_v36, %v1402_v25  ;;  %v4236_v41 = vadd.f32 %v3038_v37, %v1410_v26  ;;  %v2868_v42 = vpop.f32.mrb[7].mxu0  ;;  %v3040_v43 = vpop.f32.mrb[15].mxu1  ;;  %v3043_v45 = vmax.f32 %v4230_v29, 0.0  ;;  %v3045_v46 = vmax.f32 %v4234_v30, 0.0  ;;  %v4764_v25 = vld [vmem:[#allocation10 + $0x1f0] ss:$8 sps:$4 sm:$0xff]  }
 0x328   :  { %v4233_v39 = vadd.f32 %v2868_v42, %v1406_v11  ;;  %v4237_v44 = vadd.f32 %v3040_v43, %v1414_v27  ;;  %v3044_v47 = vmax.f32 %v4231_v34, 0.0  ;;  %v3046_v5 = vmax.f32 %v4235_v35, 0.0  ;;  %v4778_v26 = vld [vmem:[#allocation11 + $0x28] sm:$0xff]   ;;  %v4779_v11 = vld [vmem:[#allocation11 + $0x70] sm:$0xff]  }
 0x329   :  { %v3047_v9 = vmax.f32 %v4232_v38, 0.0  ;;  %v3049_v40 = vmax.f32 %v4236_v41, 0.0  ;;  %4219 = vmatpush3.bf16.msra.mxu1 %v4778_v26  ;;  %v4780_v27 = vld [vmem:[#allocation11 + $0x30] sm:$0xff]  }
 0x32a   :  { %v3048_v51 = vmax.f32 %v4233_v39, 0.0  ;;  %v3050_v48 = vmax.f32 %v4237_v44, 0.0  ;;  %4220 = vmatprep.subr.bf16.mxu1 %v4779_v11  ;;  %v3119_v29 = vld [vmem:[%s5214_s7] sm:$0x3] }
 0x32b   :  { %v3051_v49 = vpack.c.bf16 %v3047_v9, %v3043_v45  ;;  %v5181_v32 = vpack.c.bf16 %v3049_v40, %v3045_v46  ;;  %v3124_v30 = vrot.slane %v3119_v29, %v5130_v10  ;;  %v3128_v31 = vrot.slane %v3119_v29, %v5138_v12  ;;  %v4191_v10 = vld [vmem:[%s5216_s9] ss:$0 sm:$0xff] }
 0x32c   :  { %v3052_v50 = vpack.c.bf16 %v3048_v51, %v3044_v47  ;;  %v3054_v52 = vpack.c.bf16 %v3050_v48, %v3046_v5 }
 0x32d   :  { %4221 = vmatpush3.bf16.msra.mxu1 %v4780_v27 }
 0x32e   :  { %3483 = vmatprep.mubr.bf16.mxu0 %v3052_v50  ;;  %4222 = vmatprep.subr.bf16.mxu1 %v4781_v6 }
 0x32f   :  { %3484 = vmatmul.mubr.bf16.vlgmr.msra.gmra.mrb[8].mxu0 %v3051_v49 }
 0x330   :  { %3495 = vmatpush1.bf16.msra.mxu0 %v4719_v53  ;;  %3526 = vmatprep.mubr.bf16.mxu0 %v3054_v52 }
 0x331   :  { %3496 = vmatprep.subr.bf16.mxu0 %v4724_v54  ;;  %4223 = vmatpush3.bf16.msra.mxu1 %v4782_v28 }
 0x334   :  { %3497 = vmatpush1.bf16.msra.mxu0 %v4722_v55 }
 0x335   :  { %3498 = vmatprep.subr.bf16.mxu0 %v4727_v56 }
 0x338   :  { %3499 = vmatpush1.bf16.msra.mxu0 %v4725_v57 }
 0x339   :  { %3500 = vmatprep.subr.bf16.mxu0 %v4730_v58 }
 0x33c   :  { %3501 = vmatpush1.bf16.msra.mxu0 %v4728_v59 }
 0x33d   :  { %3502 = vmatprep.subr.bf16.mxu0 %v4733_v60 }
 0x340   :  { %3503 = vmatpush1.bf16.msra.mxu0 %v4731_v61 }
 0x341   :  { %3504 = vmatprep.subr.bf16.mxu0 %v4736_v62 }
 0x344   :  { %3505 = vmatpush1.bf16.msra.mxu0 %v4734_v63 }
 0x345   :  { %3506 = vmatprep.subr.bf16.mxu0 %v4739_v0 }
 0x348   :  { %3507 = vmatpush1.bf16.msra.mxu0 %v4737_v1 }
 0x349   :  { %3508 = vmatprep.subr.bf16.mxu0 %v4742_v2 }
 0x34c   :  { %3509 = vmatpush1.bf16.msra.mxu0 %v4740_v3 }
 0x34d   :  { %3510 = vmatprep.subr.bf16.mxu0 %v4745_v4 }
 0x350   :  { %3511 = vmatpush1.bf16.msra.mxu0 %v4743_v7 }
 0x351   :  { %3512 = vmatprep.subr.bf16.mxu0 %v4748_v8 }
 0x354   :  { %3513 = vmatpush1.bf16.msra.mxu0 %v4746_v17 }
 0x355   :  { %3514 = vmatprep.subr.bf16.mxu0 %v4751_v13 }
 0x358   :  { %3515 = vmatpush1.bf16.msra.mxu0 %v4749_v14 }
 0x359   :  { %3516 = vmatprep.subr.bf16.mxu0 %v4754_v15 }
 0x35c   :  { %3517 = vmatpush1.bf16.msra.mxu0 %v4752_v16 }
 0x35d   :  { %3518 = vmatprep.subr.bf16.mxu0 %v4757_v18 }
 0x360   :  { %3519 = vmatpush1.bf16.msra.mxu0 %v4755_v19 }
 0x361   :  { %3520 = vmatprep.subr.bf16.mxu0 %v4760_v20 }
 0x364   :  { %3521 = vmatpush1.bf16.msra.mxu0 %v4758_v21 }
 0x365   :  { %3522 = vmatprep.subr.bf16.mxu0 %v4763_v22 }
 0x368   :  { %3523 = vmatpush1.bf16.msra.mxu0 %v4761_v23 }
 0x369   :  { %3524 = vmatprep.subr.bf16.mxu0 %v4766_v24 }
 0x36c   :  { %3525 = vmatpush1.bf16.msra.mxu0 %v4764_v25 }
 0x36f   :  { %3527 = vmatmul.mubr.bf16.vlgmr.msra.gmra.mrb[8].mxu0 %v5181_v32 }
 0x442   :  { %v3528_v33 = vpop.f32.mrb[8].mxu0 }
 0x443   :  { %v4238_v34 = vadd.f32 %v3528_v33, %v3124_v30  ;;  %v3530_v35 = vpop.f32.mrb[9].mxu0 }
 0x444   :  { %v4239_v36 = vadd.f32 %v3530_v35, %v3128_v31  ;;  %v3532_v37 = vpop.f32.mrb[10].mxu0 }
 0x445   :  { %v4240_v38 = vadd.f32 %v3532_v37, %v3124_v30  ;;  %v3534_v41 = vpop.f32.mrb[11].mxu0  ;;  %v3537_v43 = vmax.f32 %v4238_v34, 0.0 }
 0x446   :  { %v4241_v42 = vadd.f32 %v3534_v41, %v3128_v31  ;;  %v3538_v44 = vmax.f32 %v4239_v36, 0.0 }
 0x447   :  { %v3539_v39 = vmax.f32 %v4240_v38, 0.0 }
 0x448   :  { %v3540_v45 = vmax.f32 %v4241_v42, 0.0 }
 0x449   :  { %v3541_v46 = vpack.c.bf16 %v3539_v39, %v3537_v43 }
 0x44a   :  { %v3542_v9 = vpack.c.bf16 %v3540_v45, %v3538_v44 }
 0x44c   :  { %3710 = vmatprep.mubr.bf16.mxu1 %v3542_v9 }
 0x44d   :  { %3711 = vmatmul.mubr.bf16.vlgmr.msra.gmra.mrb[16].mxu1 %v3541_v46 }
 0x520   :  { %v4224_v40 = vpop.f32.mrb[16].mxu1 }
 0x521   :  { %v4225_v12 = vpop.f32.mrb[17].mxu1 }
 0x522   :  { %v4226_v47 = vadd.f32 %v4225_v12, %v4224_v40  ;;  %v4227_v5 = vpop.f32.mrb[18].mxu1 }
 0x523   :  { %v4228_v51 = vpop.f32.mrb[19].mxu1 }
 0x524   :  { %v3713_v48 = vadd.f32 %v4226_v47, %v4191_v10  ;;  %v4229_v49 = vadd.f32 %v4228_v51, %v4227_v5 }
 0x526   :  { %3719 = vst [vmem:[#allocation13] sm:$0xff] %v3713_v48  ;;  %v3716_v32 = vadd.f32 %v4229_v49, %v4191_v10 }
 0x528   :  { %3720 = vst [vmem:[#allocation13 + $0x8] sm:$0xff] %v3716_v32 }
 0x529   :  { %4928 = shalt.err (!%p4925_p10)
}
 0x52a   :  { %s4929_s18 = scalar_lea.hbm %s5217_s10, 256 }
 0x52b   :  { %p4930_p11 = scmp.ne.s32.totalorder %s5217_s10, %s4929_s18  ;;  %p4933_p12 = scmp.lt.u32.totalorder %s4929_s18, %s5217_s10 }
 0x52d   :  { %p4935_p13 = pnand %p4933_p12, %p4930_p11 }
 0x52f   :  { %4938 = shalt.err (!%p4935_p13)
}
 0x530   :  { %3732 = dma.vmem_to_hbm [thread:$0]  %s3727_s16, 256, %s5217_s10, [#allocation4], %s4960_s2, %s4960_s2, %s4961_s24  }
 0x531   :  { %4947 = dma.done.wait [#allocation4], 256  }
 0x532   :  { %4948 = vsyncadd [#allocation4], 4294967040 }
 0x533   :  { %3736 = vsyncpa [#allocation3], 1 }
 0x534   :  { %3737 = vsyncpa [#allocation6], 1 }
 0x535   :  { %3738 = vsyncpa [#allocation9], 1 }
 0x536   :  { %3739 = vsyncpa [#allocation12], 1 }
 0x537   :  { %3740 = vsyncpa [#allocation4], 1 }

// kernel: tpu_custom_call.1
= control target key start
LH: loop header
LB: loop body
LE: loop exit
PB: predicated region body
PF: predicated region fallthrough
CT: control target
= control target key end

     0   :  { %15 = vsyncpa [#allocation3], 0  ;;  %s5207_s0 = inlined_call_operand.hbm [shape: bf16[16,128], index: 0, kind: input, shape index: {}]   ;;  %s5208_s1 = inlined_call_operand.hbm [shape: bf16[16,128], index: 1, kind: input, shape index: {}]   ;;  %s5209_s2 = inlined_call_operand.hbm [shape: bf16[256,1024], index: 2, kind: input, shape index: {}]   ;;  %s5210_s3 = inlined_call_operand.vmem [shape: f32[1,1024], index: 3, kind: input, shape index: {}]   ;;  %s5211_s4 = inlined_call_operand.hbm [shape: bf16[1024,512], index: 4, kind: input, shape index: {}]   ;;  %s5212_s5 = inlined_call_operand.vmem [shape: f32[1,512], index: 5, kind: input, shape index: {}]   ;;  %s5213_s6 = inlined_call_operand.hbm [shape: bf16[512,256], index: 6, kind: input, shape index: {}]   ;;  %s5214_s7 = inlined_call_operand.vmem [shape: f32[1,256], index: 7, kind: input, shape index: {}]   ;;  %s5215_s8 = inlined_call_operand.hbm [shape: bf16[256,128], index: 8, kind: input, shape index: {}]   ;;  %s5216_s9 = inlined_call_operand.vmem [shape: f32[1,128], index: 9, kind: input, shape index: {}]   ;;  %s5217_s10 = inlined_call_operand.hbm [shape: f32[16,128], index: 10, kind: output, shape index: {}]  }
   0x1   :  { %16 = vsyncpa [#allocation6], 0 }
   0x2   :  { %17 = vsyncpa [#allocation9], 0 }
   0x3   :  { %18 = vsyncpa [#allocation12], 0 }
   0x4   :  { %19 = vsyncpa [#allocation4], 0  ;;  %s4949_s13 = smov [#allocation5]   ;;  %s4950_s15 = smov [#allocation8]  }
   0x5   :  { %s37_s14 = sshll.u32 %s4949_s13, 4  ;;  %s63_s16 = sshll.u32 %s4950_s15, 4  ;;  %s38_s14 = int_to_ptr.vmem [resolvable:$true] %s37_s14  ;;  %s5019_s16 = int_to_ptr.vmem [resolvable:$true] %s63_s16 }
   0x6   :  { %s4785_s19 = scalar_lea.hbm %s5208_s1, 128 }
   0x7   :  { %p4786_p0 = scmp.ne.s32.totalorder %s5208_s1, %s4785_s19  ;;  %p4789_p1 = scmp.lt.u32.totalorder %s4785_s19, %s5208_s1 }
   0x9   :  { %p4791_p2 = pnand %p4789_p1, %p4786_p0 }
   0xb   :  { %4794 = shalt.err (!%p4791_p2)
}
   0xc   :  { %s4795_s24 = scalar_lea.vmem %s38_s14, 128  ;;  %p4800_p4 = scmp.lt.s32.totalorder %s38_s14, %s38_s14 }
   0xd   :  { %p4796_p3 = scmp.ne.s32.totalorder %s38_s14, %s4795_s24  ;;  %p4801_p5 = scmp.lt.s32.totalorder %s4795_s24, %s4795_s24 }
   0xf   :  { %p4802_p6 = por %p4801_p5, %p4800_p4 }
  0x11   :  { %p4803_p7 = pnand %p4802_p6, %p4796_p3 }
  0x13   :  { %4806 = shalt.err (!%p4803_p7)
}
  0x14   :  { %s4951_s25 = smov 64   ;;  %s4952_s26 = smov 4  }
  0x15   :  { %43 = dma.hbm_to_vmem [thread:$0]  %s5208_s1, 128, %s38_s14, [#allocation6], %s4951_s25, %s4951_s25, %s4952_s26  }
  0x16   :  { %s4807_s11 = scalar_lea.hbm %s5211_s4, 32768 }
  0x17   :  { %p4808_p8 = scmp.ne.s32.totalorder %s5211_s4, %s4807_s11  ;;  %p4811_p9 = scmp.lt.u32.totalorder %s4807_s11, %s5211_s4 }
  0x19   :  { %p4813_p10 = pnand %p4811_p9, %p4808_p8 }
  0x1b   :  { %4816 = shalt.err (!%p4813_p10)
}
  0x1c   :  { %s4817_s18 = scalar_lea.vmem %s5019_s16, 32768  ;;  %p4822_p12 = scmp.lt.s32.totalorder %s5019_s16, %s5019_s16 }
  0x1d   :  { %p4818_p11 = scmp.ne.s32.totalorder %s5019_s16, %s4817_s18  ;;  %p4823_p13 = scmp.lt.s32.totalorder %s4817_s18, %s4817_s18 }
  0x1f   :  { %p4824_p0 = por %p4823_p13, %p4822_p12 }
  0x21   :  { %p4825_p1 = pnand %p4824_p0, %p4818_p11 }
  0x23   :  { %4828 = shalt.err (!%p4825_p1)
}
  0x24   :  { %s4953_s1 = smov 256   ;;  %s4954_s14 = smov 16  }
  0x25   :  { %69 = dma.hbm_to_vmem [thread:$0]  %s5211_s4, 32768, %s5019_s16, [#allocation9], %s4953_s1, %s4953_s1, %s4954_s14  }
  0x26   :  { %s4955_s21 = smov [#allocation2]   ;;  %s4956_s23 = smov [#allocation7]  }
  0x27   :  { %s25_s22 = sshll.u32 %s4955_s21, 4  ;;  %s49_s24 = sshll.u32 %s4956_s23, 4  ;;  %s26_s22 = int_to_ptr.vmem [resolvable:$true] %s25_s22  ;;  %s5053_s24 = int_to_ptr.vmem [resolvable:$true] %s49_s24 }
  0x28   :  { %s4829_s29 = scalar_lea.hbm %s5207_s0, 128 }
  0x29   :  { %p4830_p2 = scmp.ne.s32.totalorder %s5207_s0, %s4829_s29  ;;  %p4833_p3 = scmp.lt.u32.totalorder %s4829_s29, %s5207_s0 }
  0x2b   :  { %p4835_p4 = pnand %p4833_p3, %p4830_p2 }
  0x2d   :  { %4838 = shalt.err (!%p4835_p4)
}
  0x2e   :  { %s4839_s4 = scalar_lea.vmem %s26_s22, 128  ;;  %p4844_p6 = scmp.lt.s32.totalorder %s26_s22, %s26_s22 }
  0x2f   :  { %p4840_p5 = scmp.ne.s32.totalorder %s26_s22, %s4839_s4  ;;  %p4845_p7 = scmp.lt.s32.totalorder %s4839_s4, %s4839_s4 }
  0x31   :  { %p4846_p8 = por %p4845_p7, %p4844_p6 }
  0x33   :  { %p4847_p9 = pnand %p4846_p8, %p4840_p5 }
  0x35   :  { %4850 = shalt.err (!%p4847_p9)
}
  0x36   :  { %31 = dma.hbm_to_vmem [thread:$0]  %s5207_s0, 128, %s26_s22, [#allocation3], %s4951_s25, %s4951_s25, %s4952_s26  }
  0x37   :  { %s4851_s1 = scalar_lea.hbm %s5209_s2, 16384 }
  0x38   :  { %p4852_p10 = scmp.ne.s32.totalorder %s5209_s2, %s4851_s1  ;;  %p4855_p11 = scmp.lt.u32.totalorder %s4851_s1, %s5209_s2 }
  0x3a   :  { %p4857_p12 = pnand %p4855_p11, %p4852_p10 }
  0x3c   :  { %4860 = shalt.err (!%p4857_p12)
}
  0x3d   :  { %s4861_s23 = scalar_lea.vmem %s5053_s24, 16384  ;;  %p4866_p0 = scmp.lt.s32.totalorder %s5053_s24, %s5053_s24 }
  0x3e   :  { %p4862_p13 = scmp.ne.s32.totalorder %s5053_s24, %s4861_s23  ;;  %p4867_p1 = scmp.lt.s32.totalorder %s4861_s23, %s4861_s23 }
  0x40   :  { %p4868_p2 = por %p4867_p1, %p4866_p0 }
  0x42   :  { %p4869_p3 = pnand %p4868_p2, %p4862_p13 }
  0x44   :  { %4872 = shalt.err (!%p4869_p3)
}
  0x45   :  { %s4957_s0 = smov 512   ;;  %s4958_s22 = smov 32  }
  0x46   :  { %55 = dma.hbm_to_vmem [thread:$0]  %s5209_s2, 16384, %s5053_s24, [#allocation6], %s4957_s0, %s4957_s0, %s4958_s22  }
  0x47   :  { %s4959_s29 = smov [#allocation10]   ;;  %s4873_s13 = scalar_lea.hbm %s5213_s6, 8192 }
  0x48   :  { %s77_s30 = sshll.u32 %s4959_s29, 4  ;;  %p4874_p4 = scmp.ne.s32.totalorder %s5213_s6, %s4873_s13  ;;  %s78_s30 = int_to_ptr.vmem [resolvable:$true] %s77_s30 }
  0x49   :  { %p4877_p5 = scmp.lt.u32.totalorder %s4873_s13, %s5213_s6 }
  0x4b   :  { %p4879_p6 = pnand %p4877_p5, %p4874_p4 }
  0x4d   :  { %4882 = shalt.err (!%p4879_p6)
}
  0x4e   :  { %s4883_s18 = scalar_lea.vmem %s78_s30, 8192  ;;  %p4888_p8 = scmp.lt.s32.totalorder %s78_s30, %s78_s30 }
  0x4f   :  { %p4884_p7 = scmp.ne.s32.totalorder %s78_s30, %s4883_s18  ;;  %p4889_p9 = scmp.lt.s32.totalorder %s4883_s18, %s4883_s18 }
  0x51   :  { %p4890_p10 = por %p4889_p9, %p4888_p8 }
  0x53   :  { %p4891_p11 = pnand %p4890_p10, %p4884_p7 }
  0x55   :  { %4894 = shalt.err (!%p4891_p11)
}
  0x56   :  { %s4960_s2 = smov 128   ;;  %s4961_s24 = smov 8  }
  0x57   :  { %83 = dma.hbm_to_vmem [thread:$0]  %s5213_s6, 8192, %s78_s30, [#allocation9], %s4960_s2, %s4960_s2, %s4961_s24  }
  0x58   :  { %s4962_s19 = smov [#allocation11]   ;;  %s4895_s0 = scalar_lea.hbm %s5215_s8, 2048 }
  0x59   :  { %s91_s20 = sshll.u32 %s4962_s19, 4  ;;  %p4896_p12 = scmp.ne.s32.totalorder %s5215_s8, %s4895_s0  ;;  %s92_s20 = int_to_ptr.vmem [resolvable:$true] %s91_s20 }
  0x5a   :  { %p4899_p13 = scmp.lt.u32.totalorder %s4895_s0, %s5215_s8 }
  0x5c   :  { %p4901_p0 = pnand %p4899_p13, %p4896_p12 }
  0x5e   :  { %4904 = shalt.err (!%p4901_p0)
}
  0x5f   :  { %s4905_s11 = scalar_lea.vmem %s92_s20, 2048  ;;  %p4910_p2 = scmp.lt.s32.totalorder %s92_s20, %s92_s20 }
  0x60   :  { %p4906_p1 = scmp.ne.s32.totalorder %s92_s20, %s4905_s11  ;;  %p4911_p3 = scmp.lt.s32.totalorder %s4905_s11, %s4905_s11 }
  0x62   :  { %p4912_p4 = por %p4911_p3, %p4910_p2 }
  0x64   :  { %p4913_p5 = pnand %p4912_p4, %p4906_p1 }
  0x66   :  { %4916 = shalt.err (!%p4913_p5)
}
  0x67   :  { %97 = dma.hbm_to_vmem [thread:$0]  %s5215_s8, 2048, %s92_s20, [#allocation12], %s4951_s25, %s4951_s25, %s4952_s26  }
  0x68   :  { %4939 = dma.done.wait [#allocation3], 128  }
  0x69   :  { %4940 = vsyncadd [#allocation3], 4294967168 }
  0x6a   :  { %4941 = dma.done.wait [#allocation6], 16512  }
  0x6b   :  { %4942 = vsyncadd [#allocation6], 4294950784 }
  0x6c   :  { %4943 = dma.done.wait [#allocation9], 40960  }
  0x6d   :  { %4944 = vsyncadd [#allocation9], 4294926336 }
  0x6e   :  { %4945 = dma.done.wait [#allocation12], 2048  }
  0x6f   :  { %4946 = vsyncadd [#allocation12], 4294965248  ;;  %v135_v0 = vld [vmem:[#allocation7] sm:$0xff]  ;;  %v5117_v17 = vld [vmem:[#allocation5] sm:$0xff]   ;;  %s4963_s4 = smov [#allocation13]  }
  0x70   :  { %v139_v1 = vld [vmem:[#allocation7 + $0x20] sm:$0xff]  ;;  %977 = vmatprep.mubr.bf16.mxu1 %v5117_v17  ;;  %1063 = vmatprep.mubr.bf16.mxu0 %v5117_v17  ;;  %v137_v30 = vld [vmem:[#allocation7 + $0x10] sm:$0xff]  ;;  %s3726_s16 = sshll.u32 %s4963_s4, 4  ;;  %s3727_s16 = int_to_ptr.vmem [resolvable:$true] %s3726_s16 }
  0x71   :  { %v143_v2 = vld [vmem:[#allocation7 + $0x40] sm:$0xff]  ;;  %v3744_v3 = vcombine.high %v135_v0, %v139_v1  ;;  %v3743_v4 = vcombine.low %v135_v0, %v139_v1  ;;  %v141_v31 = vld [vmem:[#allocation7 + $0x30] sm:$0xff]  ;;  %s4917_s15 = scalar_lea.vmem %s3727_s16, 256  ;;  %p4922_p7 = scmp.lt.s32.totalorder %s3727_s16, %s3727_s16 }
  0x72   :  { %v147_v5 = vld [vmem:[#allocation7 + $0x60] sm:$0xff]  ;;  %v3748_v33 = vcombine.high %v137_v30, %v141_v31  ;;  %v3747_v34 = vcombine.low %v137_v30, %v141_v31  ;;  %v145_v35 = vld [vmem:[#allocation7 + $0x50] sm:$0xff]  ;;  %p4918_p6 = scmp.ne.s32.totalorder %s3727_s16, %s4917_s15  ;;  %p4923_p8 = scmp.lt.s32.totalorder %s4917_s15, %s4917_s15 }
  0x73   :  { %v3752_v6 = vcombine.high %v143_v2, %v147_v5  ;;  %v151_v7 = vld [vmem:[#allocation7 + $0x80] sm:$0xff]  ;;  %945 = vmatprep.subr.bf16.mxu1 %v3744_v3  ;;  %v3751_v9 = vcombine.low %v143_v2, %v147_v5  ;;  %v149_v36 = vld [vmem:[#allocation7 + $0x70] sm:$0xff] }
  0x74   :  { %v155_v8 = vld [vmem:[#allocation7 + $0xa0] sm:$0xff]  ;;  %946 = vmatpush1.bf16.msra.mxu1 %v3743_v4  ;;  %v3756_v38 = vcombine.high %v145_v35, %v149_v36  ;;  %v153_v39 = vld [vmem:[#allocation7 + $0x90] sm:$0xff]  ;;  %1031 = vmatprep.subr.bf16.mxu0 %v3748_v33  ;;  %v3755_v43 = vcombine.low %v145_v35, %v149_v36  ;;  %p4924_p9 = por %p4923_p8, %p4922_p7 }
  0x75   :  { %947 = vmatprep.subr.bf16.mxu1 %v3752_v6  ;;  %v3760_v10 = vcombine.high %v151_v7, %v155_v8  ;;  %v159_v11 = vld [vmem:[#allocation7 + $0xc0] sm:$0xff]  ;;  %v3759_v13 = vcombine.low %v151_v7, %v155_v8  ;;  %v157_v40 = vld [vmem:[#allocation7 + $0xb0] sm:$0xff]  ;;  %1032 = vmatpush1.bf16.msra.mxu0 %v3747_v34 }
  0x76   :  { %v163_v12 = vld [vmem:[#allocation7 + $0xe0] sm:$0xff]  ;;  %1033 = vmatprep.subr.bf16.mxu0 %v3756_v38  ;;  %v3764_v45 = vcombine.high %v153_v39, %v157_v40  ;;  %v161_v47 = vld [vmem:[#allocation7 + $0xd0] sm:$0xff]  ;;  %v3763_v51 = vcombine.low %v153_v39, %v157_v40  ;;  %v136_v38 = vld [vmem:[#allocation7 + $0x8] sm:$0xff]  ;;  %p4925_p10 = pnand %p4924_p9, %p4918_p6 }
  0x77   :  { %v3768_v14 = vcombine.high %v159_v11, %v163_v12  ;;  %v167_v15 = vld [vmem:[#allocation7 + $0x100] sm:$0xff]  ;;  %v3767_v18 = vcombine.low %v159_v11, %v163_v12  ;;  %v165_v48 = vld [vmem:[#allocation7 + $0xf0] sm:$0xff]  ;;  %v140_v39 = vld [vmem:[#allocation7 + $0x28] sm:$0xff] }
  0x78   :  { %948 = vmatpush1.bf16.msra.mxu1 %v3751_v9  ;;  %v171_v16 = vld [vmem:[#allocation7 + $0x120] sm:$0xff]  ;;  %v3772_v53 = vcombine.high %v161_v47, %v165_v48  ;;  %v169_v55 = vld [vmem:[#allocation7 + $0x110] sm:$0xff]  ;;  %v3771_v59 = vcombine.low %v161_v47, %v165_v48  ;;  %v148_v47 = vld [vmem:[#allocation7 + $0x68] sm:$0xff] }
  0x79   :  { %949 = vmatprep.subr.bf16.mxu1 %v3760_v10  ;;  %v3776_v19 = vcombine.high %v167_v15, %v171_v16  ;;  %v175_v20 = vld [vmem:[#allocation7 + $0x140] sm:$0xff]  ;;  %v3775_v22 = vcombine.low %v167_v15, %v171_v16  ;;  %1034 = vmatpush1.bf16.msra.mxu0 %v3755_v43  ;;  %v173_v56 = vld [vmem:[#allocation7 + $0x130] sm:$0xff] }
  0x7a   :  { %v179_v21 = vld [vmem:[#allocation7 + $0x160] sm:$0xff]  ;;  %1035 = vmatprep.subr.bf16.mxu0 %v3764_v45  ;;  %v3780_v61 = vcombine.high %v169_v55, %v173_v56  ;;  %v177_v63 = vld [vmem:[#allocation7 + $0x150] sm:$0xff]  ;;  %v3779_v3 = vcombine.low %v169_v55, %v173_v56  ;;  %v152_v55 = vld [vmem:[#allocation7 + $0x88] sm:$0xff] }
  0x7b   :  { %v3784_v23 = vcombine.high %v175_v20, %v179_v21  ;;  %v183_v24 = vld [vmem:[#allocation7 + $0x180] sm:$0xff]  ;;  %v3783_v26 = vcombine.low %v175_v20, %v179_v21  ;;  %v181_v0 = vld [vmem:[#allocation7 + $0x170] sm:$0xff]  ;;  %v156_v56 = vld [vmem:[#allocation7 + $0xa8] sm:$0xff] }
  0x7c   :  { %950 = vmatpush1.bf16.msra.mxu1 %v3759_v13  ;;  %v187_v25 = vld [vmem:[#allocation7 + $0x1a0] sm:$0xff]  ;;  %v3788_v7 = vcombine.high %v177_v63, %v181_v0  ;;  %v185_v8 = vld [vmem:[#allocation7 + $0x190] sm:$0xff]  ;;  %v3787_v11 = vcombine.low %v177_v63, %v181_v0  ;;  %v160_v63 = vld [vmem:[#allocation7 + $0xc8] sm:$0xff] }
  0x7d   :  { %951 = vmatprep.subr.bf16.mxu1 %v3768_v14  ;;  %v3792_v27 = vcombine.high %v183_v24, %v187_v25  ;;  %v191_v28 = vld [vmem:[#allocation7 + $0x1c0] sm:$0xff]  ;;  %v3791_v32 = vcombine.low %v183_v24, %v187_v25  ;;  %1036 = vmatpush1.bf16.msra.mxu0 %v3763_v51  ;;  %v189_v10 = vld [vmem:[#allocation7 + $0x1b0] sm:$0xff]  ;;  %v164_v0 = vld [vmem:[#allocation7 + $0xe8] sm:$0xff] }
  0x7e   :  { %v195_v29 = vld [vmem:[#allocation7 + $0x1e0] sm:$0xff]  ;;  %1037 = vmatprep.subr.bf16.mxu0 %v3772_v53  ;;  %v3796_v15 = vcombine.high %v185_v8, %v189_v10  ;;  %v193_v16 = vld [vmem:[#allocation7 + $0x1d0] sm:$0xff]  ;;  %v3795_v20 = vcombine.low %v185_v8, %v189_v10  ;;  %v172_v8 = vld [vmem:[#allocation7 + $0x128] sm:$0xff] }
  0x7f   :  { %v3800_v37 = vcombine.high %v191_v28, %v195_v29  ;;  %v199_v41 = vld [vmem:[#allocation7 + $0x200] sm:$0xff]  ;;  %v3799_v44 = vcombine.low %v191_v28, %v195_v29  ;;  %v201_v25 = vld [vmem:[#allocation7 + $0x210] sm:$0xff] }
  0x80   :  { %952 = vmatpush1.bf16.msra.mxu1 %v3767_v18  ;;  %v203_v42 = vld [vmem:[#allocation7 + $0x220] sm:$0xff]  ;;  %v197_v18 = vld [vmem:[#allocation7 + $0x1f0] sm:$0xff] }
  0x81   :  { %953 = vmatprep.subr.bf16.mxu1 %v3776_v19  ;;  %v3808_v46 = vcombine.high %v199_v41, %v203_v42  ;;  %v207_v49 = vld [vmem:[#allocation7 + $0x240] sm:$0xff]  ;;  %v3807_v52 = vcombine.low %v199_v41, %v203_v42  ;;  %1038 = vmatpush1.bf16.msra.mxu0 %v3771_v59  ;;  %v3804_v24 = vcombine.high %v193_v16, %v197_v18  ;;  %v209_v33 = vld [vmem:[#allocation7 + $0x250] sm:$0xff] }
  0x82   :  { %v211_v50 = vld [vmem:[#allocation7 + $0x260] sm:$0xff]  ;;  %1039 = vmatprep.subr.bf16.mxu0 %v3780_v61  ;;  %v3803_v28 = vcombine.low %v193_v16, %v197_v18  ;;  %v213_v34 = vld [vmem:[#allocation7 + $0x270] sm:$0xff] }
  0x83   :  { %v3816_v54 = vcombine.high %v207_v49, %v211_v50  ;;  %v215_v57 = vld [vmem:[#allocation7 + $0x280] sm:$0xff]  ;;  %v3815_v60 = vcombine.low %v207_v49, %v211_v50  ;;  %v3820_v40 = vcombine.high %v209_v33, %v213_v34  ;;  %v217_v41 = vld [vmem:[#allocation7 + $0x290] sm:$0xff] }
  0x84   :  { %954 = vmatpush1.bf16.msra.mxu1 %v3775_v22  ;;  %v219_v58 = vld [vmem:[#allocation7 + $0x2a0] sm:$0xff]  ;;  %v221_v42 = vld [vmem:[#allocation7 + $0x2b0] sm:$0xff] }
  0x85   :  { %955 = vmatprep.subr.bf16.mxu1 %v3784_v23  ;;  %v3824_v62 = vcombine.high %v215_v57, %v219_v58  ;;  %v223_v1 = vld [vmem:[#allocation7 + $0x2c0] sm:$0xff]  ;;  %v3823_v4 = vcombine.low %v215_v57, %v219_v58  ;;  %1040 = vmatpush1.bf16.msra.mxu0 %v3779_v3  ;;  %v3828_v48 = vcombine.high %v217_v41, %v221_v42  ;;  %v225_v49 = vld [vmem:[#allocation7 + $0x2d0] sm:$0xff] }
  0x86   :  { %v227_v2 = vld [vmem:[#allocation7 + $0x2e0] sm:$0xff]  ;;  %1041 = vmatprep.subr.bf16.mxu0 %v3788_v7  ;;  %v229_v50 = vld [vmem:[#allocation7 + $0x2f0] sm:$0xff]  ;;  %v3827_v53 = vcombine.low %v217_v41, %v221_v42  ;;  %v3762_v3 = vcombine.high %v152_v55, %v156_v56  ;;  %v168_v7 = vld [vmem:[#allocation7 + $0x108] sm:$0xff] }
  0x87   :  { %v231_v5 = vld [vmem:[#allocation7 + $0x300] sm:$0xff]  ;;  %v3832_v9 = vcombine.high %v223_v1, %v227_v2  ;;  %v3831_v12 = vcombine.low %v223_v1, %v227_v2  ;;  %v5121_v51 = vld [vmem:[#allocation2] sm:$0xff]   ;;  %v3836_v59 = vcombine.high %v225_v49, %v229_v50  ;;  %v3835_v61 = vcombine.low %v225_v49, %v229_v50  ;;  %v208_v41 = vld [vmem:[#allocation7 + $0x248] sm:$0xff] }
  0x88   :  { %956 = vmatpush1.bf16.msra.mxu1 %v3783_v26  ;;  %v235_v6 = vld [vmem:[#allocation7 + $0x320] sm:$0xff]  ;;  %v205_v26 = vld [vmem:[#allocation7 + $0x230] sm:$0xff]  ;;  %v212_v42 = vld [vmem:[#allocation7 + $0x268] sm:$0xff] }
  0x89   :  { %957 = vmatprep.subr.bf16.mxu1 %v3792_v27  ;;  %v239_v13 = vld [vmem:[#allocation7 + $0x340] sm:$0xff]  ;;  %v3840_v19 = vcombine.high %v231_v5, %v235_v6  ;;  %1042 = vmatpush1.bf16.msra.mxu0 %v3787_v11  ;;  %v3839_v21 = vcombine.low %v231_v5, %v235_v6  ;;  %v3811_v36 = vcombine.low %v201_v25, %v205_v26  ;;  %v233_v57 = vld [vmem:[#allocation7 + $0x310] sm:$0xff] }
  0x8a   :  { %v243_v14 = vld [vmem:[#allocation7 + $0x360] sm:$0xff]  ;;  %1043 = vmatprep.subr.bf16.mxu0 %v3796_v15  ;;  %v241_v2 = vld [vmem:[#allocation7 + $0x350] sm:$0xff]  ;;  %v3761_v6 = vcombine.low %v152_v55, %v156_v56  ;;  %v3770_v11 = vcombine.high %v160_v63, %v164_v0  ;;  %v180_v15 = vld [vmem:[#allocation7 + $0x168] sm:$0xff]  ;;  %v3818_v50 = vcombine.high %v208_v41, %v212_v42 }
  0x8b   :  { %v247_v22 = vld [vmem:[#allocation7 + $0x380] sm:$0xff]  ;;  %v3848_v27 = vcombine.high %v239_v13, %v243_v14  ;;  %v3847_v29 = vcombine.low %v239_v13, %v243_v14  ;;  %v249_v10 = vld [vmem:[#allocation7 + $0x390] sm:$0xff]  ;;  %v3769_v13 = vcombine.low %v160_v63, %v164_v0  ;;  %v176_v14 = vld [vmem:[#allocation7 + $0x148] sm:$0xff] }
  0x8c   :  { %958 = vmatpush1.bf16.msra.mxu1 %v3791_v32  ;;  %v251_v23 = vld [vmem:[#allocation7 + $0x3a0] sm:$0xff]  ;;  %v3812_v32 = vcombine.high %v201_v25, %v205_v26  ;;  %v257_v18 = vld [vmem:[#allocation7 + $0x3d0] sm:$0xff]  ;;  %v3786_v25 = vcombine.high %v176_v14, %v180_v15  ;;  %v188_v26 = vld [vmem:[#allocation7 + $0x1a8] sm:$0xff] }
  0x8d   :  { %959 = vmatprep.subr.bf16.mxu1 %v3800_v37  ;;  %1044 = vmatpush1.bf16.msra.mxu0 %v3795_v20  ;;  %v255_v30 = vld [vmem:[#allocation7 + $0x3c0] sm:$0xff]  ;;  %v3856_v35 = vcombine.high %v247_v22, %v251_v23  ;;  %v3855_v37 = vcombine.low %v247_v22, %v251_v23  ;;  %v261_v20 = vld [vmem:[#allocation7 + $0x3f0] sm:$0xff]  ;;  %v3777_v22 = vcombine.low %v168_v7, %v172_v8  ;;  %v184_v23 = vld [vmem:[#allocation7 + $0x188] sm:$0xff] }
  0x8e   :  { %v259_v31 = vld [vmem:[#allocation7 + $0x3e0] sm:$0xff]  ;;  %1045 = vmatprep.subr.bf16.mxu0 %v3804_v24  ;;  %v3868_v24 = vcombine.high %v257_v18, %v261_v20  ;;  %v228_v55 = vld [vmem:[#allocation7 + $0x2e8] sm:$0xff] }
  0x8f   :  { %v3864_v43 = vcombine.high %v255_v30, %v259_v31  ;;  %v3863_v45 = vcombine.low %v255_v30, %v259_v31  ;;  %v196_v30 = vld [vmem:[#allocation7 + $0x1e8] sm:$0xff]  ;;  %v4289_v31 = vld [vmem:[#allocation8 + $0x4] ss:$16 sps:$4 sm:$0xff]   ;;  %v4317_v0 = vld [vmem:[#allocation8 + $0xa0] ss:$16 sps:$4 sm:$0xff]  }
  0x90   :  { %960 = vmatpush1.bf16.msra.mxu1 %v3799_v44  ;;  %v3819_v44 = vcombine.low %v209_v33, %v213_v34  ;;  %v4287_v33 = vld [vmem:[#allocation8] ss:$16 sps:$4 sm:$0xff]   ;;  %v3793_v34 = vcombine.low %v184_v23, %v188_v26  ;;  %v4307_v49 = vld [vmem:[#allocation8 + $0x64] ss:$16 sps:$4 sm:$0xff]  }
  0x91   :  { %961 = vmatprep.subr.bf16.mxu1 %v3808_v46  ;;  %1046 = vmatpush1.bf16.msra.mxu0 %v3803_v28  ;;  %v144_v46 = vld [vmem:[#allocation7 + $0x48] sm:$0xff]  ;;  %v3785_v28 = vcombine.low %v176_v14, %v180_v15  ;;  %v4313_v56 = vld [vmem:[#allocation8 + $0x84] ss:$16 sps:$4 sm:$0xff]  }
  0x92   :  { %1047 = vmatprep.subr.bf16.mxu0 %v3812_v32  ;;  %v3754_v58 = vcombine.high %v144_v46, %v148_v47  ;;  %v3794_v32 = vcombine.high %v184_v23, %v188_v26  ;;  %v260_v14 = vld [vmem:[#allocation7 + $0x3e8] sm:$0xff]  ;;  %v4337_v15 = vld [vmem:[#allocation8 + $0x104] ss:$16 sps:$4 sm:$0xff]  }
  0x94   :  { %962 = vmatpush1.bf16.msra.mxu1 %v3807_v52  ;;  %v3746_v52 = vcombine.high %v136_v38, %v140_v39 }
  0x95   :  { %963 = vmatprep.subr.bf16.mxu1 %v3816_v54  ;;  %1048 = vmatpush1.bf16.msra.mxu0 %v3811_v36  ;;  %v3745_v54 = vcombine.low %v136_v38, %v140_v39  ;;  %v204_v36 = vld [vmem:[#allocation7 + $0x228] sm:$0xff]  ;;  %v4293_v39 = vld [vmem:[#allocation8 + $0x20] ss:$16 sps:$4 sm:$0xff]  }
  0x96   :  { %1049 = vmatprep.subr.bf16.mxu0 %v3820_v40 }
  0x98   :  { %964 = vmatpush1.bf16.msra.mxu1 %v3815_v60  ;;  %v237_v60 = vld [vmem:[#allocation7 + $0x330] sm:$0xff] }
  0x99   :  { %965 = vmatprep.subr.bf16.mxu1 %v3824_v62  ;;  %1050 = vmatpush1.bf16.msra.mxu0 %v3819_v44  ;;  %v3753_v62 = vcombine.low %v144_v46, %v148_v47  ;;  %v3844_v1 = vcombine.high %v233_v57, %v237_v60  ;;  %v3843_v5 = vcombine.low %v233_v57, %v237_v60  ;;  %v216_v47 = vld [vmem:[#allocation7 + $0x288] sm:$0xff] }
  0x9a   :  { %1051 = vmatprep.subr.bf16.mxu0 %v3828_v48  ;;  %v220_v48 = vld [vmem:[#allocation7 + $0x2a8] sm:$0xff] }
  0x9b   :  { %v3826_v57 = vcombine.high %v216_v47, %v220_v48  ;;  %v232_v60 = vld [vmem:[#allocation7 + $0x308] sm:$0xff] }
  0x9c   :  { %966 = vmatpush1.bf16.msra.mxu1 %v3823_v4  ;;  %v245_v4 = vld [vmem:[#allocation7 + $0x370] sm:$0xff] }
  0x9d   :  { %967 = vmatprep.subr.bf16.mxu1 %v3832_v9  ;;  %1052 = vmatpush1.bf16.msra.mxu0 %v3827_v53  ;;  %v3852_v9 = vcombine.high %v241_v2, %v245_v4  ;;  %v3817_v53 = vcombine.low %v208_v41, %v212_v42  ;;  %v4783_v41 = vld [vmem:[#allocation5] sm:$0xff]  }
  0x9e   :  { %1053 = vmatprep.subr.bf16.mxu0 %v3836_v59  ;;  %v3825_v59 = vcombine.low %v216_v47, %v220_v48  ;;  %v174_v47 = vld [vmem:[#allocation7 + $0x138] sm:$0xff]  ;;  %v4365_v48 = vld [vmem:[#allocation8 + $0x1a0] ss:$16 sps:$4 sm:$0xff]  }
  0xa0   :  { %968 = vmatpush1.bf16.msra.mxu1 %v3831_v12  ;;  %v253_v12 = vld [vmem:[#allocation7 + $0x3b0] sm:$0xff] }
  0xa1   :  { %969 = vmatprep.subr.bf16.mxu1 %v3840_v19  ;;  %1054 = vmatpush1.bf16.msra.mxu0 %v3835_v61  ;;  %v3860_v16 = vcombine.high %v249_v10, %v253_v12  ;;  %v3778_v19 = vcombine.high %v168_v7, %v172_v8  ;;  %v236_v61 = vld [vmem:[#allocation7 + $0x328] sm:$0xff] }
  0xa2   :  { %1055 = vmatprep.subr.bf16.mxu0 %v3844_v1  ;;  %v3841_v7 = vcombine.low %v232_v60, %v236_v61  ;;  %v248_v8 = vld [vmem:[#allocation7 + $0x388] sm:$0xff] }
  0xa4   :  { %970 = vmatpush1.bf16.msra.mxu1 %v3839_v21  ;;  %v3859_v21 = vcombine.low %v249_v10, %v253_v12  ;;  %v4331_v10 = vld [vmem:[#allocation8 + $0xe4] ss:$16 sps:$4 sm:$0xff]   ;;  %v4329_v12 = vld [vmem:[#allocation8 + $0xe0] ss:$16 sps:$4 sm:$0xff]  }
  0xa5   :  { %971 = vmatprep.subr.bf16.mxu1 %v3848_v27  ;;  %1056 = vmatpush1.bf16.msra.mxu0 %v3843_v5  ;;  %v3867_v27 = vcombine.low %v257_v18, %v261_v20  ;;  %v3842_v5 = vcombine.high %v232_v60, %v236_v61  ;;  %v4335_v18 = vld [vmem:[#allocation8 + $0x100] ss:$16 sps:$4 sm:$0xff]   ;;  %v138_v20 = vld [vmem:[#allocation7 + $0x18] sm:$0xff] }
  0xa6   :  { %1057 = vmatprep.subr.bf16.mxu0 %v3852_v9  ;;  %v252_v9 = vld [vmem:[#allocation7 + $0x3a8] sm:$0xff]  ;;  %v198_v61 = vld [vmem:[#allocation7 + $0x1f8] sm:$0xff] }
  0xa8   :  { %972 = vmatpush1.bf16.msra.mxu1 %v3847_v29  ;;  %v192_v29 = vld [vmem:[#allocation7 + $0x1c8] sm:$0xff] }
  0xa9   :  { %973 = vmatprep.subr.bf16.mxu1 %v3856_v35  ;;  %v200_v35 = vld [vmem:[#allocation7 + $0x208] sm:$0xff]  ;;  %v3802_v38 = vcombine.high %v192_v29, %v196_v30  ;;  %v3801_v40 = vcombine.low %v192_v29, %v196_v30  ;;  %v4347_v30 = vld [vmem:[#allocation8 + $0x140] ss:$16 sps:$4 sm:$0xff]  }
  0xaa   :  { %v3810_v44 = vcombine.high %v200_v35, %v204_v36  ;;  %v3809_v46 = vcombine.low %v200_v35, %v204_v36  ;;  %v4353_v36 = vld [vmem:[#allocation8 + $0x160] ss:$16 sps:$4 sm:$0xff]  }
  0xac   :  { %974 = vmatpush1.bf16.msra.mxu1 %v3855_v37  ;;  %v4295_v37 = vld [vmem:[#allocation8 + $0x24] ss:$16 sps:$4 sm:$0xff]  }
  0xad   :  { %975 = vmatprep.subr.bf16.mxu1 %v3864_v43  ;;  %v4301_v43 = vld [vmem:[#allocation8 + $0x44] ss:$16 sps:$4 sm:$0xff]  }
  0xb0   :  { %976 = vmatpush1.bf16.msra.mxu1 %v3863_v45  ;;  %v4299_v45 = vld [vmem:[#allocation8 + $0x40] ss:$16 sps:$4 sm:$0xff]  }
  0xb1   :  { %988 = vmatprep.subr.bf16.mxu1 %v3746_v52  ;;  %v4305_v52 = vld [vmem:[#allocation8 + $0x60] ss:$16 sps:$4 sm:$0xff]  }
  0xb3   :  { %978 = vmatmul.mubr.bf16.vlgmr.msra.gmra.mrb[0].mxu1 %v5121_v51 }
  0xb4   :  { %989 = vmatpush1.bf16.msra.mxu1 %v3745_v54  ;;  %1020 = vmatprep.mubr.bf16.mxu1 %v5117_v17  ;;  %v3851_v17 = vcombine.low %v241_v2, %v245_v4  ;;  %v224_v54 = vld [vmem:[#allocation7 + $0x2c8] sm:$0xff]  ;;  %v4325_v4 = vld [vmem:[#allocation8 + $0xc4] ss:$16 sps:$4 sm:$0xff]  }
  0xb5   :  { %990 = vmatprep.subr.bf16.mxu1 %v3754_v58  ;;  %v4311_v58 = vld [vmem:[#allocation8 + $0x80] ss:$16 sps:$4 sm:$0xff]   ;;  %v3834_v63 = vcombine.high %v224_v54, %v228_v55  ;;  %v3833_v1 = vcombine.low %v224_v54, %v228_v55  ;;  %v240_v2 = vld [vmem:[#allocation7 + $0x348] sm:$0xff]  ;;  %v186_v55 = vld [vmem:[#allocation7 + $0x198] sm:$0xff] }
  0xb6   :  { %1058 = vmatpush1.bf16.msra.mxu0 %v3851_v17 }
  0xb7   :  { %1059 = vmatprep.subr.bf16.mxu0 %v3860_v16  ;;  %v3858_v16 = vcombine.high %v248_v8, %v252_v9 }
  0xb8   :  { %991 = vmatpush1.bf16.msra.mxu1 %v3753_v62  ;;  %v4319_v62 = vld [vmem:[#allocation8 + $0xa4] ss:$16 sps:$4 sm:$0xff]  }
  0xb9   :  { %992 = vmatprep.subr.bf16.mxu1 %v3762_v3  ;;  %v244_v3 = vld [vmem:[#allocation7 + $0x368] sm:$0xff] }
  0xba   :  { %1060 = vmatpush1.bf16.msra.mxu0 %v3859_v21  ;;  %v3849_v17 = vcombine.low %v240_v2, %v244_v3  ;;  %v142_v21 = vld [vmem:[#allocation7 + $0x38] sm:$0xff] }
  0xbb   :  { %1061 = vmatprep.subr.bf16.mxu0 %v3868_v24  ;;  %v4341_v24 = vld [vmem:[#allocation8 + $0x120] ss:$16 sps:$4 sm:$0xff]   ;;  %v3750_v29 = vcombine.high %v138_v20, %v142_v21 }
  0xbc   :  { %993 = vmatpush1.bf16.msra.mxu1 %v3761_v6  ;;  %v4323_v6 = vld [vmem:[#allocation8 + $0xc0] ss:$16 sps:$4 sm:$0xff]  }
  0xbd   :  { %994 = vmatprep.subr.bf16.mxu1 %v3770_v11  ;;  %v3850_v11 = vcombine.high %v240_v2, %v244_v3  ;;  %v206_v3 = vld [vmem:[#allocation7 + $0x238] sm:$0xff] }
  0xbe   :  { %1062 = vmatpush1.bf16.msra.mxu0 %v3867_v27  ;;  %v146_v27 = vld [vmem:[#allocation7 + $0x58] sm:$0xff] }
  0xbf   :  { %2699 = vmatprep.subr.bf16.mxu0 %v4289_v31  ;;  %v4355_v31 = vld [vmem:[#allocation8 + $0x164] ss:$16 sps:$4 sm:$0xff]  }
  0xc0   :  { %995 = vmatpush1.bf16.msra.mxu1 %v3769_v13  ;;  %v256_v13 = vld [vmem:[#allocation7 + $0x3c8] sm:$0xff] }
  0xc1   :  { %996 = vmatprep.subr.bf16.mxu1 %v3778_v19  ;;  %1064 = vmatmul.mubr.bf16.vlgmr.msra.gmra.mrb[0].mxu0 %v5121_v51  ;;  %v3857_v19 = vcombine.low %v248_v8, %v252_v9  ;;  %v3866_v23 = vcombine.high %v256_v13, %v260_v14  ;;  %v3865_v26 = vcombine.low %v256_v13, %v260_v14  ;;  %v214_v9 = vld [vmem:[#allocation7 + $0x278] sm:$0xff] }
  0xc2   :  { %2700 = vmatpush1.bf16.msra.mxu0 %v4287_v33  ;;  %v154_v33 = vld [vmem:[#allocation7 + $0x98] sm:$0xff] }
  0xc3   :  { %2701 = vmatprep.subr.bf16.mxu0 %v4295_v37  ;;  %v4361_v37 = vld [vmem:[#allocation8 + $0x184] ss:$16 sps:$4 sm:$0xff]   ;;  %v222_v13 = vld [vmem:[#allocation7 + $0x2b8] sm:$0xff] }
  0xc4   :  { %997 = vmatpush1.bf16.msra.mxu1 %v3777_v22  ;;  %v4343_v22 = vld [vmem:[#allocation8 + $0x124] ss:$16 sps:$4 sm:$0xff]  }
  0xc5   :  { %998 = vmatprep.subr.bf16.mxu1 %v3786_v25  ;;  %v4349_v25 = vld [vmem:[#allocation8 + $0x144] ss:$16 sps:$4 sm:$0xff]  }
  0xc6   :  { %2702 = vmatpush1.bf16.msra.mxu0 %v4293_v39  ;;  %v162_v39 = vld [vmem:[#allocation7 + $0xd8] sm:$0xff] }
  0xc7   :  { %2703 = vmatprep.subr.bf16.mxu0 %v4301_v43  ;;  %v4359_v43 = vld [vmem:[#allocation8 + $0x180] ss:$16 sps:$4 sm:$0xff]  }
  0xc8   :  { %999 = vmatpush1.bf16.msra.mxu1 %v3785_v28  ;;  %v150_v28 = vld [vmem:[#allocation7 + $0x78] sm:$0xff] }
  0xc9   :  { %1000 = vmatprep.subr.bf16.mxu1 %v3794_v32  ;;  %v3749_v32 = vcombine.low %v138_v20, %v142_v21  ;;  %v3758_v35 = vcombine.high %v146_v27, %v150_v28  ;;  %v234_v21 = vld [vmem:[#allocation7 + $0x318] sm:$0xff] }
  0xca   :  { %2704 = vmatpush1.bf16.msra.mxu0 %v4299_v45 }
  0xcb   :  { %2705 = vmatprep.subr.bf16.mxu0 %v4307_v49 }
  0xcc   :  { %1001 = vmatpush1.bf16.msra.mxu1 %v3793_v34  ;;  %v158_v34 = vld [vmem:[#allocation7 + $0xb8] sm:$0xff] }
  0xcd   :  { %1002 = vmatprep.subr.bf16.mxu1 %v3802_v38  ;;  %v3757_v38 = vcombine.low %v146_v27, %v150_v28  ;;  %v3766_v42 = vcombine.high %v154_v33, %v158_v34  ;;  %v3765_v45 = vcombine.low %v154_v33, %v158_v34  ;;  %v258_v33 = vld [vmem:[#allocation7 + $0x3d8] sm:$0xff] }
  0xce   :  { %2706 = vmatpush1.bf16.msra.mxu0 %v4305_v52  ;;  %v182_v52 = vld [vmem:[#allocation7 + $0x178] sm:$0xff] }
  0xcf   :  { %2707 = vmatprep.subr.bf16.mxu0 %v4313_v56  ;;  %v190_v56 = vld [vmem:[#allocation7 + $0x1b8] sm:$0xff] }
  0xd0   :  { %1003 = vmatpush1.bf16.msra.mxu1 %v3801_v40  ;;  %v166_v40 = vld [vmem:[#allocation7 + $0xf8] sm:$0xff]  ;;  %v3798_v60 = vcombine.high %v186_v55, %v190_v56 }
  0xd1   :  { %1004 = vmatprep.subr.bf16.mxu1 %v3810_v44  ;;  %v4367_v44 = vld [vmem:[#allocation8 + $0x1a4] ss:$16 sps:$4 sm:$0xff]   ;;  %v3773_v49 = vcombine.low %v162_v39, %v166_v40  ;;  %v262_v34 = vld [vmem:[#allocation7 + $0x3f8] sm:$0xff] }
  0xd2   :  { %2708 = vmatpush1.bf16.msra.mxu0 %v4311_v58 }
  0xd3   :  { %2709 = vmatprep.subr.bf16.mxu0 %v4319_v62  ;;  %v4373_v62 = vld [vmem:[#allocation8 + $0x1c4] ss:$16 sps:$4 sm:$0xff]  }
  0xd4   :  { %1005 = vmatpush1.bf16.msra.mxu1 %v3809_v46  ;;  %v170_v46 = vld [vmem:[#allocation7 + $0x118] sm:$0xff] }
  0xd5   :  { %1006 = vmatprep.subr.bf16.mxu1 %v3818_v50  ;;  %v178_v50 = vld [vmem:[#allocation7 + $0x158] sm:$0xff]  ;;  %v3781_v54 = vcombine.low %v170_v46, %v174_v47 }
  0xd6   :  { %2710 = vmatpush1.bf16.msra.mxu0 %v4317_v0  ;;  %v3789_v58 = vcombine.low %v178_v50, %v182_v52  ;;  %v3797_v0 = vcombine.low %v186_v55, %v190_v56  ;;  %v4340_v55 = vld [vmem:[#allocation8 + $0x10c] ss:$16 sps:$4 sm:$0xff]   ;;  %v4338_v56 = vld [vmem:[#allocation8 + $0x108] ss:$16 sps:$4 sm:$0xff]  }
  0xd7   :  { %2711 = vmatprep.subr.bf16.mxu0 %v4325_v4  ;;  %v4379_v4 = vld [vmem:[#allocation8 + $0x1e4] ss:$16 sps:$4 sm:$0xff]  }
  0xd8   :  { %1007 = vmatpush1.bf16.msra.mxu1 %v3817_v53  ;;  %v3782_v53 = vcombine.high %v170_v46, %v174_v47  ;;  %v4308_v46 = vld [vmem:[#allocation8 + $0x68] ss:$16 sps:$4 sm:$0xff]   ;;  %v4316_v47 = vld [vmem:[#allocation8 + $0x8c] ss:$16 sps:$4 sm:$0xff]  }
  0xd9   :  { %1008 = vmatprep.subr.bf16.mxu1 %v3826_v57  ;;  %v3790_v57 = vcombine.high %v178_v50, %v182_v52  ;;  %v4328_v50 = vld [vmem:[#allocation8 + $0xcc] ss:$16 sps:$4 sm:$0xff]   ;;  %v4326_v52 = vld [vmem:[#allocation8 + $0xc8] ss:$16 sps:$4 sm:$0xff]  }
  0xda   :  { %2712 = vmatpush1.bf16.msra.mxu0 %v4323_v6 }
  0xdb   :  { %2713 = vmatprep.subr.bf16.mxu0 %v4331_v10  ;;  %v4385_v10 = vld [vmem:[#allocation8 + $0x204] ss:$16 sps:$4 sm:$0xff]  }
  0xdc   :  { %1009 = vmatpush1.bf16.msra.mxu1 %v3825_v59  ;;  %v194_v59 = vld [vmem:[#allocation7 + $0x1d8] sm:$0xff] }
  0xdd   :  { %1010 = vmatprep.subr.bf16.mxu1 %v3834_v63  ;;  %v4371_v63 = vld [vmem:[#allocation8 + $0x1c0] ss:$16 sps:$4 sm:$0xff]   ;;  %v3806_v2 = vcombine.high %v194_v59, %v198_v61  ;;  %v3805_v6 = vcombine.low %v194_v59, %v198_v61  ;;  %v4352_v59 = vld [vmem:[#allocation8 + $0x14c] ss:$16 sps:$4 sm:$0xff]  }
  0xde   :  { %2714 = vmatpush1.bf16.msra.mxu0 %v4329_v12  ;;  %v4358_v61 = vld [vmem:[#allocation8 + $0x16c] ss:$16 sps:$4 sm:$0xff]  }
  0xdf   :  { %2715 = vmatprep.subr.bf16.mxu0 %v4337_v15 }
  0xe0   :  { %1011 = vmatpush1.bf16.msra.mxu1 %v3833_v1  ;;  %v202_v1 = vld [vmem:[#allocation7 + $0x218] sm:$0xff] }
  0xe1   :  { %1012 = vmatprep.subr.bf16.mxu1 %v3842_v5  ;;  %v4377_v5 = vld [vmem:[#allocation8 + $0x1e0] ss:$16 sps:$4 sm:$0xff]   ;;  %v3814_v8 = vcombine.high %v202_v1, %v206_v3 }
  0xe2   :  { %2716 = vmatpush1.bf16.msra.mxu0 %v4335_v18  ;;  %v230_v18 = vld [vmem:[#allocation7 + $0x2f8] sm:$0xff] }
  0xe3   :  { %2717 = vmatprep.subr.bf16.mxu0 %v4343_v22  ;;  %v238_v22 = vld [vmem:[#allocation7 + $0x338] sm:$0xff] }
  0xe4   :  { %1013 = vmatpush1.bf16.msra.mxu1 %v3841_v7  ;;  %v210_v7 = vld [vmem:[#allocation7 + $0x258] sm:$0xff]  ;;  %v3845_v27 = vcombine.low %v234_v21, %v238_v22 }
  0xe5   :  { %1014 = vmatprep.subr.bf16.mxu1 %v3850_v11  ;;  %v3813_v11 = vcombine.low %v202_v1, %v206_v3  ;;  %v3822_v12 = vcombine.high %v210_v7, %v214_v9  ;;  %v3821_v14 = vcombine.low %v210_v7, %v214_v9  ;;  %v4370_v1 = vld [vmem:[#allocation8 + $0x1ac] ss:$16 sps:$4 sm:$0xff]  }
  0xe6   :  { %2718 = vmatpush1.bf16.msra.mxu0 %v4341_v24  ;;  %v3846_v24 = vcombine.high %v234_v21, %v238_v22  ;;  %v4376_v3 = vld [vmem:[#allocation8 + $0x1cc] ss:$16 sps:$4 sm:$0xff]  }
  0xe7   :  { %2719 = vmatprep.subr.bf16.mxu0 %v4349_v25  ;;  %v242_v25 = vld [vmem:[#allocation7 + $0x358] sm:$0xff] }
  0xe8   :  { %1015 = vmatpush1.bf16.msra.mxu1 %v3849_v17  ;;  %v218_v17 = vld [vmem:[#allocation7 + $0x298] sm:$0xff] }
  0xe9   :  { %1016 = vmatprep.subr.bf16.mxu1 %v3858_v16  ;;  %v3830_v15 = vcombine.high %v218_v17, %v222_v13  ;;  %v226_v16 = vld [vmem:[#allocation7 + $0x2d8] sm:$0xff] }
  0xea   :  { %2720 = vmatpush1.bf16.msra.mxu0 %v4347_v30  ;;  %v3838_v20 = vcombine.high %v226_v16, %v230_v18  ;;  %v254_v30 = vld [vmem:[#allocation7 + $0x3b8] sm:$0xff] }
  0xeb   :  { %2721 = vmatprep.subr.bf16.mxu0 %v4355_v31  ;;  %v4388_v7 = vld [vmem:[#allocation8 + $0x20c] ss:$16 sps:$4 sm:$0xff]  }
  0xec   :  { %1017 = vmatpush1.bf16.msra.mxu1 %v3857_v19  ;;  %v3829_v19 = vcombine.low %v218_v17, %v222_v13 }
  0xed   :  { %1018 = vmatprep.subr.bf16.mxu1 %v3866_v23  ;;  %v3837_v23 = vcombine.low %v226_v16, %v230_v18 }
  0xee   :  { %2722 = vmatpush1.bf16.msra.mxu0 %v4353_v36  ;;  %v3870_v36 = vcombine.high %v258_v33, %v262_v34 }
  0xef   :  { %2723 = vmatprep.subr.bf16.mxu0 %v4361_v37  ;;  %v4292_v37 = vld [vmem:[#allocation8 + $0xc] ss:$16 sps:$4 sm:$0xff]  }
  0xf0   :  { %1019 = vmatpush1.bf16.msra.mxu1 %v3865_v26  ;;  %v246_v26 = vld [vmem:[#allocation7 + $0x378] sm:$0xff] }
  0xf1   :  { %1074 = vmatprep.subr.bf16.mxu1 %v3750_v29  ;;  %v3854_v28 = vcombine.high %v242_v25, %v246_v26  ;;  %v250_v29 = vld [vmem:[#allocation7 + $0x398] sm:$0xff]  ;;  %v3853_v31 = vcombine.low %v242_v25, %v246_v26 }
  0xf2   :  { %2724 = vmatpush1.bf16.msra.mxu0 %v4359_v43  ;;  %v4304_v43 = vld [vmem:[#allocation8 + $0x4c] ss:$16 sps:$4 sm:$0xff]  }
  0xf3   :  { %1021 = vmatmul.mubr.bf16.vlgmr.msra.gmra.mrb[4].mxu1 %v5121_v51  ;;  %v3774_v51 = vcombine.high %v162_v39, %v166_v40  ;;  %2725 = vmatprep.subr.bf16.mxu0 %v4367_v44  ;;  %v4290_v39 = vld [vmem:[#allocation8 + $0x8] ss:$16 sps:$4 sm:$0xff]   ;;  %v4298_v40 = vld [vmem:[#allocation8 + $0x2c] ss:$16 sps:$4 sm:$0xff]  }
  0xf4   :  { %1075 = vmatpush1.bf16.msra.mxu1 %v3749_v32  ;;  %1106 = vmatprep.mubr.bf16.mxu1 %v4783_v41  ;;  %v3862_v32 = vcombine.high %v250_v29, %v254_v30  ;;  %v4784_v41 = vld [vmem:[#allocation2] sm:$0xff]   ;;  %v4302_v44 = vld [vmem:[#allocation8 + $0x48] ss:$16 sps:$4 sm:$0xff]  }
  0xf5   :  { %1076 = vmatprep.subr.bf16.mxu1 %v3758_v35  ;;  %v3861_v35 = vcombine.low %v250_v29, %v254_v30  ;;  %v4383_v29 = vld [vmem:[#allocation8 + $0x200] ss:$16 sps:$4 sm:$0xff]   ;;  %v4386_v30 = vld [vmem:[#allocation8 + $0x208] ss:$16 sps:$4 sm:$0xff]  }
  0xf6   :  { %2726 = vmatpush1.bf16.msra.mxu0 %v4365_v48  ;;  %v4322_v48 = vld [vmem:[#allocation8 + $0xac] ss:$16 sps:$4 sm:$0xff]  }
  0xf7   :  { %2727 = vmatprep.subr.bf16.mxu0 %v4373_v62  ;;  %v4356_v62 = vld [vmem:[#allocation8 + $0x168] ss:$16 sps:$4 sm:$0xff]  }
  0xf8   :  { %1077 = vmatpush1.bf16.msra.mxu1 %v3757_v38  ;;  %v3869_v38 = vcombine.low %v258_v33, %v262_v34  ;;  %v4389_v33 = vld [vmem:[#allocation8 + $0x220] ss:$16 sps:$4 sm:$0xff]   ;;  %v4392_v34 = vld [vmem:[#allocation8 + $0x228] ss:$16 sps:$4 sm:$0xff]  }
  0xf9   :  { %1078 = vmatprep.subr.bf16.mxu1 %v3766_v42  ;;  %v4296_v42 = vld [vmem:[#allocation8 + $0x28] ss:$16 sps:$4 sm:$0xff]  }
  0xfa   :  { %2728 = vmatpush1.bf16.msra.mxu0 %v4371_v63  ;;  %v4364_v63 = vld [vmem:[#allocation8 + $0x18c] ss:$16 sps:$4 sm:$0xff]  }
  0xfb   :  { %2729 = vmatprep.subr.bf16.mxu0 %v4379_v4  ;;  %v4374_v4 = vld [vmem:[#allocation8 + $0x1c8] ss:$16 sps:$4 sm:$0xff]  }
  0xfc   :  { %1079 = vmatpush1.bf16.msra.mxu1 %v3765_v45  ;;  %v4310_v45 = vld [vmem:[#allocation8 + $0x6c] ss:$16 sps:$4 sm:$0xff]  }
  0xfd   :  { %1080 = vmatprep.subr.bf16.mxu1 %v3774_v51  ;;  %v4314_v51 = vld [vmem:[#allocation8 + $0x88] ss:$16 sps:$4 sm:$0xff]  }
  0xfe   :  { %2730 = vmatpush1.bf16.msra.mxu0 %v4377_v5  ;;  %v4382_v5 = vld [vmem:[#allocation8 + $0x1ec] ss:$16 sps:$4 sm:$0xff]  }
  0xff   :  { %2742 = vmatprep.subr.bf16.mxu0 %v4385_v10 }
 0x100   :  { %1081 = vmatpush1.bf16.msra.mxu1 %v3773_v49  ;;  %v4320_v49 = vld [vmem:[#allocation8 + $0xa8] ss:$16 sps:$4 sm:$0xff]  }
 0x101   :  { %1082 = vmatprep.subr.bf16.mxu1 %v3782_v53  ;;  %v4334_v53 = vld [vmem:[#allocation8 + $0xec] ss:$16 sps:$4 sm:$0xff]  }
 0x104   :  { %1083 = vmatpush1.bf16.msra.mxu1 %v3781_v54  ;;  %v4332_v54 = vld [vmem:[#allocation8 + $0xe8] ss:$16 sps:$4 sm:$0xff]  }
 0x105   :  { %1084 = vmatprep.subr.bf16.mxu1 %v3790_v57  ;;  %v4346_v57 = vld [vmem:[#allocation8 + $0x12c] ss:$16 sps:$4 sm:$0xff]  }
 0x108   :  { %1085 = vmatpush1.bf16.msra.mxu1 %v3789_v58  ;;  %v4344_v58 = vld [vmem:[#allocation8 + $0x128] ss:$16 sps:$4 sm:$0xff]  }
 0x109   :  { %1086 = vmatprep.subr.bf16.mxu1 %v3798_v60  ;;  %v4350_v60 = vld [vmem:[#allocation8 + $0x148] ss:$16 sps:$4 sm:$0xff]  }
 0x10c   :  { %1087 = vmatpush1.bf16.msra.mxu1 %v3797_v0  ;;  %v4362_v0 = vld [vmem:[#allocation8 + $0x188] ss:$16 sps:$4 sm:$0xff]  }
 0x10d   :  { %1088 = vmatprep.subr.bf16.mxu1 %v3806_v2  ;;  %v4368_v2 = vld [vmem:[#allocation8 + $0x1a8] ss:$16 sps:$4 sm:$0xff]  }
 0x110   :  { %1089 = vmatpush1.bf16.msra.mxu1 %v3805_v6  ;;  %v4380_v6 = vld [vmem:[#allocation8 + $0x1e8] ss:$16 sps:$4 sm:$0xff]  }
 0x111   :  { %1090 = vmatprep.subr.bf16.mxu1 %v3814_v8  ;;  %v265_v8 = vlaneseq }
 0x113   :  { %v5127_v9 = vshrl.u32 %v265_v8, 7  ;;  %v4422_v8 = vld [vmem:[#allocation8 + $0x2c8] ss:$16 sps:$4 sm:$0xff]  }
 0x114   :  { %1091 = vmatpush1.bf16.msra.mxu1 %v3813_v11  ;;  %v5135_v11 = vld [vmem:[%s5210_s3] sm:$0xff] }
 0x115   :  { %1092 = vmatprep.subr.bf16.mxu1 %v3822_v12  ;;  %v5130_v10 = vsub.s32 0, %v5127_v9  ;;  %v5138_v12 = vsub.s32 1, %v5127_v9 }
 0x117   :  { %v268_v17 = vrot.slane %v5135_v11, %v5130_v10  ;;  %v272_v13 = vrot.slane %v5135_v11, %v5138_v12 }
 0x118   :  { %1093 = vmatpush1.bf16.msra.mxu1 %v3821_v14 }
 0x119   :  { %1094 = vmatprep.subr.bf16.mxu1 %v3830_v15 }
 0x11c   :  { %1095 = vmatpush1.bf16.msra.mxu1 %v3829_v19 }
 0x11d   :  { %1096 = vmatprep.subr.bf16.mxu1 %v3838_v20 }
 0x120   :  { %1097 = vmatpush1.bf16.msra.mxu1 %v3837_v23 }
 0x121   :  { %1098 = vmatprep.subr.bf16.mxu1 %v3846_v24 }
 0x124   :  { %1099 = vmatpush1.bf16.msra.mxu1 %v3845_v27 }
 0x125   :  { %1100 = vmatprep.subr.bf16.mxu1 %v3854_v28 }
 0x128   :  { %1101 = vmatpush1.bf16.msra.mxu1 %v3853_v31  ;;  %v4391_v31 = vld [vmem:[#allocation8 + $0x224] ss:$16 sps:$4 sm:$0xff]  }
 0x129   :  { %1102 = vmatprep.subr.bf16.mxu1 %v3862_v32  ;;  %v4394_v32 = vld [vmem:[#allocation8 + $0x22c] ss:$16 sps:$4 sm:$0xff]  }
 0x12c   :  { %1103 = vmatpush1.bf16.msra.mxu1 %v3861_v35  ;;  %v4397_v35 = vld [vmem:[#allocation8 + $0x244] ss:$16 sps:$4 sm:$0xff]  }
 0x12d   :  { %1104 = vmatprep.subr.bf16.mxu1 %v3870_v36  ;;  %v4400_v36 = vld [vmem:[#allocation8 + $0x24c] ss:$16 sps:$4 sm:$0xff]  }
 0x130   :  { %1105 = vmatpush1.bf16.msra.mxu1 %v3869_v38  ;;  %v4398_v38 = vld [vmem:[#allocation8 + $0x248] ss:$16 sps:$4 sm:$0xff]  }
 0x131   :  { %2871 = vmatprep.subr.bf16.mxu1 %v4292_v37  ;;  %v4395_v37 = vld [vmem:[#allocation8 + $0x240] ss:$16 sps:$4 sm:$0xff]  }
 0x133   :  { %1107 = vmatmul.mubr.bf16.vlgmr.msra.gmra.mrb[8].mxu1 %v4784_v41  ;;  %v4406_v41 = vld [vmem:[#allocation8 + $0x26c] ss:$16 sps:$4 sm:$0xff]  }
 0x134   :  { %2872 = vmatpush1.bf16.msra.mxu1 %v4290_v39  ;;  %v283_v39 = vsub.s32 4, %v5127_v9 }
 0x135   :  { %2873 = vmatprep.subr.bf16.mxu1 %v4298_v40  ;;  %v4403_v40 = vld [vmem:[#allocation8 + $0x264] ss:$16 sps:$4 sm:$0xff]  }
 0x138   :  { %2874 = vmatpush1.bf16.msra.mxu1 %v4296_v42  ;;  %v287_v42 = vsub.s32 5, %v5127_v9 }
 0x139   :  { %2875 = vmatprep.subr.bf16.mxu1 %v4304_v43  ;;  %v4401_v43 = vld [vmem:[#allocation8 + $0x260] ss:$16 sps:$4 sm:$0xff]  }
 0x13c   :  { %2876 = vmatpush1.bf16.msra.mxu1 %v4302_v44  ;;  %v4404_v44 = vld [vmem:[#allocation8 + $0x268] ss:$16 sps:$4 sm:$0xff]  }
 0x13d   :  { %2877 = vmatprep.subr.bf16.mxu1 %v4310_v45  ;;  %v284_v45 = vrot.slane %v5135_v11, %v283_v39  ;;  %v275_v39 = vsub.s32 2, %v5127_v9 }
 0x140   :  { %2878 = vmatpush1.bf16.msra.mxu1 %v4308_v46  ;;  %v4409_v46 = vld [vmem:[#allocation8 + $0x284] ss:$16 sps:$4 sm:$0xff]  }
 0x141   :  { %2879 = vmatprep.subr.bf16.mxu1 %v4316_v47  ;;  %v4412_v47 = vld [vmem:[#allocation8 + $0x28c] ss:$16 sps:$4 sm:$0xff]  }
 0x144   :  { %2880 = vmatpush1.bf16.msra.mxu1 %v4314_v51  ;;  %v288_v51 = vrot.slane %v5135_v11, %v287_v42  ;;  %v4464_v42 = vld [vmem:[#allocation8 + $0x3a8] ss:$16 sps:$4 sm:$0xff]  }
 0x145   :  { %2881 = vmatprep.subr.bf16.mxu1 %v4322_v48 }
 0x148   :  { %2882 = vmatpush1.bf16.msra.mxu1 %v4320_v49  ;;  %v4407_v49 = vld [vmem:[#allocation8 + $0x280] ss:$16 sps:$4 sm:$0xff]  }
 0x149   :  { %2883 = vmatprep.subr.bf16.mxu1 %v4328_v50  ;;  %v4410_v50 = vld [vmem:[#allocation8 + $0x288] ss:$16 sps:$4 sm:$0xff]  }
 0x14c   :  { %2884 = vmatpush1.bf16.msra.mxu1 %v4326_v52 }
 0x14d   :  { %2885 = vmatprep.subr.bf16.mxu1 %v4334_v53 }
 0x150   :  { %2886 = vmatpush1.bf16.msra.mxu1 %v4332_v54  ;;  %v4415_v54 = vld [vmem:[#allocation8 + $0x2a4] ss:$16 sps:$4 sm:$0xff]  }
 0x151   :  { %2887 = vmatprep.subr.bf16.mxu1 %v4340_v55  ;;  %v4418_v55 = vld [vmem:[#allocation8 + $0x2ac] ss:$16 sps:$4 sm:$0xff]  }
 0x154   :  { %2888 = vmatpush1.bf16.msra.mxu1 %v4338_v56 }
 0x155   :  { %2889 = vmatprep.subr.bf16.mxu1 %v4346_v57 }
 0x158   :  { %2890 = vmatpush1.bf16.msra.mxu1 %v4344_v58 }
 0x159   :  { %2891 = vmatprep.subr.bf16.mxu1 %v4352_v59 }
 0x15c   :  { %2892 = vmatpush1.bf16.msra.mxu1 %v4350_v60 }
 0x15d   :  { %2893 = vmatprep.subr.bf16.mxu1 %v4358_v61 }
 0x160   :  { %2894 = vmatpush1.bf16.msra.mxu1 %v4356_v62 }
 0x161   :  { %2895 = vmatprep.subr.bf16.mxu1 %v4364_v63  ;;  %v4413_v63 = vld [vmem:[#allocation8 + $0x2a0] ss:$16 sps:$4 sm:$0xff]  }
 0x164   :  { %2896 = vmatpush1.bf16.msra.mxu1 %v4362_v0  ;;  %v4416_v0 = vld [vmem:[#allocation8 + $0x2a8] ss:$16 sps:$4 sm:$0xff]  }
 0x165   :  { %2897 = vmatprep.subr.bf16.mxu1 %v4370_v1 }
 0x168   :  { %2898 = vmatpush1.bf16.msra.mxu1 %v4368_v2  ;;  %v4421_v2 = vld [vmem:[#allocation8 + $0x2c4] ss:$16 sps:$4 sm:$0xff]  }
 0x169   :  { %2899 = vmatprep.subr.bf16.mxu1 %v4376_v3  ;;  %v4424_v3 = vld [vmem:[#allocation8 + $0x2cc] ss:$16 sps:$4 sm:$0xff]  }
 0x16c   :  { %2900 = vmatpush1.bf16.msra.mxu1 %v4374_v4 }
 0x16d   :  { %2901 = vmatprep.subr.bf16.mxu1 %v4382_v5 }
 0x170   :  { %2902 = vmatpush1.bf16.msra.mxu1 %v4380_v6 }
 0x171   :  { %2914 = vmatprep.subr.bf16.mxu1 %v4388_v7  ;;  %v4419_v7 = vld [vmem:[#allocation8 + $0x2c0] ss:$16 sps:$4 sm:$0xff]  }
 0x186   :  { %v979_v14 = vpop.f32.mrb[0].mxu1 }
 0x187   :  { %v980_v15 = vadd.f32 %v979_v14, %v268_v17  ;;  %v981_v16 = vpop.f32.mrb[1].mxu1  ;;  %v4425_v14 = vld [vmem:[#allocation8 + $0x2e0] ss:$16 sps:$4 sm:$0xff]  }
 0x188   :  { %v982_v18 = vadd.f32 %v981_v16, %v272_v13  ;;  %v983_v19 = vpop.f32.mrb[2].mxu1  ;;  %v4433_v16 = vld [vmem:[#allocation8 + $0x304] ss:$16 sps:$4 sm:$0xff]  }
 0x189   :  { %v984_v20 = vadd.f32 %v983_v19, %v268_v17  ;;  %v985_v21 = vpop.f32.mrb[3].mxu1  ;;  %v1117_v23 = vmax.f32 %v980_v15, 0.0  ;;  %v4427_v17 = vld [vmem:[#allocation8 + $0x2e4] ss:$16 sps:$4 sm:$0xff]   ;;  %v4428_v15 = vld [vmem:[#allocation8 + $0x2e8] ss:$16 sps:$4 sm:$0xff]  }
 0x18a   :  { %v986_v22 = vadd.f32 %v985_v21, %v272_v13  ;;  %v1118_v25 = vmax.f32 %v982_v18, 0.0  ;;  %v4430_v13 = vld [vmem:[#allocation8 + $0x2ec] ss:$16 sps:$4 sm:$0xff]   ;;  %v4431_v19 = vld [vmem:[#allocation8 + $0x300] ss:$16 sps:$4 sm:$0xff]  }
 0x18b   :  { %v1125_v24 = vmax.f32 %v984_v20, 0.0  ;;  %v4436_v18 = vld [vmem:[#allocation8 + $0x30c] ss:$16 sps:$4 sm:$0xff]   ;;  %v4434_v20 = vld [vmem:[#allocation8 + $0x308] ss:$16 sps:$4 sm:$0xff]  }
 0x18c   :  { %v1126_v26 = vmax.f32 %v986_v22, 0.0  ;;  %v4439_v21 = vld [vmem:[#allocation8 + $0x324] ss:$16 sps:$4 sm:$0xff]   ;;  %v4442_v22 = vld [vmem:[#allocation8 + $0x32c] ss:$16 sps:$4 sm:$0xff]  }
 0x18d   :  { %v1133_v27 = vpack.c.bf16 %v1125_v24, %v1117_v23  ;;  %v4437_v23 = vld [vmem:[#allocation8 + $0x320] ss:$16 sps:$4 sm:$0xff]   ;;  %v4440_v24 = vld [vmem:[#allocation8 + $0x328] ss:$16 sps:$4 sm:$0xff]  }
 0x18e   :  { %v1134_v28 = vpack.c.bf16 %v1126_v26, %v1118_v25  ;;  %v4445_v25 = vld [vmem:[#allocation8 + $0x344] ss:$16 sps:$4 sm:$0xff]   ;;  %v4448_v26 = vld [vmem:[#allocation8 + $0x34c] ss:$16 sps:$4 sm:$0xff]  }
 0x190   :  { %2731 = vmatprep.mubr.bf16.mxu0 %v1134_v28  ;;  %2903 = vmatprep.mubr.bf16.mxu1 %v1134_v28  ;;  %v4446_v28 = vld [vmem:[#allocation8 + $0x348] ss:$16 sps:$4 sm:$0xff]  }
 0x191   :  { %2732 = vmatmul.mubr.bf16.vlgmr.msra.gmra.mrb[4].mxu0 %v1133_v27  ;;  %2904 = vmatmul.mubr.bf16.vlgmr.msra.gmra.mrb[12].mxu1 %v1133_v27  ;;  %v4443_v27 = vld [vmem:[#allocation8 + $0x340] ss:$16 sps:$4 sm:$0xff]  }
 0x192   :  { %2743 = vmatpush1.bf16.msra.mxu0 %v4383_v29  ;;  %2915 = vmatpush1.bf16.msra.mxu1 %v4386_v30  ;;  %v4451_v29 = vld [vmem:[#allocation8 + $0x364] ss:$16 sps:$4 sm:$0xff]   ;;  %v4454_v30 = vld [vmem:[#allocation8 + $0x36c] ss:$16 sps:$4 sm:$0xff]  }
 0x193   :  { %2744 = vmatprep.subr.bf16.mxu0 %v4391_v31  ;;  %2916 = vmatprep.subr.bf16.mxu1 %v4394_v32  ;;  %v4449_v31 = vld [vmem:[#allocation8 + $0x360] ss:$16 sps:$4 sm:$0xff]   ;;  %v4452_v32 = vld [vmem:[#allocation8 + $0x368] ss:$16 sps:$4 sm:$0xff]  }
 0x194   :  { %v1065_v48 = vpop.f32.mrb[0].mxu0 }
 0x195   :  { %v1066_v52 = vadd.f32 %v1065_v48, %v284_v45  ;;  %v1067_v53 = vpop.f32.mrb[1].mxu0  ;;  %v4470_v48 = vld [vmem:[#allocation8 + $0x3c8] ss:$16 sps:$4 sm:$0xff]  }
 0x196   :  { %2745 = vmatpush1.bf16.msra.mxu0 %v4389_v33  ;;  %2917 = vmatpush1.bf16.msra.mxu1 %v4392_v34  ;;  %v1068_v56 = vadd.f32 %v1067_v53, %v288_v51  ;;  %v1069_v57 = vpop.f32.mrb[2].mxu0  ;;  %v4457_v33 = vld [vmem:[#allocation8 + $0x384] ss:$16 sps:$4 sm:$0xff]   ;;  %v4460_v34 = vld [vmem:[#allocation8 + $0x38c] ss:$16 sps:$4 sm:$0xff]  }
 0x197   :  { %2746 = vmatprep.subr.bf16.mxu0 %v4397_v35  ;;  %2918 = vmatprep.subr.bf16.mxu1 %v4400_v36  ;;  %v1121_v58 = vmax.f32 %v1066_v52, 0.0  ;;  %v1070_v59 = vadd.f32 %v1069_v57, %v284_v45  ;;  %v1071_v60 = vpop.f32.mrb[3].mxu0  ;;  %v4455_v35 = vld [vmem:[#allocation8 + $0x380] ss:$16 sps:$4 sm:$0xff]   ;;  %v4458_v36 = vld [vmem:[#allocation8 + $0x388] ss:$16 sps:$4 sm:$0xff]  }
 0x198   :  { %v1122_v61 = vmax.f32 %v1068_v56, 0.0  ;;  %v1072_v62 = vadd.f32 %v1071_v60, %v288_v51  ;;  %v4472_v45 = vld [vmem:[#allocation8 + $0x3cc] ss:$16 sps:$4 sm:$0xff]   ;;  %v4467_v51 = vld [vmem:[#allocation8 + $0x3c0] ss:$16 sps:$4 sm:$0xff]  }
 0x199   :  { %v1129_v1 = vmax.f32 %v1070_v59, 0.0  ;;  %v4475_v52 = vld [vmem:[#allocation8 + $0x3e4] ss:$16 sps:$4 sm:$0xff]   ;;  %v4478_v53 = vld [vmem:[#allocation8 + $0x3ec] ss:$16 sps:$4 sm:$0xff]  }
 0x19a   :  { %2747 = vmatpush1.bf16.msra.mxu0 %v4395_v37  ;;  %2919 = vmatpush1.bf16.msra.mxu1 %v4398_v38  ;;  %v1130_v4 = vmax.f32 %v1072_v62, 0.0  ;;  %v4463_v37 = vld [vmem:[#allocation8 + $0x3a4] ss:$16 sps:$4 sm:$0xff]   ;;  %v4466_v38 = vld [vmem:[#allocation8 + $0x3ac] ss:$16 sps:$4 sm:$0xff]  }
 0x19b   :  { %2748 = vmatprep.subr.bf16.mxu0 %v4403_v40  ;;  %2920 = vmatprep.subr.bf16.mxu1 %v4406_v41  ;;  %v5148_v5 = vpack.c.bf16 %v1129_v1, %v1121_v58  ;;  %v279_v40 = vsub.s32 3, %v5127_v9  ;;  %v4461_v41 = vld [vmem:[#allocation8 + $0x3a0] ss:$16 sps:$4 sm:$0xff]   ;;  %v4476_v60 = vld [vmem:[#allocation8 + $0x3e8] ss:$16 sps:$4 sm:$0xff]  }
 0x19c   :  { %v5150_v6 = vpack.c.bf16 %v1130_v4, %v1122_v61  ;;  %v4473_v59 = vld [vmem:[#allocation8 + $0x3e0] ss:$16 sps:$4 sm:$0xff]  }
 0x19e   :  { %2749 = vmatpush1.bf16.msra.mxu0 %v4401_v43  ;;  %2921 = vmatpush1.bf16.msra.mxu1 %v4404_v44  ;;  %v276_v43 = vrot.slane %v5135_v11, %v275_v39  ;;  %v4469_v44 = vld [vmem:[#allocation8 + $0x3c4] ss:$16 sps:$4 sm:$0xff]  }
 0x19f   :  { %2750 = vmatprep.subr.bf16.mxu0 %v4409_v46  ;;  %2922 = vmatprep.subr.bf16.mxu1 %v4412_v47  ;;  %v280_v46 = vrot.slane %v5135_v11, %v279_v40 }
 0x1a2   :  { %2751 = vmatpush1.bf16.msra.mxu0 %v4407_v49  ;;  %2923 = vmatpush1.bf16.msra.mxu1 %v4410_v50 }
 0x1a3   :  { %2752 = vmatprep.subr.bf16.mxu0 %v4415_v54  ;;  %2924 = vmatprep.subr.bf16.mxu1 %v4418_v55 }
 0x1a6   :  { %2753 = vmatpush1.bf16.msra.mxu0 %v4413_v63  ;;  %2925 = vmatpush1.bf16.msra.mxu1 %v4416_v0  ;;  %v4481_v63 = vld [vmem:[#allocation8 + $0x404] ss:$16 sps:$4 sm:$0xff]   ;;  %v4484_v0 = vld [vmem:[#allocation8 + $0x40c] ss:$16 sps:$4 sm:$0xff]  }
 0x1a7   :  { %2754 = vmatprep.subr.bf16.mxu0 %v4421_v2  ;;  %2926 = vmatprep.subr.bf16.mxu1 %v4424_v3 }
 0x1aa   :  { %2755 = vmatpush1.bf16.msra.mxu0 %v4419_v7  ;;  %2927 = vmatpush1.bf16.msra.mxu1 %v4422_v8  ;;  %v4479_v7 = vld [vmem:[#allocation8 + $0x400] ss:$16 sps:$4 sm:$0xff]   ;;  %v4482_v8 = vld [vmem:[#allocation8 + $0x408] ss:$16 sps:$4 sm:$0xff]  }
 0x1ab   :  { %2756 = vmatprep.subr.bf16.mxu0 %v4427_v17  ;;  %2928 = vmatprep.subr.bf16.mxu1 %v4430_v13  ;;  %v4487_v17 = vld [vmem:[#allocation8 + $0x424] ss:$16 sps:$4 sm:$0xff]   ;;  %v4490_v13 = vld [vmem:[#allocation8 + $0x42c] ss:$16 sps:$4 sm:$0xff]  }
 0x1ae   :  { %2757 = vmatpush1.bf16.msra.mxu0 %v4425_v14  ;;  %2929 = vmatpush1.bf16.msra.mxu1 %v4428_v15  ;;  %v4485_v14 = vld [vmem:[#allocation8 + $0x420] ss:$16 sps:$4 sm:$0xff]   ;;  %v4488_v15 = vld [vmem:[#allocation8 + $0x428] ss:$16 sps:$4 sm:$0xff]  }
 0x1af   :  { %2758 = vmatprep.subr.bf16.mxu0 %v4433_v16  ;;  %2930 = vmatprep.subr.bf16.mxu1 %v4436_v18  ;;  %v4493_v16 = vld [vmem:[#allocation8 + $0x444] ss:$16 sps:$4 sm:$0xff]   ;;  %v4496_v18 = vld [vmem:[#allocation8 + $0x44c] ss:$16 sps:$4 sm:$0xff]  }
 0x1b2   :  { %2759 = vmatpush1.bf16.msra.mxu0 %v4431_v19  ;;  %2931 = vmatpush1.bf16.msra.mxu1 %v4434_v20  ;;  %v4491_v19 = vld [vmem:[#allocation8 + $0x440] ss:$16 sps:$4 sm:$0xff]   ;;  %v4494_v20 = vld [vmem:[#allocation8 + $0x448] ss:$16 sps:$4 sm:$0xff]  }
 0x1b3   :  { %2760 = vmatprep.subr.bf16.mxu0 %v4439_v21  ;;  %2932 = vmatprep.subr.bf16.mxu1 %v4442_v22  ;;  %v4499_v21 = vld [vmem:[#allocation8 + $0x464] ss:$16 sps:$4 sm:$0xff]   ;;  %v4502_v22 = vld [vmem:[#allocation8 + $0x46c] ss:$16 sps:$4 sm:$0xff]  }
 0x1b6   :  { %2761 = vmatpush1.bf16.msra.mxu0 %v4437_v23  ;;  %2933 = vmatpush1.bf16.msra.mxu1 %v4440_v24  ;;  %v4497_v23 = vld [vmem:[#allocation8 + $0x460] ss:$16 sps:$4 sm:$0xff]   ;;  %v4500_v24 = vld [vmem:[#allocation8 + $0x468] ss:$16 sps:$4 sm:$0xff]  }
 0x1b7   :  { %2762 = vmatprep.subr.bf16.mxu0 %v4445_v25  ;;  %2934 = vmatprep.subr.bf16.mxu1 %v4448_v26  ;;  %v4505_v25 = vld [vmem:[#allocation8 + $0x484] ss:$16 sps:$4 sm:$0xff]   ;;  %v4508_v26 = vld [vmem:[#allocation8 + $0x48c] ss:$16 sps:$4 sm:$0xff]  }
 0x1ba   :  { %2763 = vmatpush1.bf16.msra.mxu0 %v4443_v27  ;;  %2935 = vmatpush1.bf16.msra.mxu1 %v4446_v28  ;;  %v4503_v27 = vld [vmem:[#allocation8 + $0x480] ss:$16 sps:$4 sm:$0xff]   ;;  %v4511_v28 = vld [vmem:[#allocation8 + $0x4a4] ss:$16 sps:$4 sm:$0xff]  }
 0x1bb   :  { %2764 = vmatprep.subr.bf16.mxu0 %v4451_v29  ;;  %2936 = vmatprep.subr.bf16.mxu1 %v4454_v30  ;;  %v4514_v29 = vld [vmem:[#allocation8 + $0x4ac] ss:$16 sps:$4 sm:$0xff]   ;;  %v4509_v30 = vld [vmem:[#allocation8 + $0x4a0] ss:$16 sps:$4 sm:$0xff]  }
 0x1be   :  { %2765 = vmatpush1.bf16.msra.mxu0 %v4449_v31  ;;  %2937 = vmatpush1.bf16.msra.mxu1 %v4452_v32  ;;  %v4512_v31 = vld [vmem:[#allocation8 + $0x4a8] ss:$16 sps:$4 sm:$0xff]   ;;  %v4517_v32 = vld [vmem:[#allocation8 + $0x4c4] ss:$16 sps:$4 sm:$0xff]  }
 0x1bf   :  { %2766 = vmatprep.subr.bf16.mxu0 %v4457_v33  ;;  %2938 = vmatprep.subr.bf16.mxu1 %v4460_v34  ;;  %v4520_v33 = vld [vmem:[#allocation8 + $0x4cc] ss:$16 sps:$4 sm:$0xff]   ;;  %v4515_v34 = vld [vmem:[#allocation8 + $0x4c0] ss:$16 sps:$4 sm:$0xff]  }
 0x1c2   :  { %2767 = vmatpush1.bf16.msra.mxu0 %v4455_v35  ;;  %2939 = vmatpush1.bf16.msra.mxu1 %v4458_v36  ;;  %v4518_v35 = vld [vmem:[#allocation8 + $0x4c8] ss:$16 sps:$4 sm:$0xff]   ;;  %v4523_v36 = vld [vmem:[#allocation8 + $0x4e4] ss:$16 sps:$4 sm:$0xff]  }
 0x1c3   :  { %2768 = vmatprep.subr.bf16.mxu0 %v4463_v37  ;;  %2940 = vmatprep.subr.bf16.mxu1 %v4466_v38  ;;  %v4526_v37 = vld [vmem:[#allocation8 + $0x4ec] ss:$16 sps:$4 sm:$0xff]   ;;  %v4521_v38 = vld [vmem:[#allocation8 + $0x4e0] ss:$16 sps:$4 sm:$0xff]  }
 0x1c6   :  { %2769 = vmatpush1.bf16.msra.mxu0 %v4461_v41  ;;  %2941 = vmatpush1.bf16.msra.mxu1 %v4464_v42  ;;  %v1022_v47 = vpop.f32.mrb[4].mxu1  ;;  %v4524_v41 = vld [vmem:[#allocation8 + $0x4e8] ss:$16 sps:$4 sm:$0xff]   ;;  %v4529_v42 = vld [vmem:[#allocation8 + $0x504] ss:$16 sps:$4 sm:$0xff]  }
 0x1c7   :  { %v1023_v49 = vadd.f32 %v1022_v47, %v276_v43  ;;  %v1024_v50 = vpop.f32.mrb[5].mxu1  ;;  %2770 = vmatprep.subr.bf16.mxu0 %v4469_v44  ;;  %2942 = vmatprep.subr.bf16.mxu1 %v4472_v45  ;;  %v4527_v44 = vld [vmem:[#allocation8 + $0x500] ss:$16 sps:$4 sm:$0xff]   ;;  %v4530_v45 = vld [vmem:[#allocation8 + $0x508] ss:$16 sps:$4 sm:$0xff]  }
 0x1c8   :  { %v1025_v54 = vadd.f32 %v1024_v50, %v280_v46  ;;  %v1026_v55 = vpop.f32.mrb[6].mxu1  ;;  %v4538_v47 = vld [vmem:[#allocation8 + $0x52c] ss:$16 sps:$4 sm:$0xff]  }
 0x1c9   :  { %v1027_v56 = vadd.f32 %v1026_v55, %v276_v43  ;;  %v1028_v57 = vpop.f32.mrb[7].mxu1  ;;  %v1119_v61 = vmax.f32 %v1023_v49, 0.0  ;;  %v4532_v43 = vld [vmem:[#allocation8 + $0x50c] ss:$16 sps:$4 sm:$0xff]   ;;  %v4541_v49 = vld [vmem:[#allocation8 + $0x544] ss:$16 sps:$4 sm:$0xff]  }
 0x1ca   :  { %v1029_v58 = vadd.f32 %v1028_v57, %v280_v46  ;;  %2771 = vmatpush1.bf16.msra.mxu0 %v4467_v51  ;;  %2943 = vmatpush1.bf16.msra.mxu1 %v4470_v48  ;;  %v1120_v1 = vmax.f32 %v1025_v54, 0.0  ;;  %v4535_v46 = vld [vmem:[#allocation8 + $0x524] ss:$16 sps:$4 sm:$0xff]   ;;  %v4533_v51 = vld [vmem:[#allocation8 + $0x520] ss:$16 sps:$4 sm:$0xff]  }
 0x1cb   :  { %v1127_v62 = vmax.f32 %v1027_v56, 0.0  ;;  %2772 = vmatprep.subr.bf16.mxu0 %v4475_v52  ;;  %2944 = vmatprep.subr.bf16.mxu1 %v4478_v53  ;;  %v4536_v48 = vld [vmem:[#allocation8 + $0x528] ss:$16 sps:$4 sm:$0xff]   ;;  %v4544_v50 = vld [vmem:[#allocation8 + $0x54c] ss:$16 sps:$4 sm:$0xff]  }
 0x1cc   :  { %v1128_v2 = vmax.f32 %v1029_v58, 0.0  ;;  %v4539_v52 = vld [vmem:[#allocation8 + $0x540] ss:$16 sps:$4 sm:$0xff]   ;;  %v4542_v53 = vld [vmem:[#allocation8 + $0x548] ss:$16 sps:$4 sm:$0xff]  }
 0x1cd   :  { %v1135_v3 = vpack.c.bf16 %v1127_v62, %v1119_v61  ;;  %v4547_v54 = vld [vmem:[#allocation8 + $0x564] ss:$16 sps:$4 sm:$0xff]   ;;  %v4550_v55 = vld [vmem:[#allocation8 + $0x56c] ss:$16 sps:$4 sm:$0xff]   ;;  %v4545_v56 = vld [vmem:[#allocation8 + $0x560] ss:$16 sps:$4 sm:$0xff]  }
 0x1ce   :  { %v1136_v4 = vpack.c.bf16 %v1128_v2, %v1120_v1  ;;  %2773 = vmatpush1.bf16.msra.mxu0 %v4473_v59  ;;  %2945 = vmatpush1.bf16.msra.mxu1 %v4476_v60  ;;  %v4548_v57 = vld [vmem:[#allocation8 + $0x568] ss:$16 sps:$4 sm:$0xff]   ;;  %v4553_v58 = vld [vmem:[#allocation8 + $0x584] ss:$16 sps:$4 sm:$0xff]   ;;  %v4556_v59 = vld [vmem:[#allocation8 + $0x58c] ss:$16 sps:$4 sm:$0xff]  }
 0x1cf   :  { %2785 = vmatprep.subr.bf16.mxu0 %v4481_v63  ;;  %2957 = vmatprep.subr.bf16.mxu1 %v4484_v0  ;;  %v4551_v60 = vld [vmem:[#allocation8 + $0x580] ss:$16 sps:$4 sm:$0xff]   ;;  %v4554_v61 = vld [vmem:[#allocation8 + $0x588] ss:$16 sps:$4 sm:$0xff]   ;;  %v4559_v62 = vld [vmem:[#allocation8 + $0x5a4] ss:$16 sps:$4 sm:$0xff]  }
 0x1d0   :  { %2774 = vmatprep.mubr.bf16.mxu0 %v1136_v4  ;;  %2946 = vmatprep.mubr.bf16.mxu1 %v1136_v4  ;;  %v4562_v63 = vld [vmem:[#allocation8 + $0x5ac] ss:$16 sps:$4 sm:$0xff]   ;;  %v291_v0 = vsub.s32 6, %v5127_v9  ;;  %v295_v1 = vsub.s32 7, %v5127_v9  ;;  %v4557_v2 = vld [vmem:[#allocation8 + $0x5a0] ss:$16 sps:$4 sm:$0xff]  }
 0x1d1   :  { %2775 = vmatmul.mubr.bf16.vlgmr.msra.gmra.mrb[4].mxu0 %v1135_v3  ;;  %2947 = vmatmul.mubr.bf16.vlgmr.msra.gmra.mrb[12].mxu1 %v1135_v3  ;;  %v4560_v3 = vld [vmem:[#allocation8 + $0x5a8] ss:$16 sps:$4 sm:$0xff]   ;;  %v4565_v4 = vld [vmem:[#allocation8 + $0x5c4] ss:$16 sps:$4 sm:$0xff]  }
 0x1d2   :  { %2786 = vmatpush1.bf16.msra.mxu0 %v4479_v7  ;;  %2958 = vmatpush1.bf16.msra.mxu1 %v4482_v8  ;;  %v4568_v7 = vld [vmem:[#allocation8 + $0x5cc] ss:$16 sps:$4 sm:$0xff]   ;;  %v292_v8 = vrot.slane %v5135_v11, %v291_v0  ;;  %v4620_v0 = vld [vmem:[#allocation8 + $0x6e8] ss:$16 sps:$4 sm:$0xff]  }
 0x1d3   :  { %2787 = vmatprep.subr.bf16.mxu0 %v4487_v17  ;;  %2959 = vmatprep.subr.bf16.mxu1 %v4490_v13  ;;  %v296_v17 = vrot.slane %v5135_v11, %v295_v1  ;;  %v4563_v13 = vld [vmem:[#allocation8 + $0x5c0] ss:$16 sps:$4 sm:$0xff]   ;;  %v4572_v11 = vld [vmem:[#allocation8 + $0x5e8] ss:$16 sps:$4 sm:$0xff]   ;;  %v4625_v1 = vld [vmem:[#allocation8 + $0x704] ss:$16 sps:$4 sm:$0xff]  }
 0x1d4   :  { %2817 = vmatprep.mubr.bf16.mxu0 %v5150_v6  ;;  %2989 = vmatprep.mubr.bf16.mxu1 %v5150_v6  ;;  %v4506_v6 = vld [vmem:[#allocation8 + $0x488] ss:$16 sps:$4 sm:$0xff]  }
 0x1d6   :  { %2788 = vmatpush1.bf16.msra.mxu0 %v4485_v14  ;;  %2960 = vmatpush1.bf16.msra.mxu1 %v4488_v15  ;;  %v4566_v14 = vld [vmem:[#allocation8 + $0x5c8] ss:$16 sps:$4 sm:$0xff]  }
 0x1d7   :  { %2789 = vmatprep.subr.bf16.mxu0 %v4493_v16  ;;  %2961 = vmatprep.subr.bf16.mxu1 %v4496_v18  ;;  %v4571_v16 = vld [vmem:[#allocation8 + $0x5e4] ss:$16 sps:$4 sm:$0xff]   ;;  %v4574_v18 = vld [vmem:[#allocation8 + $0x5ec] ss:$16 sps:$4 sm:$0xff]  }
 0x1da   :  { %2790 = vmatpush1.bf16.msra.mxu0 %v4491_v19  ;;  %2962 = vmatpush1.bf16.msra.mxu1 %v4494_v20 }
 0x1db   :  { %2791 = vmatprep.subr.bf16.mxu0 %v4499_v21  ;;  %2963 = vmatprep.subr.bf16.mxu1 %v4502_v22 }
 0x1de   :  { %2792 = vmatpush1.bf16.msra.mxu0 %v4497_v23  ;;  %2964 = vmatpush1.bf16.msra.mxu1 %v4500_v24 }
 0x1df   :  { %2793 = vmatprep.subr.bf16.mxu0 %v4505_v25  ;;  %2965 = vmatprep.subr.bf16.mxu1 %v4508_v26  ;;  %v4569_v26 = vld [vmem:[#allocation8 + $0x5e0] ss:$16 sps:$4 sm:$0xff]  }
 0x1e2   :  { %2794 = vmatpush1.bf16.msra.mxu0 %v4503_v27  ;;  %2966 = vmatpush1.bf16.msra.mxu1 %v4506_v6 }
 0x1e3   :  { %2795 = vmatprep.subr.bf16.mxu0 %v4511_v28  ;;  %2967 = vmatprep.subr.bf16.mxu1 %v4514_v29  ;;  %v4577_v28 = vld [vmem:[#allocation8 + $0x604] ss:$16 sps:$4 sm:$0xff]   ;;  %v4580_v29 = vld [vmem:[#allocation8 + $0x60c] ss:$16 sps:$4 sm:$0xff]  }
 0x1e6   :  { %2796 = vmatpush1.bf16.msra.mxu0 %v4509_v30  ;;  %2968 = vmatpush1.bf16.msra.mxu1 %v4512_v31 }
 0x1e7   :  { %2797 = vmatprep.subr.bf16.mxu0 %v4517_v32  ;;  %2969 = vmatprep.subr.bf16.mxu1 %v4520_v33  ;;  %v4575_v33 = vld [vmem:[#allocation8 + $0x600] ss:$16 sps:$4 sm:$0xff]  }
 0x1ea   :  { %2798 = vmatpush1.bf16.msra.mxu0 %v4515_v34  ;;  %2970 = vmatpush1.bf16.msra.mxu1 %v4518_v35  ;;  %v4578_v34 = vld [vmem:[#allocation8 + $0x608] ss:$16 sps:$4 sm:$0xff]  }
 0x1eb   :  { %2799 = vmatprep.subr.bf16.mxu0 %v4523_v36  ;;  %2971 = vmatprep.subr.bf16.mxu1 %v4526_v37  ;;  %v4583_v36 = vld [vmem:[#allocation8 + $0x624] ss:$16 sps:$4 sm:$0xff]   ;;  %v4586_v37 = vld [vmem:[#allocation8 + $0x62c] ss:$16 sps:$4 sm:$0xff]  }
 0x1ee   :  { %2800 = vmatpush1.bf16.msra.mxu0 %v4521_v38  ;;  %2972 = vmatpush1.bf16.msra.mxu1 %v4524_v41  ;;  %v4581_v38 = vld [vmem:[#allocation8 + $0x620] ss:$16 sps:$4 sm:$0xff]   ;;  %v4584_v41 = vld [vmem:[#allocation8 + $0x628] ss:$16 sps:$4 sm:$0xff]  }
 0x1ef   :  { %2801 = vmatprep.subr.bf16.mxu0 %v4529_v42  ;;  %2973 = vmatprep.subr.bf16.mxu1 %v4532_v43  ;;  %v4589_v42 = vld [vmem:[#allocation8 + $0x644] ss:$16 sps:$4 sm:$0xff]   ;;  %v4592_v43 = vld [vmem:[#allocation8 + $0x64c] ss:$16 sps:$4 sm:$0xff]  }
 0x1f2   :  { %2802 = vmatpush1.bf16.msra.mxu0 %v4527_v44  ;;  %2974 = vmatpush1.bf16.msra.mxu1 %v4530_v45  ;;  %v4587_v44 = vld [vmem:[#allocation8 + $0x640] ss:$16 sps:$4 sm:$0xff]   ;;  %v4590_v45 = vld [vmem:[#allocation8 + $0x648] ss:$16 sps:$4 sm:$0xff]  }
 0x1f3   :  { %2803 = vmatprep.subr.bf16.mxu0 %v4535_v46  ;;  %2975 = vmatprep.subr.bf16.mxu1 %v4538_v47  ;;  %v4595_v46 = vld [vmem:[#allocation8 + $0x664] ss:$16 sps:$4 sm:$0xff]   ;;  %v4598_v47 = vld [vmem:[#allocation8 + $0x66c] ss:$16 sps:$4 sm:$0xff]  }
 0x1f6   :  { %2804 = vmatpush1.bf16.msra.mxu0 %v4533_v51  ;;  %2976 = vmatpush1.bf16.msra.mxu1 %v4536_v48  ;;  %v4596_v51 = vld [vmem:[#allocation8 + $0x668] ss:$16 sps:$4 sm:$0xff]   ;;  %v4601_v48 = vld [vmem:[#allocation8 + $0x684] ss:$16 sps:$4 sm:$0xff]  }
 0x1f7   :  { %2805 = vmatprep.subr.bf16.mxu0 %v4541_v49  ;;  %2977 = vmatprep.subr.bf16.mxu1 %v4544_v50  ;;  %v4604_v49 = vld [vmem:[#allocation8 + $0x68c] ss:$16 sps:$4 sm:$0xff]   ;;  %v4599_v50 = vld [vmem:[#allocation8 + $0x680] ss:$16 sps:$4 sm:$0xff]  }
 0x1fa   :  { %2806 = vmatpush1.bf16.msra.mxu0 %v4539_v52  ;;  %2978 = vmatpush1.bf16.msra.mxu1 %v4542_v53  ;;  %v4602_v52 = vld [vmem:[#allocation8 + $0x688] ss:$16 sps:$4 sm:$0xff]   ;;  %v4607_v53 = vld [vmem:[#allocation8 + $0x6a4] ss:$16 sps:$4 sm:$0xff]  }
 0x1fb   :  { %2807 = vmatprep.subr.bf16.mxu0 %v4547_v54  ;;  %2979 = vmatprep.subr.bf16.mxu1 %v4550_v55  ;;  %v4610_v54 = vld [vmem:[#allocation8 + $0x6ac] ss:$16 sps:$4 sm:$0xff]   ;;  %v4605_v55 = vld [vmem:[#allocation8 + $0x6a0] ss:$16 sps:$4 sm:$0xff]  }
 0x1fe   :  { %2808 = vmatpush1.bf16.msra.mxu0 %v4545_v56  ;;  %2980 = vmatpush1.bf16.msra.mxu1 %v4548_v57  ;;  %v4608_v56 = vld [vmem:[#allocation8 + $0x6a8] ss:$16 sps:$4 sm:$0xff]   ;;  %v4613_v57 = vld [vmem:[#allocation8 + $0x6c4] ss:$16 sps:$4 sm:$0xff]  }
 0x1ff   :  { %2809 = vmatprep.subr.bf16.mxu0 %v4553_v58  ;;  %2981 = vmatprep.subr.bf16.mxu1 %v4556_v59  ;;  %v4616_v58 = vld [vmem:[#allocation8 + $0x6cc] ss:$16 sps:$4 sm:$0xff]   ;;  %v4611_v59 = vld [vmem:[#allocation8 + $0x6c0] ss:$16 sps:$4 sm:$0xff]  }
 0x202   :  { %2810 = vmatpush1.bf16.msra.mxu0 %v4551_v60  ;;  %2982 = vmatpush1.bf16.msra.mxu1 %v4554_v61  ;;  %v4614_v60 = vld [vmem:[#allocation8 + $0x6c8] ss:$16 sps:$4 sm:$0xff]   ;;  %v4619_v61 = vld [vmem:[#allocation8 + $0x6e4] ss:$16 sps:$4 sm:$0xff]  }
 0x203   :  { %2811 = vmatprep.subr.bf16.mxu0 %v4559_v62  ;;  %2983 = vmatprep.subr.bf16.mxu1 %v4562_v63  ;;  %v4622_v62 = vld [vmem:[#allocation8 + $0x6ec] ss:$16 sps:$4 sm:$0xff]   ;;  %v4617_v63 = vld [vmem:[#allocation8 + $0x6e0] ss:$16 sps:$4 sm:$0xff]  }
 0x206   :  { %2812 = vmatpush1.bf16.msra.mxu0 %v4557_v2  ;;  %2984 = vmatpush1.bf16.msra.mxu1 %v4560_v3  ;;  %v1108_v15 = vpop.f32.mrb[8].mxu1  ;;  %v4628_v2 = vld [vmem:[#allocation8 + $0x70c] ss:$16 sps:$4 sm:$0xff]   ;;  %v4623_v3 = vld [vmem:[#allocation8 + $0x700] ss:$16 sps:$4 sm:$0xff]  }
 0x207   :  { %2813 = vmatprep.subr.bf16.mxu0 %v4565_v4  ;;  %2985 = vmatprep.subr.bf16.mxu1 %v4568_v7  ;;  %v1109_v19 = vadd.f32 %v1108_v15, %v292_v8  ;;  %v1110_v20 = vpop.f32.mrb[9].mxu1  ;;  %v4626_v4 = vld [vmem:[#allocation8 + $0x708] ss:$16 sps:$4 sm:$0xff]   ;;  %v4631_v7 = vld [vmem:[#allocation8 + $0x724] ss:$16 sps:$4 sm:$0xff]  }
 0x208   :  { %v1111_v21 = vadd.f32 %v1110_v20, %v296_v17  ;;  %v1112_v22 = vpop.f32.mrb[10].mxu1  ;;  %v4640_v15 = vld [vmem:[#allocation8 + $0x74c] ss:$16 sps:$4 sm:$0xff]  }
 0x209   :  { %v1123_v23 = vmax.f32 %v1109_v19, 0.0  ;;  %v1113_v24 = vadd.f32 %v1112_v22, %v292_v8  ;;  %v1114_v25 = vpop.f32.mrb[11].mxu1  ;;  %v4634_v8 = vld [vmem:[#allocation8 + $0x72c] ss:$16 sps:$4 sm:$0xff]   ;;  %v4643_v19 = vld [vmem:[#allocation8 + $0x764] ss:$16 sps:$4 sm:$0xff]  }
 0x20a   :  { %2814 = vmatpush1.bf16.msra.mxu0 %v4563_v13  ;;  %2986 = vmatpush1.bf16.msra.mxu1 %v4566_v14  ;;  %v1124_v27 = vmax.f32 %v1111_v21, 0.0  ;;  %v1115_v6 = vadd.f32 %v1114_v25, %v296_v17  ;;  %v4629_v17 = vld [vmem:[#allocation8 + $0x720] ss:$16 sps:$4 sm:$0xff]   ;;  %v4632_v13 = vld [vmem:[#allocation8 + $0x728] ss:$16 sps:$4 sm:$0xff]  }
 0x20b   :  { %2815 = vmatprep.subr.bf16.mxu0 %v4571_v16  ;;  %2987 = vmatprep.subr.bf16.mxu1 %v4574_v18  ;;  %v1131_v30 = vmax.f32 %v1113_v24, 0.0  ;;  %v4637_v14 = vld [vmem:[#allocation8 + $0x744] ss:$16 sps:$4 sm:$0xff]   ;;  %v4635_v16 = vld [vmem:[#allocation8 + $0x740] ss:$16 sps:$4 sm:$0xff]  }
 0x20c   :  { %v1132_v31 = vmax.f32 %v1115_v6, 0.0  ;;  %v4638_v18 = vld [vmem:[#allocation8 + $0x748] ss:$16 sps:$4 sm:$0xff]   ;;  %v4646_v20 = vld [vmem:[#allocation8 + $0x76c] ss:$16 sps:$4 sm:$0xff]  }
 0x20d   :  { %v5166_v32 = vpack.c.bf16 %v1131_v30, %v1123_v23  ;;  %v4641_v21 = vld [vmem:[#allocation8 + $0x760] ss:$16 sps:$4 sm:$0xff]   ;;  %v4644_v22 = vld [vmem:[#allocation8 + $0x768] ss:$16 sps:$4 sm:$0xff]   ;;  %v4649_v23 = vld [vmem:[#allocation8 + $0x784] ss:$16 sps:$4 sm:$0xff]  }
 0x20e   :  { %2816 = vmatpush1.bf16.msra.mxu0 %v4569_v26  ;;  %2988 = vmatpush1.bf16.msra.mxu1 %v4572_v11  ;;  %v1140_v35 = vpack.c.bf16 %v1132_v31, %v1124_v27  ;;  %v4652_v24 = vld [vmem:[#allocation8 + $0x78c] ss:$16 sps:$4 sm:$0xff]   ;;  %v4647_v25 = vld [vmem:[#allocation8 + $0x780] ss:$16 sps:$4 sm:$0xff]   ;;  %v4650_v26 = vld [vmem:[#allocation8 + $0x788] ss:$16 sps:$4 sm:$0xff]  }
 0x20f   :  { %2828 = vmatprep.subr.bf16.mxu0 %v4577_v28  ;;  %3000 = vmatprep.subr.bf16.mxu1 %v4580_v29  ;;  %v4655_v11 = vld [vmem:[#allocation8 + $0x7a4] ss:$16 sps:$4 sm:$0xff]   ;;  %v4658_v27 = vld [vmem:[#allocation8 + $0x7ac] ss:$16 sps:$4 sm:$0xff]   ;;  %v4653_v6 = vld [vmem:[#allocation8 + $0x7a0] ss:$16 sps:$4 sm:$0xff]  }
 0x210   :  { %v4656_v28 = vld [vmem:[#allocation8 + $0x7a8] ss:$16 sps:$4 sm:$0xff]   ;;  %v4661_v29 = vld [vmem:[#allocation8 + $0x7c4] ss:$16 sps:$4 sm:$0xff]   ;;  %v4664_v30 = vld [vmem:[#allocation8 + $0x7cc] ss:$16 sps:$4 sm:$0xff]  }
 0x211   :  { %2818 = vmatmul.mubr.bf16.vlgmr.msra.gmra.mrb[4].mxu0 %v5148_v5  ;;  %2990 = vmatmul.mubr.bf16.vlgmr.msra.gmra.mrb[12].mxu1 %v5148_v5  ;;  %v4593_v5 = vld [vmem:[#allocation8 + $0x660] ss:$16 sps:$4 sm:$0xff]  }
 0x212   :  { %2829 = vmatpush1.bf16.msra.mxu0 %v4575_v33  ;;  %3001 = vmatpush1.bf16.msra.mxu1 %v4578_v34  ;;  %v4659_v31 = vld [vmem:[#allocation8 + $0x7c0] ss:$16 sps:$4 sm:$0xff]   ;;  %v4662_v33 = vld [vmem:[#allocation8 + $0x7c8] ss:$16 sps:$4 sm:$0xff]   ;;  %v4667_v34 = vld [vmem:[#allocation8 + $0x7e4] ss:$16 sps:$4 sm:$0xff]  }
 0x213   :  { %2830 = vmatprep.subr.bf16.mxu0 %v4583_v36  ;;  %3002 = vmatprep.subr.bf16.mxu1 %v4586_v37  ;;  %v4665_v36 = vld [vmem:[#allocation8 + $0x7e0] ss:$16 sps:$4 sm:$0xff]   ;;  %v4668_v37 = vld [vmem:[#allocation8 + $0x7e8] ss:$16 sps:$4 sm:$0xff]  }
 0x214   :  { %2860 = vmatprep.mubr.bf16.mxu0 %v1140_v35  ;;  %3032 = vmatprep.mubr.bf16.mxu1 %v1140_v35  ;;  %v4670_v35 = vld [vmem:[#allocation8 + $0x7ec] ss:$16 sps:$4 sm:$0xff]  }
 0x216   :  { %2831 = vmatpush1.bf16.msra.mxu0 %v4581_v38  ;;  %3003 = vmatpush1.bf16.msra.mxu1 %v4584_v41  ;;  %v4673_v38 = vld [vmem:[#allocation10 + $0x4] ss:$8 sps:$4 sm:$0xff]   ;;  %v4671_v41 = vld [vmem:[#allocation10] ss:$8 sps:$4 sm:$0xff]  }
 0x217   :  { %2832 = vmatprep.subr.bf16.mxu0 %v4589_v42  ;;  %3004 = vmatprep.subr.bf16.mxu1 %v4592_v43  ;;  %v4676_v42 = vld [vmem:[#allocation10 + $0x14] ss:$8 sps:$4 sm:$0xff]   ;;  %v4674_v43 = vld [vmem:[#allocation10 + $0x10] ss:$8 sps:$4 sm:$0xff]  }
 0x21a   :  { %2833 = vmatpush1.bf16.msra.mxu0 %v4587_v44  ;;  %3005 = vmatpush1.bf16.msra.mxu1 %v4590_v45  ;;  %v4679_v44 = vld [vmem:[#allocation10 + $0x24] ss:$8 sps:$4 sm:$0xff]   ;;  %v4677_v45 = vld [vmem:[#allocation10 + $0x20] ss:$8 sps:$4 sm:$0xff]  }
 0x21b   :  { %2834 = vmatprep.subr.bf16.mxu0 %v4595_v46  ;;  %3006 = vmatprep.subr.bf16.mxu1 %v4598_v47  ;;  %v4682_v46 = vld [vmem:[#allocation10 + $0x34] ss:$8 sps:$4 sm:$0xff]   ;;  %v4680_v47 = vld [vmem:[#allocation10 + $0x30] ss:$8 sps:$4 sm:$0xff]  }
 0x21e   :  { %2835 = vmatpush1.bf16.msra.mxu0 %v4593_v5  ;;  %3007 = vmatpush1.bf16.msra.mxu1 %v4596_v51  ;;  %v4685_v5 = vld [vmem:[#allocation10 + $0x44] ss:$8 sps:$4 sm:$0xff]   ;;  %v4683_v51 = vld [vmem:[#allocation10 + $0x40] ss:$8 sps:$4 sm:$0xff]  }
 0x21f   :  { %2836 = vmatprep.subr.bf16.mxu0 %v4601_v48  ;;  %3008 = vmatprep.subr.bf16.mxu1 %v4604_v49  ;;  %v4688_v48 = vld [vmem:[#allocation10 + $0x54] ss:$8 sps:$4 sm:$0xff]   ;;  %v4686_v49 = vld [vmem:[#allocation10 + $0x50] ss:$8 sps:$4 sm:$0xff]  }
 0x222   :  { %2837 = vmatpush1.bf16.msra.mxu0 %v4599_v50  ;;  %3009 = vmatpush1.bf16.msra.mxu1 %v4602_v52  ;;  %v4689_v50 = vld [vmem:[#allocation10 + $0x60] ss:$8 sps:$4 sm:$0xff]   ;;  %v4694_v52 = vld [vmem:[#allocation10 + $0x74] ss:$8 sps:$4 sm:$0xff]  }
 0x223   :  { %2838 = vmatprep.subr.bf16.mxu0 %v4607_v53  ;;  %3010 = vmatprep.subr.bf16.mxu1 %v4610_v54  ;;  %v4692_v53 = vld [vmem:[#allocation10 + $0x70] ss:$8 sps:$4 sm:$0xff]   ;;  %v4697_v54 = vld [vmem:[#allocation10 + $0x84] ss:$8 sps:$4 sm:$0xff]  }
 0x226   :  { %2839 = vmatpush1.bf16.msra.mxu0 %v4605_v55  ;;  %3011 = vmatpush1.bf16.msra.mxu1 %v4608_v56  ;;  %v4695_v55 = vld [vmem:[#allocation10 + $0x80] ss:$8 sps:$4 sm:$0xff]   ;;  %v4700_v56 = vld [vmem:[#allocation10 + $0x94] ss:$8 sps:$4 sm:$0xff]  }
 0x227   :  { %2840 = vmatprep.subr.bf16.mxu0 %v4613_v57  ;;  %3012 = vmatprep.subr.bf16.mxu1 %v4616_v58  ;;  %v4698_v57 = vld [vmem:[#allocation10 + $0x90] ss:$8 sps:$4 sm:$0xff]   ;;  %v4703_v58 = vld [vmem:[#allocation10 + $0xa4] ss:$8 sps:$4 sm:$0xff]  }
 0x22a   :  { %2841 = vmatpush1.bf16.msra.mxu0 %v4611_v59  ;;  %3013 = vmatpush1.bf16.msra.mxu1 %v4614_v60  ;;  %v4701_v59 = vld [vmem:[#allocation10 + $0xa0] ss:$8 sps:$4 sm:$0xff]   ;;  %v4706_v60 = vld [vmem:[#allocation10 + $0xb4] ss:$8 sps:$4 sm:$0xff]  }
 0x22b   :  { %2842 = vmatprep.subr.bf16.mxu0 %v4619_v61  ;;  %3014 = vmatprep.subr.bf16.mxu1 %v4622_v62  ;;  %v4704_v61 = vld [vmem:[#allocation10 + $0xb0] ss:$8 sps:$4 sm:$0xff]   ;;  %v4709_v62 = vld [vmem:[#allocation10 + $0xc4] ss:$8 sps:$4 sm:$0xff]  }
 0x22e   :  { %2843 = vmatpush1.bf16.msra.mxu0 %v4617_v63  ;;  %3015 = vmatpush1.bf16.msra.mxu1 %v4620_v0  ;;  %v4707_v63 = vld [vmem:[#allocation10 + $0xc0] ss:$8 sps:$4 sm:$0xff]   ;;  %v4712_v0 = vld [vmem:[#allocation10 + $0xd4] ss:$8 sps:$4 sm:$0xff]  }
 0x22f   :  { %2844 = vmatprep.subr.bf16.mxu0 %v4625_v1  ;;  %3016 = vmatprep.subr.bf16.mxu1 %v4628_v2  ;;  %v4710_v1 = vld [vmem:[#allocation10 + $0xd0] ss:$8 sps:$4 sm:$0xff]   ;;  %v4715_v2 = vld [vmem:[#allocation10 + $0xe4] ss:$8 sps:$4 sm:$0xff]  }
 0x232   :  { %2845 = vmatpush1.bf16.msra.mxu0 %v4623_v3  ;;  %3017 = vmatpush1.bf16.msra.mxu1 %v4626_v4  ;;  %v4713_v3 = vld [vmem:[#allocation10 + $0xe0] ss:$8 sps:$4 sm:$0xff]   ;;  %v4718_v4 = vld [vmem:[#allocation10 + $0xf4] ss:$8 sps:$4 sm:$0xff]  }
 0x233   :  { %2846 = vmatprep.subr.bf16.mxu0 %v4631_v7  ;;  %3018 = vmatprep.subr.bf16.mxu1 %v4634_v8  ;;  %v4716_v7 = vld [vmem:[#allocation10 + $0xf0] ss:$8 sps:$4 sm:$0xff]   ;;  %v4721_v8 = vld [vmem:[#allocation10 + $0x104] ss:$8 sps:$4 sm:$0xff]  }
 0x236   :  { %2847 = vmatpush1.bf16.msra.mxu0 %v4629_v17  ;;  %3019 = vmatpush1.bf16.msra.mxu1 %v4632_v13  ;;  %v4767_v17 = vld [vmem:[#allocation11 + $0x40] sm:$0xff]  }
 0x237   :  { %2848 = vmatprep.subr.bf16.mxu0 %v4637_v14  ;;  %3020 = vmatprep.subr.bf16.mxu1 %v4640_v15  ;;  %v4768_v13 = vld [vmem:[#allocation11] sm:$0xff]   ;;  %v4769_v14 = vld [vmem:[#allocation11 + $0x48] sm:$0xff]  }
 0x238   :  { %v4770_v15 = vld [vmem:[#allocation11 + $0x8] sm:$0xff]  }
 0x23a   :  { %2849 = vmatpush1.bf16.msra.mxu0 %v4635_v16  ;;  %3021 = vmatpush1.bf16.msra.mxu1 %v4638_v18  ;;  %v4771_v16 = vld [vmem:[#allocation11 + $0x50] sm:$0xff]  }
 0x23b   :  { %2850 = vmatprep.subr.bf16.mxu0 %v4643_v19  ;;  %3022 = vmatprep.subr.bf16.mxu1 %v4646_v20  ;;  %v4772_v18 = vld [vmem:[#allocation11 + $0x10] sm:$0xff]   ;;  %v4773_v19 = vld [vmem:[#allocation11 + $0x58] sm:$0xff]  }
 0x23c   :  { %v4774_v20 = vld [vmem:[#allocation11 + $0x18] sm:$0xff]  }
 0x23e   :  { %2851 = vmatpush1.bf16.msra.mxu0 %v4641_v21  ;;  %3023 = vmatpush1.bf16.msra.mxu1 %v4644_v22  ;;  %v4775_v21 = vld [vmem:[#allocation11 + $0x60] sm:$0xff]  }
 0x23f   :  { %2852 = vmatprep.subr.bf16.mxu0 %v4649_v23  ;;  %3024 = vmatprep.subr.bf16.mxu1 %v4652_v24  ;;  %v4776_v22 = vld [vmem:[#allocation11 + $0x20] sm:$0xff]   ;;  %v4777_v23 = vld [vmem:[#allocation11 + $0x68] sm:$0xff]   ;;  %v1397_v24 = vld [vmem:[%s5212_s5] sm:$0xf] }
 0x242   :  { %2853 = vmatpush1.bf16.msra.mxu0 %v4647_v25  ;;  %3025 = vmatpush1.bf16.msra.mxu1 %v4650_v26  ;;  %v1402_v25 = vrot.slane %v1397_v24, %v5130_v10  ;;  %v1410_v26 = vrot.slane %v1397_v24, %v275_v39 }
 0x243   :  { %2854 = vmatprep.subr.bf16.mxu0 %v4655_v11  ;;  %3026 = vmatprep.subr.bf16.mxu1 %v4658_v27  ;;  %v1406_v11 = vrot.slane %v1397_v24, %v5138_v12  ;;  %v1414_v27 = vrot.slane %v1397_v24, %v279_v40  ;;  %v4766_v24 = vld [vmem:[#allocation10 + $0x1f4] ss:$8 sps:$4 sm:$0xff]  }
 0x246   :  { %2855 = vmatpush1.bf16.msra.mxu0 %v4653_v6  ;;  %3027 = vmatpush1.bf16.msra.mxu1 %v4656_v28 }
 0x247   :  { %2856 = vmatprep.subr.bf16.mxu0 %v4661_v29  ;;  %3028 = vmatprep.subr.bf16.mxu1 %v4664_v30 }
 0x24a   :  { %2857 = vmatpush1.bf16.msra.mxu0 %v4659_v31  ;;  %3029 = vmatpush1.bf16.msra.mxu1 %v4662_v33 }
 0x24b   :  { %2858 = vmatprep.subr.bf16.mxu0 %v4667_v34  ;;  %3030 = vmatprep.subr.bf16.mxu1 %v4670_v35 }
 0x24e   :  { %2859 = vmatpush1.bf16.msra.mxu0 %v4665_v36  ;;  %3031 = vmatpush1.bf16.msra.mxu1 %v4668_v37 }
 0x24f   :  { %3451 = vmatprep.subr.bf16.mxu0 %v4673_v38  ;;  %4208 = vmatprep.subr.bf16.mxu1 %v4767_v17  ;;  %v4746_v17 = vld [vmem:[#allocation10 + $0x190] ss:$8 sps:$4 sm:$0xff]  }
 0x251   :  { %2861 = vmatmul.mubr.bf16.vlgmr.msra.gmra.mrb[4].mxu0 %v5166_v32  ;;  %3033 = vmatmul.mubr.bf16.vlgmr.msra.gmra.mrb[12].mxu1 %v5166_v32  ;;  %v4691_v32 = vld [vmem:[#allocation10 + $0x64] ss:$8 sps:$4 sm:$0xff]  }
 0x252   :  { %3452 = vmatpush1.bf16.msra.mxu0 %v4671_v41  ;;  %4209 = vmatpush3.bf16.msra.mxu1 %v4768_v13  ;;  %v4751_v13 = vld [vmem:[#allocation10 + $0x1a4] ss:$8 sps:$4 sm:$0xff]  }
 0x253   :  { %3453 = vmatprep.subr.bf16.mxu0 %v4676_v42  ;;  %4210 = vmatprep.subr.bf16.mxu1 %v4769_v14  ;;  %v4749_v14 = vld [vmem:[#allocation10 + $0x1a0] ss:$8 sps:$4 sm:$0xff]  }
 0x256   :  { %3454 = vmatpush1.bf16.msra.mxu0 %v4674_v43  ;;  %4211 = vmatpush3.bf16.msra.mxu1 %v4770_v15  ;;  %v4754_v15 = vld [vmem:[#allocation10 + $0x1b4] ss:$8 sps:$4 sm:$0xff]  }
 0x257   :  { %3455 = vmatprep.subr.bf16.mxu0 %v4679_v44  ;;  %4212 = vmatprep.subr.bf16.mxu1 %v4771_v16  ;;  %v4752_v16 = vld [vmem:[#allocation10 + $0x1b0] ss:$8 sps:$4 sm:$0xff]  }
 0x25a   :  { %3456 = vmatpush1.bf16.msra.mxu0 %v4677_v45  ;;  %4213 = vmatpush3.bf16.msra.mxu1 %v4772_v18  ;;  %v4757_v18 = vld [vmem:[#allocation10 + $0x1c4] ss:$8 sps:$4 sm:$0xff]  }
 0x25b   :  { %3457 = vmatprep.subr.bf16.mxu0 %v4682_v46  ;;  %4214 = vmatprep.subr.bf16.mxu1 %v4773_v19  ;;  %v4755_v19 = vld [vmem:[#allocation10 + $0x1c0] ss:$8 sps:$4 sm:$0xff]  }
 0x25e   :  { %3458 = vmatpush1.bf16.msra.mxu0 %v4680_v47  ;;  %4215 = vmatpush3.bf16.msra.mxu1 %v4774_v20  ;;  %v4760_v20 = vld [vmem:[#allocation10 + $0x1d4] ss:$8 sps:$4 sm:$0xff]  }
 0x25f   :  { %3459 = vmatprep.subr.bf16.mxu0 %v4685_v5  ;;  %4216 = vmatprep.subr.bf16.mxu1 %v4775_v21  ;;  %v4758_v21 = vld [vmem:[#allocation10 + $0x1d0] ss:$8 sps:$4 sm:$0xff]  }
 0x262   :  { %3460 = vmatpush1.bf16.msra.mxu0 %v4683_v51  ;;  %4217 = vmatpush3.bf16.msra.mxu1 %v4776_v22  ;;  %v4763_v22 = vld [vmem:[#allocation10 + $0x1e4] ss:$8 sps:$4 sm:$0xff]  }
 0x263   :  { %3461 = vmatprep.subr.bf16.mxu0 %v4688_v48  ;;  %4218 = vmatprep.subr.bf16.mxu1 %v4777_v23  ;;  %v4761_v23 = vld [vmem:[#allocation10 + $0x1e0] ss:$8 sps:$4 sm:$0xff]  }
 0x266   :  { %3462 = vmatpush1.bf16.msra.mxu0 %v4686_v49 }
 0x267   :  { %3463 = vmatprep.subr.bf16.mxu0 %v4691_v32 }
 0x26a   :  { %3464 = vmatpush1.bf16.msra.mxu0 %v4689_v50 }
 0x26b   :  { %3465 = vmatprep.subr.bf16.mxu0 %v4694_v52 }
 0x26e   :  { %3466 = vmatpush1.bf16.msra.mxu0 %v4692_v53  ;;  %v4719_v53 = vld [vmem:[#allocation10 + $0x100] ss:$8 sps:$4 sm:$0xff]  }
 0x26f   :  { %3467 = vmatprep.subr.bf16.mxu0 %v4697_v54  ;;  %v4724_v54 = vld [vmem:[#allocation10 + $0x114] ss:$8 sps:$4 sm:$0xff]  }
 0x272   :  { %3468 = vmatpush1.bf16.msra.mxu0 %v4695_v55  ;;  %v4722_v55 = vld [vmem:[#allocation10 + $0x110] ss:$8 sps:$4 sm:$0xff]  }
 0x273   :  { %3469 = vmatprep.subr.bf16.mxu0 %v4700_v56  ;;  %v4727_v56 = vld [vmem:[#allocation10 + $0x124] ss:$8 sps:$4 sm:$0xff]  }
 0x276   :  { %3470 = vmatpush1.bf16.msra.mxu0 %v4698_v57  ;;  %v4725_v57 = vld [vmem:[#allocation10 + $0x120] ss:$8 sps:$4 sm:$0xff]  }
 0x277   :  { %3471 = vmatprep.subr.bf16.mxu0 %v4703_v58  ;;  %v4730_v58 = vld [vmem:[#allocation10 + $0x134] ss:$8 sps:$4 sm:$0xff]  }
 0x27a   :  { %3472 = vmatpush1.bf16.msra.mxu0 %v4701_v59  ;;  %v4728_v59 = vld [vmem:[#allocation10 + $0x130] ss:$8 sps:$4 sm:$0xff]  }
 0x27b   :  { %3473 = vmatprep.subr.bf16.mxu0 %v4706_v60  ;;  %v4733_v60 = vld [vmem:[#allocation10 + $0x144] ss:$8 sps:$4 sm:$0xff]  }
 0x27e   :  { %3474 = vmatpush1.bf16.msra.mxu0 %v4704_v61  ;;  %v4731_v61 = vld [vmem:[#allocation10 + $0x140] ss:$8 sps:$4 sm:$0xff]  }
 0x27f   :  { %3475 = vmatprep.subr.bf16.mxu0 %v4709_v62  ;;  %v4736_v62 = vld [vmem:[#allocation10 + $0x154] ss:$8 sps:$4 sm:$0xff]  }
 0x282   :  { %3476 = vmatpush1.bf16.msra.mxu0 %v4707_v63  ;;  %v4734_v63 = vld [vmem:[#allocation10 + $0x150] ss:$8 sps:$4 sm:$0xff]  }
 0x283   :  { %3477 = vmatprep.subr.bf16.mxu0 %v4712_v0  ;;  %v4739_v0 = vld [vmem:[#allocation10 + $0x164] ss:$8 sps:$4 sm:$0xff]  }
 0x286   :  { %3478 = vmatpush1.bf16.msra.mxu0 %v4710_v1  ;;  %v4737_v1 = vld [vmem:[#allocation10 + $0x160] ss:$8 sps:$4 sm:$0xff]  }
 0x287   :  { %3479 = vmatprep.subr.bf16.mxu0 %v4715_v2  ;;  %v4742_v2 = vld [vmem:[#allocation10 + $0x174] ss:$8 sps:$4 sm:$0xff]  }
 0x28a   :  { %3480 = vmatpush1.bf16.msra.mxu0 %v4713_v3  ;;  %v4740_v3 = vld [vmem:[#allocation10 + $0x170] ss:$8 sps:$4 sm:$0xff]  }
 0x28b   :  { %3481 = vmatprep.subr.bf16.mxu0 %v4718_v4  ;;  %v4745_v4 = vld [vmem:[#allocation10 + $0x184] ss:$8 sps:$4 sm:$0xff]  }
 0x28e   :  { %3482 = vmatpush1.bf16.msra.mxu0 %v4716_v7  ;;  %v4743_v7 = vld [vmem:[#allocation10 + $0x180] ss:$8 sps:$4 sm:$0xff]  }
 0x28f   :  { %3494 = vmatprep.subr.bf16.mxu0 %v4721_v8  ;;  %v4748_v8 = vld [vmem:[#allocation10 + $0x194] ss:$8 sps:$4 sm:$0xff]  }
 0x324   :  { %v2862_v6 = vpop.f32.mrb[4].mxu0  ;;  %v3034_v28 = vpop.f32.mrb[12].mxu1 }
 0x325   :  { %v4230_v29 = vadd.f32 %v2862_v6, %v1402_v25  ;;  %v4234_v30 = vadd.f32 %v3034_v28, %v1410_v26  ;;  %v2864_v31 = vpop.f32.mrb[5].mxu0  ;;  %v3036_v33 = vpop.f32.mrb[13].mxu1  ;;  %v4781_v6 = vld [vmem:[#allocation11 + $0x78] sm:$0xff]  }
 0x326   :  { %v4231_v34 = vadd.f32 %v2864_v31, %v1406_v11  ;;  %v4235_v35 = vadd.f32 %v3036_v33, %v1414_v27  ;;  %v2866_v36 = vpop.f32.mrb[6].mxu0  ;;  %v3038_v37 = vpop.f32.mrb[14].mxu1  ;;  %v4782_v28 = vld [vmem:[#allocation11 + $0x38] sm:$0xff]  }
 0x327   :  { %v4232_v38 = vadd.f32 %v2866_v36, %v1402_v25  ;;  %v4236_v41 = vadd.f32 %v3038_v37, %v1410_v26  ;;  %v2868_v42 = vpop.f32.mrb[7].mxu0  ;;  %v3040_v43 = vpop.f32.mrb[15].mxu1  ;;  %v3043_v45 = vmax.f32 %v4230_v29, 0.0  ;;  %v3045_v46 = vmax.f32 %v4234_v30, 0.0  ;;  %v4764_v25 = vld [vmem:[#allocation10 + $0x1f0] ss:$8 sps:$4 sm:$0xff]  }
 0x328   :  { %v4233_v39 = vadd.f32 %v2868_v42, %v1406_v11  ;;  %v4237_v44 = vadd.f32 %v3040_v43, %v1414_v27  ;;  %v3044_v47 = vmax.f32 %v4231_v34, 0.0  ;;  %v3046_v5 = vmax.f32 %v4235_v35, 0.0  ;;  %v4778_v26 = vld [vmem:[#allocation11 + $0x28] sm:$0xff]   ;;  %v4779_v11 = vld [vmem:[#allocation11 + $0x70] sm:$0xff]  }
 0x329   :  { %v3047_v9 = vmax.f32 %v4232_v38, 0.0  ;;  %v3049_v40 = vmax.f32 %v4236_v41, 0.0  ;;  %4219 = vmatpush3.bf16.msra.mxu1 %v4778_v26  ;;  %v4780_v27 = vld [vmem:[#allocation11 + $0x30] sm:$0xff]  }
 0x32a   :  { %v3048_v51 = vmax.f32 %v4233_v39, 0.0  ;;  %v3050_v48 = vmax.f32 %v4237_v44, 0.0  ;;  %4220 = vmatprep.subr.bf16.mxu1 %v4779_v11  ;;  %v3119_v29 = vld [vmem:[%s5214_s7] sm:$0x3] }
 0x32b   :  { %v3051_v49 = vpack.c.bf16 %v3047_v9, %v3043_v45  ;;  %v5181_v32 = vpack.c.bf16 %v3049_v40, %v3045_v46  ;;  %v3124_v30 = vrot.slane %v3119_v29, %v5130_v10  ;;  %v3128_v31 = vrot.slane %v3119_v29, %v5138_v12  ;;  %v4191_v10 = vld [vmem:[%s5216_s9] ss:$0 sm:$0xff] }
 0x32c   :  { %v3052_v50 = vpack.c.bf16 %v3048_v51, %v3044_v47  ;;  %v3054_v52 = vpack.c.bf16 %v3050_v48, %v3046_v5 }
 0x32d   :  { %4221 = vmatpush3.bf16.msra.mxu1 %v4780_v27 }
 0x32e   :  { %3483 = vmatprep.mubr.bf16.mxu0 %v3052_v50  ;;  %4222 = vmatprep.subr.bf16.mxu1 %v4781_v6 }
 0x32f   :  { %3484 = vmatmul.mubr.bf16.vlgmr.msra.gmra.mrb[8].mxu0 %v3051_v49 }
 0x330   :  { %3495 = vmatpush1.bf16.msra.mxu0 %v4719_v53  ;;  %3526 = vmatprep.mubr.bf16.mxu0 %v3054_v52 }
 0x331   :  { %3496 = vmatprep.subr.bf16.mxu0 %v4724_v54  ;;  %4223 = vmatpush3.bf16.msra.mxu1 %v4782_v28 }
 0x334   :  { %3497 = vmatpush1.bf16.msra.mxu0 %v4722_v55 }
 0x335   :  { %3498 = vmatprep.subr.bf16.mxu0 %v4727_v56 }
 0x338   :  { %3499 = vmatpush1.bf16.msra.mxu0 %v4725_v57 }
 0x339   :  { %3500 = vmatprep.subr.bf16.mxu0 %v4730_v58 }
 0x33c   :  { %3501 = vmatpush1.bf16.msra.mxu0 %v4728_v59 }
 0x33d   :  { %3502 = vmatprep.subr.bf16.mxu0 %v4733_v60 }
 0x340   :  { %3503 = vmatpush1.bf16.msra.mxu0 %v4731_v61 }
 0x341   :  { %3504 = vmatprep.subr.bf16.mxu0 %v4736_v62 }
 0x344   :  { %3505 = vmatpush1.bf16.msra.mxu0 %v4734_v63 }
 0x345   :  { %3506 = vmatprep.subr.bf16.mxu0 %v4739_v0 }
 0x348   :  { %3507 = vmatpush1.bf16.msra.mxu0 %v4737_v1 }
 0x349   :  { %3508 = vmatprep.subr.bf16.mxu0 %v4742_v2 }
 0x34c   :  { %3509 = vmatpush1.bf16.msra.mxu0 %v4740_v3 }
 0x34d   :  { %3510 = vmatprep.subr.bf16.mxu0 %v4745_v4 }
 0x350   :  { %3511 = vmatpush1.bf16.msra.mxu0 %v4743_v7 }
 0x351   :  { %3512 = vmatprep.subr.bf16.mxu0 %v4748_v8 }
 0x354   :  { %3513 = vmatpush1.bf16.msra.mxu0 %v4746_v17 }
 0x355   :  { %3514 = vmatprep.subr.bf16.mxu0 %v4751_v13 }
 0x358   :  { %3515 = vmatpush1.bf16.msra.mxu0 %v4749_v14 }
 0x359   :  { %3516 = vmatprep.subr.bf16.mxu0 %v4754_v15 }
 0x35c   :  { %3517 = vmatpush1.bf16.msra.mxu0 %v4752_v16 }
 0x35d   :  { %3518 = vmatprep.subr.bf16.mxu0 %v4757_v18 }
 0x360   :  { %3519 = vmatpush1.bf16.msra.mxu0 %v4755_v19 }
 0x361   :  { %3520 = vmatprep.subr.bf16.mxu0 %v4760_v20 }
 0x364   :  { %3521 = vmatpush1.bf16.msra.mxu0 %v4758_v21 }
 0x365   :  { %3522 = vmatprep.subr.bf16.mxu0 %v4763_v22 }
 0x368   :  { %3523 = vmatpush1.bf16.msra.mxu0 %v4761_v23 }
 0x369   :  { %3524 = vmatprep.subr.bf16.mxu0 %v4766_v24 }
 0x36c   :  { %3525 = vmatpush1.bf16.msra.mxu0 %v4764_v25 }
 0x36f   :  { %3527 = vmatmul.mubr.bf16.vlgmr.msra.gmra.mrb[8].mxu0 %v5181_v32 }
 0x442   :  { %v3528_v33 = vpop.f32.mrb[8].mxu0 }
 0x443   :  { %v4238_v34 = vadd.f32 %v3528_v33, %v3124_v30  ;;  %v3530_v35 = vpop.f32.mrb[9].mxu0 }
 0x444   :  { %v4239_v36 = vadd.f32 %v3530_v35, %v3128_v31  ;;  %v3532_v37 = vpop.f32.mrb[10].mxu0 }
 0x445   :  { %v4240_v38 = vadd.f32 %v3532_v37, %v3124_v30  ;;  %v3534_v41 = vpop.f32.mrb[11].mxu0  ;;  %v3537_v43 = vmax.f32 %v4238_v34, 0.0 }
 0x446   :  { %v4241_v42 = vadd.f32 %v3534_v41, %v3128_v31  ;;  %v3538_v44 = vmax.f32 %v4239_v36, 0.0 }
 0x447   :  { %v3539_v39 = vmax.f32 %v4240_v38, 0.0 }
 0x448   :  { %v3540_v45 = vmax.f32 %v4241_v42, 0.0 }
 0x449   :  { %v3541_v46 = vpack.c.bf16 %v3539_v39, %v3537_v43 }
 0x44a   :  { %v3542_v9 = vpack.c.bf16 %v3540_v45, %v3538_v44 }
 0x44c   :  { %3710 = vmatprep.mubr.bf16.mxu1 %v3542_v9 }
 0x44d   :  { %3711 = vmatmul.mubr.bf16.vlgmr.msra.gmra.mrb[16].mxu1 %v3541_v46 }
 0x520   :  { %v4224_v40 = vpop.f32.mrb[16].mxu1 }
 0x521   :  { %v4225_v12 = vpop.f32.mrb[17].mxu1 }
 0x522   :  { %v4226_v47 = vadd.f32 %v4225_v12, %v4224_v40  ;;  %v4227_v5 = vpop.f32.mrb[18].mxu1 }
 0x523   :  { %v4228_v51 = vpop.f32.mrb[19].mxu1 }
 0x524   :  { %v3713_v48 = vadd.f32 %v4226_v47, %v4191_v10  ;;  %v4229_v49 = vadd.f32 %v4228_v51, %v4227_v5 }
 0x526   :  { %3719 = vst [vmem:[#allocation13] sm:$0xff] %v3713_v48  ;;  %v3716_v32 = vadd.f32 %v4229_v49, %v4191_v10 }
 0x528   :  { %3720 = vst [vmem:[#allocation13 + $0x8] sm:$0xff] %v3716_v32 }
 0x529   :  { %4928 = shalt.err (!%p4925_p10)
}
 0x52a   :  { %s4929_s18 = scalar_lea.hbm %s5217_s10, 256 }
 0x52b   :  { %p4930_p11 = scmp.ne.s32.totalorder %s5217_s10, %s4929_s18  ;;  %p4933_p12 = scmp.lt.u32.totalorder %s4929_s18, %s5217_s10 }
 0x52d   :  { %p4935_p13 = pnand %p4933_p12, %p4930_p11 }
 0x52f   :  { %4938 = shalt.err (!%p4935_p13)
}
 0x530   :  { %3732 = dma.vmem_to_hbm [thread:$0]  %s3727_s16, 256, %s5217_s10, [#allocation4], %s4960_s2, %s4960_s2, %s4961_s24  }
 0x531   :  { %4947 = dma.done.wait [#allocation4], 256  }
 0x532   :  { %4948 = vsyncadd [#allocation4], 4294967040 }
 0x533   :  { %3736 = vsyncpa [#allocation3], 1 }
 0x534   :  { %3737 = vsyncpa [#allocation6], 1 }
 0x535   :  { %3738 = vsyncpa [#allocation9], 1 }
 0x536   :  { %3739 = vsyncpa [#allocation12], 1 }
 0x537   :  { %3740 = vsyncpa [#allocation4], 1 }

</bundles_post_ra>
